<compile_context>
chip_gen: v6e
topology: v6e:2x2x1
jax: 0.10.0
libtpu: 0.0.40
codegen_flags: <defaults>
</compile_context>

<pallas_src>
import functools
from collections import namedtuple

import jax
import jax.numpy as jnp
from jax.experimental import pallas as pl
from jax.experimental.pallas import tpu as pltpu

BN_EPS = 1e-5
STAGE = [0, 2, 5, 9]

# Explicit VMEM cap keeps the same kernels portable to v7x (64 MiB physical VMEM).
_COMPILER_PARAMS = pltpu.CompilerParams(vmem_limit_bytes=32 * 1024 * 1024)

Genotype = namedtuple('Genotype', 'normal normal_concat reduce reduce_concat')

# Genotype chosen for this synthetic instantiation (constructor argument of MetaNetwork).
GENOTYPE = Genotype(
    normal=[('sep_conv_3x3', 0), ('skip_connect', 1),
            ('sep_conv_3x3', 1), ('skip_connect', 0),
            ('skip_connect', 1), ('skip_connect', 2),
            ('skip_connect', 2), ('skip_connect', 3)],
    normal_concat=[2, 3, 4, 5],
    reduce=[('skip_connect', 0), ('skip_connect', 1),
            ('skip_connect', 2), ('skip_connect', 1),
            ('skip_connect', 2), ('skip_connect', 3),
            ('skip_connect', 4), ('skip_connect', 2)],
    reduce_concat=[2, 3, 4, 5])


# ----------------------------- Pallas kernels -----------------------------

def _mm_affine_kernel(x_ref, w_ref, scale_ref, bias_ref, *rest, apply_relu, has_add):
    """o = relu?(x) @ w * scale + bias [+ add].  Single block, bf16 MXU, f32 accumulate."""
    if has_add:
        add_ref, o_ref = rest
    else:
        (o_ref,) = rest
    x = x_ref[...]
    if apply_relu:
        x = jnp.maximum(x, 0.0)                       # f32 VPU (v5e-safe)
    out = jnp.dot(x.astype(jnp.bfloat16), w_ref[...],
                  preferred_element_type=jnp.float32)
    out = out * scale_ref[...] + bias_ref[...]
    if has_add:
        out = out + add_ref[...]
    o_ref[...] = out


def _conv3x3_kernel(x_ref, q_ref, scale_ref, bias_ref, *rest, B, H, apply_relu, has_add):
    """Fused 3x3 conv (stride 1, pad 1) + BN affine [+ residual add] in flattened NHWC layout.

    x_ref:     (B, H+2, W*Cin)  -- H zero-padded, W padding folded into q
    q_ref:     (3, W*Cin, W*Cout) bf16 -- per-dy packed weights (dx shifts + im2col folded in);
               passed ONCE (no batch broadcast), kernel loops over the small static batch.
    scale/bias:(1, W*Cout)
    add_ref:   (B, H, W*Cout) optional residual
    o_ref:     (B, H, W*Cout)
    """
    if has_add:
        add_ref, o_ref = rest
    else:
        (o_ref,) = rest
    scale = scale_ref[...]                            # (1, N) -> broadcasts over rows
    bias = bias_ref[...]
    qs = [q_ref[dy] for dy in range(3)]               # hoist weight loads out of the batch loop
    n_out = o_ref.shape[-1]
    for b in range(B):                                # B is small & static: plain 2-D MXU dots
        x = x_ref[b]                                  # (H+2, W*Cin)
        if apply_relu:
            x = jnp.maximum(x, 0.0)                   # relu(0)=0, so relu commutes with zero pad
        x = x.astype(jnp.bfloat16)
        acc = jnp.zeros((H, n_out), jnp.float32)
        for dy in range(3):                           # 3 MXU dots; taps folded into q
            acc = acc + jnp.dot(x[dy:dy + H, :], qs[dy],
                                preferred_element_type=jnp.float32)
        out = acc * scale + bias
        if has_add:
            out = out + add_ref[b]
        o_ref[b] = out


def _gap_linear_kernel(x_ref, w_ref, b_ref, o_ref):
    """AdaptiveAvgPool2d(1) + flatten + linear classifier in one kernel."""
    pooled = jnp.mean(x_ref[...], axis=1)                       # (B, C)
    o_ref[...] = jnp.dot(pooled.astype(jnp.bfloat16), w_ref[...],
                         preferred_element_type=jnp.float32) + b_ref[...]


# ----------------------------- kernel wrappers (apply) -----------------------------

def matmul_affine(x2d, pk, *, apply_relu=False, add=None):
    """o = relu?(x) @ w * scale + bias [+ add].  pk: packed dict(w bf16 (K,N), scale/bias (1,N))."""
    M = x2d.shape[0]
    N = pk['w'].shape[1]
    args = [x2d, pk['w'], pk['scale'], pk['bias']]
    if add is not None:
        args.append(add)
    kernel = functools.partial(_mm_affine_kernel, apply_relu=apply_relu,
                               has_add=add is not None)
    return pl.pallas_call(
        kernel,
        out_shape=jax.ShapeDtypeStruct((M, N), jnp.float32),
        compiler_params=_COMPILER_PARAMS,
    )(*args)


def conv3x3_apply(x, pk, *, apply_relu, add=None):
    """relu?(x) -> 3x3 conv (stride 1, pad 1, packed weights) -> BN affine [-> +add]."""
    B, H, W, cin = x.shape
    n_out = pk['q'].shape[2]                          # == W * Cout
    cout = n_out // W
    xp = jnp.pad(x, ((0, 0), (1, 1), (0, 0), (0, 0))).reshape(B, H + 2, W * cin)
    args = [xp, pk['q'], pk['scale'], pk['bias']]
    if add is not None:
        args.append(add.reshape(B, H, n_out))
    kernel = functools.partial(_conv3x3_kernel, B=B, H=H, apply_relu=apply_relu,
                               has_add=add is not None)
    y = pl.pallas_call(
        kernel,
        out_shape=jax.ShapeDtypeStruct((B, H, n_out), jnp.float32),
        compiler_params=_COMPILER_PARAMS,
    )(*args)
    return y.reshape(B, H, W, cout)


def head_apply(x, pk):
    """Fused AdaptiveAvgPool2d(1) + flatten + MetaLinearLayer (x @ W.T + b)."""
    B, H, W, C = x.shape
    N = pk['w'].shape[1]
    return pl.pallas_call(
        _gap_linear_kernel,
        out_shape=jax.ShapeDtypeStruct((B, N), jnp.float32),
        compiler_params=_COMPILER_PARAMS,
    )(x.reshape(B, H * W, C), pk['w'], pk['b'])


def relu_conv_bn_apply(x, pk):
    """MetaReLUConvBN (kernel 1, stride 1, pad 0)."""
    B, H, W, Cin = x.shape
    N = pk['w'].shape[1]
    y = matmul_affine(x.reshape(-1, Cin), pk, apply_relu=True)
    return y.reshape(B, H, W, N)


def preprocess_pair_apply(s0, s1, pk, same_input):
    """Both preprocesses are ReLUConvBN(1x1): one fused matmul_affine launch (concatenated or
    block-diagonal weight depending on whether both preprocesses read the same tensor)."""
    assert s0.shape[:3] == s1.shape[:3]
    B, H, W, C0 = s0.shape
    ntot = pk['w'].shape[1]
    n0 = ntot // 2                                   # both preprocesses emit C channels
    if same_input:
        x2d = s0.reshape(-1, C0)
    else:
        x2d = jnp.concatenate([s0, s1], axis=-1).reshape(B * H * W, C0 + s1.shape[-1])
    y = matmul_affine(x2d, pk, apply_relu=True).reshape(B, H, W, ntot)
    return y[..., :n0], y[..., n0:]


def fact_reduce_apply(x, pk, add=None):
    """MetaFactorizedReduce: ReLU -> two stride-2 1x1 convs (offsets 0/1) -> concat -> BN.

    Fused into ONE matmul: channel-concat the two shifted/strided views and use a
    block-diagonal weight, so the concat + both convs + BN [+ residual add] are one launch.
    """
    B, H, W, Cin = x.shape
    assert H % 2 == 0 and W % 2 == 0, "odd spatial size would diverge from PyTorch stride-2 conv"
    N = pk['w'].shape[1]
    hh, wh = H // 2, W // 2
    x0 = x[:, ::2, ::2, :]
    x1 = x[:, 1::2, 1::2, :]                 # == conv on x[:, :, 1:, 1:] with stride 2
    x2d = jnp.concatenate([x0, x1], axis=-1).reshape(B * hh * wh, 2 * Cin)
    add2d = None if add is None else add.reshape(B * hh * wh, N)
    y = matmul_affine(x2d, pk, apply_relu=True, add=add2d)
    return y.reshape(B, hh, wh, N)


def sep_conv_apply(x, pk, stride, add=None):
    """SepConv: (ReLU, dw3x3, pw1x1, BN) x 2 -- each unit is one fused Pallas kernel
    (depthwise taps folded into the pointwise weight); residual add fused into unit 2."""
    y = conv3x3_apply(x, pk['unit1'], apply_relu=True)
    if stride == 2:
        # pw1x1/BN are pointwise, so subsampling after the fused stride-1 result is equivalent
        y = y[:, ::2, ::2, :]
    return conv3x3_apply(y, pk['unit2'], apply_relu=True, add=add)


# ----------------------------- one-time weight packing -----------------------------

def bn_scale_bias(bn):
    inv = bn['gamma'] / jnp.sqrt(bn['var'] + BN_EPS)
    return inv, bn['beta'] - bn['mean'] * inv


def _pack_conv3x3_weights(T, W):
    """T:(3,3,Cin,Cout) per-tap weights -> Q:(3, W*Cin, W*Cout).

    Q[dy][(w, c), (j, o)] = T[dy, w - j + 1, c, o]  (zero outside the 3-tap window), i.e. the
    dx shifts and the W-direction zero padding are baked into the weight matrix so the kernel
    only needs dy slices of the input and plain MXU dots.
    """
    rows = []
    for dy in range(3):
        q = None
        for dx in range(3):
            e = jnp.eye(W, W, k=dx - 1, dtype=T.dtype)       # e[j, w] = 1 iff w == j + dx - 1
            blk = jnp.kron(e.T, T[dy, dx])                   # (W*Cin, W*Cout)
            q = blk if q is None else q + blk
        rows.append(q)
    return jnp.stack(rows)                                   # (3, W*Cin, W*Cout)


def pack_mm(w, scale_vec, bias_vec):
    n = w.shape[1]
    return dict(w=w.astype(jnp.bfloat16),
                scale=scale_vec.reshape(1, n).astype(jnp.float32),
                bias=bias_vec.reshape(1, n).astype(jnp.float32))


def pack_conv3x3(T, W, scale_vec, bias_vec):
    cout = T.shape[-1]
    Q = _pack_conv3x3_weights(T, W).astype(jnp.bfloat16)
    scale = jnp.tile(scale_vec.astype(jnp.float32), W).reshape(1, W * cout)
    bias = jnp.tile(bias_vec.astype(jnp.float32), W).reshape(1, W * cout)
    return dict(q=Q, scale=scale, bias=bias)


def pack_relu_conv_bn(p):
    scale, bias = bn_scale_bias(p['bn'])
    return pack_mm(p['w'], scale, bias)


def pack_preprocess_pair(p0, p1, same_input):
    n0, n1 = p0['w'].shape[1], p1['w'].shape[1]
    c0, c1 = p0['w'].shape[0], p1['w'].shape[0]
    sc0, bi0 = bn_scale_bias(p0['bn'])
    sc1, bi1 = bn_scale_bias(p1['bn'])
    scale = jnp.concatenate([sc0, sc1])
    bias = jnp.concatenate([bi0, bi1])
    if same_input:
        w = jnp.concatenate([p0['w'], p1['w']], axis=1)                       # (C0, n0+n1)
    else:
        w = jnp.concatenate([
            jnp.concatenate([p0['w'], jnp.zeros((c0, n1), jnp.float32)], axis=1),
            jnp.concatenate([jnp.zeros((c1, n0), jnp.float32), p1['w']], axis=1)], axis=0)
    return pack_mm(w, scale, bias)


def pack_fact_reduce(p):
    cin, ch = p['w1'].shape
    scale, bias = bn_scale_bias(p['bn'])
    wbd = jnp.concatenate([
        jnp.concatenate([p['w1'], jnp.zeros((cin, ch), jnp.float32)], axis=1),
        jnp.concatenate([jnp.zeros((cin, ch), jnp.float32), p['w2']], axis=1)], axis=0)
    return pack_mm(wbd, scale, bias)


def pack_sep_conv(p, w_unit1, w_unit2):
    t1 = p['dw1'][:, :, :, None] * p['pw1'][None, None, :, :]     # (3,3,C,Cout)
    s1v, b1v = bn_scale_bias(p['bn1'])
    t2 = p['dw2'][:, :, :, None] * p['pw2'][None, None, :, :]
    s2v, b2v = bn_scale_bias(p['bn2'])
    return dict(unit1=pack_conv3x3(t1, w_unit1, s1v, b1v),
                unit2=pack_conv3x3(t2, w_unit2, s2v, b2v))


def pack_forward_params(params, meta, H, W):
    """One-time packing of all weights into kernel-ready form (runs OUTSIDE the jitted forward).
    The returned pytree contains only jnp arrays, so it can be passed as a jit argument."""
    fp = {}
    sp = params['stem']
    sc, bi = bn_scale_bias(sp['bn'])
    fp['stem'] = pack_conv3x3(sp['w'], W, sc, bi)
    s0_sp = s1_sp = (H, W)                    # stem is stride-1 / pad-1
    for i in range(meta['layers']):
        cm = meta['cell_{}'.format(i)]
        cp = params['cell_{}'.format(i)]
        cfp = {}
        if cm['reduction_prev']:
            cfp['preprocess0'] = pack_fact_reduce(cp['preprocess0'])
            cfp['preprocess1'] = pack_relu_conv_bn(cp['preprocess1'])
        else:
            cfp['preprocess'] = pack_preprocess_pair(cp['preprocess0'], cp['preprocess1'],
                                                     same_input=cm['same_pre_input'])
        work_sp = s1_sp                       # after preprocessing both states share s1's spatial
        out_sp = ((work_sp[0] // 2, work_sp[1] // 2) if cm['reduction'] else work_sp)
        indices = cm['indices']
        for step in range(len(indices) // 2):
            for j in (0, 1):
                idx = indices[2 * step + j]
                key = 'mixop_{}'.format(idx + STAGE[step])
                name, stride = cm['ops'][key]
                if name == 'sep_conv_3x3':
                    in_w = work_sp[1] if idx < 2 else out_sp[1]
                    cfp[key] = pack_sep_conv(cp[key], in_w, in_w // stride)
                elif name == 'skip_connect' and stride == 2:
                    cfp[key] = pack_fact_reduce(cp[key])
        fp['cell_{}'.format(i)] = cfp
        s0_sp, s1_sp = s1_sp, out_sp
    cw = params['classifier']
    fp['classifier'] = dict(w=cw['w'].astype(jnp.bfloat16),
                            b=cw['b'].reshape(1, -1).astype(jnp.float32))
    return fp


# ----------------------------- parameter init -----------------------------

class KeyGen:
    def __init__(self, seed):
        self._key = jax.random.PRNGKey(seed)

    def __call__(self):
        self._key, sub = jax.random.split(self._key)
        return sub


def init_bn(C):
    return dict(gamma=jnp.ones((C,), jnp.float32), beta=jnp.zeros((C,), jnp.float32),
                mean=jnp.zeros((C,), jnp.float32), var=jnp.ones((C,), jnp.float32))


def init_conv1x1(kg, Cin, Cout):
    w = jax.random.normal(kg(), (Cout, Cin, 1, 1), jnp.float32) * 0.1   # PyTorch layout
    return w[:, :, 0, 0].T                                              # -> (Cin, Cout)


def init_relu_conv_bn(kg, Cin, Cout):
    return dict(w=init_conv1x1(kg, Cin, Cout), bn=init_bn(Cout))


def init_factorized_reduce(kg, Cin, Cout):
    return dict(w1=init_conv1x1(kg, Cin, Cout // 2),
                w2=init_conv1x1(kg, Cin, Cout // 2),
                bn=init_bn(Cout))


def init_dw3x3(kg, C):
    w = jax.random.normal(kg(), (C, 1, 3, 3), jnp.float32) * 0.1        # PyTorch depthwise layout
    return jnp.transpose(w[:, 0], (1, 2, 0))                             # -> (3,3,C)


def init_sep_conv(kg, C):
    return dict(dw1=init_dw3x3(kg, C), pw1=init_conv1x1(kg, C, C), bn1=init_bn(C),
                dw2=init_dw3x3(kg, C), pw2=init_conv1x1(kg, C, C), bn2=init_bn(C))


def init_stem(kg, Cin, Cout):
    w = jax.random.normal(kg(), (Cout, Cin, 3, 3), jnp.float32) * 0.1    # PyTorch layout
    return dict(w=jnp.transpose(w, (2, 3, 1, 0)), bn=init_bn(Cout))      # (3,3,Cin,Cout)


def init_op(kg, name, C, stride):
    if name == 'skip_connect':
        return init_factorized_reduce(kg, C, C) if stride == 2 else None
    if name == 'sep_conv_3x3':
        return init_sep_conv(kg, C)
    raise NotImplementedError(name)


def build_cell(kg, genotype, C_pp, C_p, C, reduction, reduction_prev):
    params = {}
    meta = {'reduction_prev': reduction_prev, 'reduction': reduction}
    if reduction_prev:
        params['preprocess0'] = init_factorized_reduce(kg, C_pp, C)
    else:
        params['preprocess0'] = init_relu_conv_bn(kg, C_pp, C)
    params['preprocess1'] = init_relu_conv_bn(kg, C_p, C)
    op_names, indices = zip(*(genotype.reduce if reduction else genotype.normal))
    concat = genotype.reduce_concat if reduction else genotype.normal_concat
    ops = {}
    for count, (name, index) in enumerate(zip(op_names, indices)):
        stride = 2 if reduction and index < 2 else 1
        mix = 'mixop_{}'.format(index + STAGE[count // 2])
        ops[mix] = (name, stride)
        params[mix] = init_op(kg, name, C, stride)
    meta.update(ops=ops, indices=indices, concat=list(concat))
    return params, meta


def build_meta_network(seed, genotype, in_channels, init_channels, num_classes,
                       layers=2, multiplier=4, stem_multiplier=3):
    kg = KeyGen(seed)
    params, meta = {}, {'layers': layers}
    C = init_channels
    C_curr = stem_multiplier * C
    params['stem'] = init_stem(kg, in_channels, C_curr)
    C_pp, C_p, C_curr = C_curr, C_curr, C
    reduction_prev = False
    for i in range(layers):
        if i == layers - 1:
            C_curr *= 2
            reduction = True
        else:
            reduction = False
        cp, cm = build_cell(kg, genotype, C_pp, C_p, C_curr, reduction, reduction_prev)
        # cell 0 reads the same tensor for both preprocesses (s0 is s1 == stem output)
        cm['same_pre_input'] = (i == 0 and not reduction_prev)
        reduction_prev = reduction
        params['cell_{}'.format(i)] = cp
        meta['cell_{}'.format(i)] = cm
        C_pp, C_p = C_p, multiplier * C_curr
    # classifier: MetaLinearLayer((2, C_prev), num_classes, use_bias=True), W stored pre-transposed
    w = jax.random.normal(kg(), (num_classes, C_p), jnp.float32) * 0.1
    params['classifier'] = dict(w=w.T, b=jnp.zeros((num_classes,), jnp.float32))
    return params, meta


# ----------------------------- forward pass -----------------------------

def _is_identity(name, stride):
    return name == 'skip_connect' and stride == 1


def apply_op(name, stride, pk, x, add=None):
    if name == 'skip_connect':
        if stride == 1:
            return x if add is None else x + add
        return fact_reduce_apply(x, pk, add=add)
    if name == 'sep_conv_3x3':
        return sep_conv_apply(x, pk, stride, add=add)
    raise NotImplementedError(name)


def cell_forward(cfp, cm, s0, s1):
    if cm['reduction_prev']:
        s0p = fact_reduce_apply(s0, cfp['preprocess0'])
        s1p = relu_conv_bn_apply(s1, cfp['preprocess1'])
    else:
        s0p, s1p = preprocess_pair_apply(s0, s1, cfp['preprocess'], cm['same_pre_input'])
    states = [s0p, s1p]
    indices = cm['indices']
    for i in range(len(indices) // 2):
        i1, i2 = indices[2 * i], indices[2 * i + 1]
        k1 = 'mixop_{}'.format(i1 + STAGE[i])
        k2 = 'mixop_{}'.format(i2 + STAGE[i])
        n1, st1 = cm['ops'][k1]
        n2, st2 = cm['ops'][k2]
        if _is_identity(n1, st1) and _is_identity(n2, st2):
            s = states[i1] + states[i2]                          # plain add; XLA fuses it
        elif _is_identity(n2, st2):
            s = apply_op(n1, st1, cfp.get(k1), states[i1], add=states[i2])   # add fused into conv
        else:
            h1 = apply_op(n1, st1, cfp.get(k1), states[i1])
            s = apply_op(n2, st2, cfp.get(k2), states[i2], add=h1)           # add fused into conv
        states.append(s)
    return jnp.concatenate([states[i] for i in cm['concat']], axis=-1)       # torch cat dim=1


def meta_network_forward(fp, meta, x_nchw):
    x = jnp.transpose(x_nchw, (0, 2, 3, 1)).astype(jnp.float32)  # NCHW -> NHWC
    s0 = s1 = conv3x3_apply(x, fp['stem'], apply_relu=False)     # fused stem conv + BN
    for i in range(meta['layers']):
        name = 'cell_{}'.format(i)
        s0, s1 = s1, cell_forward(fp[name], meta[name], s0, s1)
    return head_apply(s1, fp['classifier'])                      # fused GAP + classifier


# ----------------------------- main -----------------------------

if __name__ == "__main__":
    B, in_channels, H, W = 2, 3, 16, 16
    init_channels, num_classes, layers = 4, 10, 2

    params, meta = build_meta_network(0, GENOTYPE, in_channels, init_channels,
                                      num_classes, layers=layers)
    fp = pack_forward_params(params, meta, H, W)      # one-time weight packing, outside jit

    x = jax.random.normal(jax.random.PRNGKey(0), (B, in_channels, H, W), jnp.float32)

    fwd = jax.jit(lambda fp_, xx: meta_network_forward(fp_, meta, xx))
    logits = jax.block_until_ready(fwd(fp, x))

    assert logits.shape == (B, num_classes)
    assert bool(jnp.all(jnp.isfinite(logits)))
    print("KERNEL_OK")
</pallas_src>

<mosaic_0001>
module attributes {stable_mosaic.version = 11 : i64} {
  func.func @_conv3x3_kernel(%arg0: memref<2x18x48xf32, #tpu.memory_space<vmem>>, %arg1: memref<3x48x192xbf16, #tpu.memory_space<vmem>>, %arg2: memref<1x192xf32, #tpu.memory_space<vmem>>, %arg3: memref<1x192xf32, #tpu.memory_space<vmem>>, %arg4: memref<2x16x192xf32, #tpu.memory_space<vmem>>) attributes {dimension_semantics = [], scalar_prefetch = 0 : i64, scratch_operands = 0 : i64, tpu.core_type = #tpu.core_type<tc>} {
    %c0 = arith.constant 0 : index
    %c0_0 = arith.constant 0 : index
    %0 = vector.load %arg2[%c0, %c0_0] : memref<1x192xf32, #tpu.memory_space<vmem>>, vector<1x192xf32>
    %c0_1 = arith.constant 0 : index
    %c0_2 = arith.constant 0 : index
    %1 = vector.load %arg3[%c0_1, %c0_2] : memref<1x192xf32, #tpu.memory_space<vmem>>, vector<1x192xf32>
    %c0_3 = arith.constant 0 : index
    %c0_4 = arith.constant 0 : index
    %c0_5 = arith.constant 0 : index
    %2 = vector.load %arg1[%c0_3, %c0_4, %c0_5] : memref<3x48x192xbf16, #tpu.memory_space<vmem>>, vector<1x48x192xbf16>
    %3 = vector.shape_cast %2 : vector<1x48x192xbf16> to vector<48x192xbf16>
    %c1 = arith.constant 1 : index
    %c0_6 = arith.constant 0 : index
    %c0_7 = arith.constant 0 : index
    %4 = vector.load %arg1[%c1, %c0_6, %c0_7] : memref<3x48x192xbf16, #tpu.memory_space<vmem>>, vector<1x48x192xbf16>
    %5 = vector.shape_cast %4 : vector<1x48x192xbf16> to vector<48x192xbf16>
    %c2 = arith.constant 2 : index
    %c0_8 = arith.constant 0 : index
    %c0_9 = arith.constant 0 : index
    %6 = vector.load %arg1[%c2, %c0_8, %c0_9] : memref<3x48x192xbf16, #tpu.memory_space<vmem>>, vector<1x48x192xbf16>
    %7 = vector.shape_cast %6 : vector<1x48x192xbf16> to vector<48x192xbf16>
    %c0_10 = arith.constant 0 : index
    %c0_11 = arith.constant 0 : index
    %c0_12 = arith.constant 0 : index
    %8 = vector.load %arg0[%c0_10, %c0_11, %c0_12] : memref<2x18x48xf32, #tpu.memory_space<vmem>>, vector<1x18x48xf32>
    %9 = vector.shape_cast %8 : vector<1x18x48xf32> to vector<18x48xf32>
    %10 = arith.truncf %9 : vector<18x48xf32> to vector<18x48xbf16>
    %cst = arith.constant 0.000000e+00 : f32
    %11 = vector.broadcast %cst : f32 to vector<16x192xf32>
    %12 = vector.extract_strided_slice %10 {offsets = [0, 0], sizes = [16, 48], strides = [1, 1]} : vector<18x48xbf16> to vector<16x48xbf16>
    %cst_13 = arith.constant dense<0.000000e+00> : vector<16x192xf32>
    %13 = tpu.matmul %12, %3, %cst_13 {dimension_numbers = #tpu.dot_dimension_numbers<[1], [0], [0], [1], [0, 0, 1, 1], [], []>} : vector<16x48xbf16>, vector<48x192xbf16>, vector<16x192xf32> -> vector<16x192xf32>
    %14 = arith.addf %11, %13 : vector<16x192xf32>
    %15 = vector.extract_strided_slice %10 {offsets = [1, 0], sizes = [16, 48], strides = [1, 1]} : vector<18x48xbf16> to vector<16x48xbf16>
    %cst_14 = arith.constant dense<0.000000e+00> : vector<16x192xf32>
    %16 = tpu.matmul %15, %5, %cst_14 {dimension_numbers = #tpu.dot_dimension_numbers<[1], [0], [0], [1], [0, 0, 1, 1], [], []>} : vector<16x48xbf16>, vector<48x192xbf16>, vector<16x192xf32> -> vector<16x192xf32>
    %17 = arith.addf %14, %16 : vector<16x192xf32>
    %18 = vector.extract_strided_slice %10 {offsets = [2, 0], sizes = [16, 48], strides = [1, 1]} : vector<18x48xbf16> to vector<16x48xbf16>
    %cst_15 = arith.constant dense<0.000000e+00> : vector<16x192xf32>
    %19 = tpu.matmul %18, %7, %cst_15 {dimension_numbers = #tpu.dot_dimension_numbers<[1], [0], [0], [1], [0, 0, 1, 1], [], []>} : vector<16x48xbf16>, vector<48x192xbf16>, vector<16x192xf32> -> vector<16x192xf32>
    %20 = arith.addf %17, %19 : vector<16x192xf32>
    %21 = vector.broadcast %0 : vector<1x192xf32> to vector<16x192xf32>
    %22 = arith.mulf %20, %21 : vector<16x192xf32>
    %23 = vector.broadcast %1 : vector<1x192xf32> to vector<16x192xf32>
    %24 = arith.addf %22, %23 : vector<16x192xf32>
    %c0_16 = arith.constant 0 : index
    %c0_17 = arith.constant 0 : index
    %c0_18 = arith.constant 0 : index
    %25 = vector.load %arg4[%c0_16, %c0_17, %c0_18] : memref<2x16x192xf32, #tpu.memory_space<vmem>>, vector<1x16x192xf32>
    %26 = vector.shape_cast %25 : vector<1x16x192xf32> to vector<16x192xf32>
    %27 = vector.shape_cast %24 : vector<16x192xf32> to vector<1x16x192xf32>
    tpu.vector_store %arg4[%c0_16, %c0_17, %c0_18], %27 {strides = array<i32>} : memref<2x16x192xf32, #tpu.memory_space<vmem>>, vector<1x16x192xf32>,
    %c1_19 = arith.constant 1 : index
    %c0_20 = arith.constant 0 : index
    %c0_21 = arith.constant 0 : index
    %28 = vector.load %arg0[%c1_19, %c0_20, %c0_21] : memref<2x18x48xf32, #tpu.memory_space<vmem>>, vector<1x18x48xf32>
    %29 = vector.shape_cast %28 : vector<1x18x48xf32> to vector<18x48xf32>
    %30 = arith.truncf %29 : vector<18x48xf32> to vector<18x48xbf16>
    %cst_22 = arith.constant 0.000000e+00 : f32
    %31 = vector.broadcast %cst_22 : f32 to vector<16x192xf32>
    %32 = vector.extract_strided_slice %30 {offsets = [0, 0], sizes = [16, 48], strides = [1, 1]} : vector<18x48xbf16> to vector<16x48xbf16>
    %cst_23 = arith.constant dense<0.000000e+00> : vector<16x192xf32>
    %33 = tpu.matmul %32, %3, %cst_23 {dimension_numbers = #tpu.dot_dimension_numbers<[1], [0], [0], [1], [0, 0, 1, 1], [], []>} : vector<16x48xbf16>, vector<48x192xbf16>, vector<16x192xf32> -> vector<16x192xf32>
    %34 = arith.addf %31, %33 : vector<16x192xf32>
    %35 = vector.extract_strided_slice %30 {offsets = [1, 0], sizes = [16, 48], strides = [1, 1]} : vector<18x48xbf16> to vector<16x48xbf16>
    %cst_24 = arith.constant dense<0.000000e+00> : vector<16x192xf32>
    %36 = tpu.matmul %35, %5, %cst_24 {dimension_numbers = #tpu.dot_dimension_numbers<[1], [0], [0], [1], [0, 0, 1, 1], [], []>} : vector<16x48xbf16>, vector<48x192xbf16>, vector<16x192xf32> -> vector<16x192xf32>
    %37 = arith.addf %34, %36 : vector<16x192xf32>
    %38 = vector.extract_strided_slice %30 {offsets = [2, 0], sizes = [16, 48], strides = [1, 1]} : vector<18x48xbf16> to vector<16x48xbf16>
    %cst_25 = arith.constant dense<0.000000e+00> : vector<16x192xf32>
    %39 = tpu.matmul %38, %7, %cst_25 {dimension_numbers = #tpu.dot_dimension_numbers<[1], [0], [0], [1], [0, 0, 1, 1], [], []>} : vector<16x48xbf16>, vector<48x192xbf16>, vector<16x192xf32> -> vector<16x192xf32>
    %40 = arith.addf %37, %39 : vector<16x192xf32>
    %41 = vector.broadcast %0 : vector<1x192xf32> to vector<16x192xf32>
    %42 = arith.mulf %40, %41 : vector<16x192xf32>
    %43 = vector.broadcast %1 : vector<1x192xf32> to vector<16x192xf32>
    %44 = arith.addf %42, %43 : vector<16x192xf32>
    %c1_26 = arith.constant 1 : index
    %c0_27 = arith.constant 0 : index
    %c0_28 = arith.constant 0 : index
    %45 = vector.load %arg4[%c1_26, %c0_27, %c0_28] : memref<2x16x192xf32, #tpu.memory_space<vmem>>, vector<1x16x192xf32>
    %46 = vector.shape_cast %45 : vector<1x16x192xf32> to vector<16x192xf32>
    %47 = vector.shape_cast %44 : vector<16x192xf32> to vector<1x16x192xf32>
    tpu.vector_store %arg4[%c1_26, %c0_27, %c0_28], %47 {strides = array<i32>} : memref<2x16x192xf32, #tpu.memory_space<vmem>>, vector<1x16x192xf32>,
    return
  }
}

module attributes {stable_mosaic.version = 11 : i64} {
  func.func @_mm_affine_kernel(%arg0: memref<512x12xf32, #tpu.memory_space<vmem>>, %arg1: memref<12x8xbf16, #tpu.memory_space<vmem>>, %arg2: memref<1x8xf32, #tpu.memory_space<vmem>>, %arg3: memref<1x8xf32, #tpu.memory_space<vmem>>, %arg4: memref<512x8xf32, #tpu.memory_space<vmem>>) attributes {dimension_semantics = [], scalar_prefetch = 0 : i64, scratch_operands = 0 : i64, tpu.core_type = #tpu.core_type<tc>} {
    %c0 = arith.constant 0 : index
    %c0_0 = arith.constant 0 : index
    %0 = vector.load %arg0[%c0, %c0_0] : memref<512x12xf32, #tpu.memory_space<vmem>>, vector<512x12xf32>
    %cst = arith.constant 0.000000e+00 : f32
    %1 = vector.broadcast %cst : f32 to vector<512x12xf32>
    %2 = arith.maximumf %0, %1 : vector<512x12xf32>
    %3 = arith.truncf %2 : vector<512x12xf32> to vector<512x12xbf16>
    %c0_1 = arith.constant 0 : index
    %c0_2 = arith.constant 0 : index
    %4 = vector.load %arg1[%c0_1, %c0_2] : memref<12x8xbf16, #tpu.memory_space<vmem>>, vector<12x8xbf16>
    %cst_3 = arith.constant dense<0.000000e+00> : vector<512x8xf32>
    %5 = tpu.matmul %3, %4, %cst_3 {dimension_numbers = #tpu.dot_dimension_numbers<[1], [0], [0], [1], [0, 0, 1, 1], [], []>} : vector<512x12xbf16>, vector<12x8xbf16>, vector<512x8xf32> -> vector<512x8xf32>
    %c0_4 = arith.constant 0 : index
    %c0_5 = arith.constant 0 : index
    %6 = vector.load %arg2[%c0_4, %c0_5] : memref<1x8xf32, #tpu.memory_space<vmem>>, vector<1x8xf32>
    %7 = vector.broadcast %6 : vector<1x8xf32> to vector<512x8xf32>
    %8 = arith.mulf %5, %7 : vector<512x8xf32>
    %c0_6 = arith.constant 0 : index
    %c0_7 = arith.constant 0 : index
    %9 = vector.load %arg3[%c0_6, %c0_7] : memref<1x8xf32, #tpu.memory_space<vmem>>, vector<1x8xf32>
    %10 = vector.broadcast %9 : vector<1x8xf32> to vector<512x8xf32>
    %11 = arith.addf %8, %10 : vector<512x8xf32>
    %c0_8 = arith.constant 0 : index
    %c0_9 = arith.constant 0 : index
    %12 = vector.load %arg4[%c0_8, %c0_9] : memref<512x8xf32, #tpu.memory_space<vmem>>, vector<512x8xf32>
    tpu.vector_store %arg4[%c0_8, %c0_9], %11 {strides = array<i32>} : memref<512x8xf32, #tpu.memory_space<vmem>>, vector<512x8xf32>,
    return
  }
}

module attributes {stable_mosaic.version = 11 : i64} {
  func.func @_conv3x3_kernel(%arg0: memref<2x18x64xf32, #tpu.memory_space<vmem>>, %arg1: memref<3x64x64xbf16, #tpu.memory_space<vmem>>, %arg2: memref<1x64xf32, #tpu.memory_space<vmem>>, %arg3: memref<1x64xf32, #tpu.memory_space<vmem>>, %arg4: memref<2x16x64xf32, #tpu.memory_space<vmem>>) attributes {dimension_semantics = [], scalar_prefetch = 0 : i64, scratch_operands = 0 : i64, tpu.core_type = #tpu.core_type<tc>} {
    %c0 = arith.constant 0 : index
    %c0_0 = arith.constant 0 : index
    %0 = vector.load %arg2[%c0, %c0_0] : memref<1x64xf32, #tpu.memory_space<vmem>>, vector<1x64xf32>
    %c0_1 = arith.constant 0 : index
    %c0_2 = arith.constant 0 : index
    %1 = vector.load %arg3[%c0_1, %c0_2] : memref<1x64xf32, #tpu.memory_space<vmem>>, vector<1x64xf32>
    %c0_3 = arith.constant 0 : index
    %c0_4 = arith.constant 0 : index
    %c0_5 = arith.constant 0 : index
    %2 = vector.load %arg1[%c0_3, %c0_4, %c0_5] : memref<3x64x64xbf16, #tpu.memory_space<vmem>>, vector<1x64x64xbf16>
    %3 = vector.shape_cast %2 : vector<1x64x64xbf16> to vector<64x64xbf16>
    %c1 = arith.constant 1 : index
    %c0_6 = arith.constant 0 : index
    %c0_7 = arith.constant 0 : index
    %4 = vector.load %arg1[%c1, %c0_6, %c0_7] : memref<3x64x64xbf16, #tpu.memory_space<vmem>>, vector<1x64x64xbf16>
    %5 = vector.shape_cast %4 : vector<1x64x64xbf16> to vector<64x64xbf16>
    %c2 = arith.constant 2 : index
    %c0_8 = arith.constant 0 : index
    %c0_9 = arith.constant 0 : index
    %6 = vector.load %arg1[%c2, %c0_8, %c0_9] : memref<3x64x64xbf16, #tpu.memory_space<vmem>>, vector<1x64x64xbf16>
    %7 = vector.shape_cast %6 : vector<1x64x64xbf16> to vector<64x64xbf16>
    %c0_10 = arith.constant 0 : index
    %c0_11 = arith.constant 0 : index
    %c0_12 = arith.constant 0 : index
    %8 = vector.load %arg0[%c0_10, %c0_11, %c0_12] : memref<2x18x64xf32, #tpu.memory_space<vmem>>, vector<1x18x64xf32>
    %9 = vector.shape_cast %8 : vector<1x18x64xf32> to vector<18x64xf32>
    %cst = arith.constant 0.000000e+00 : f32
    %10 = vector.broadcast %cst : f32 to vector<18x64xf32>
    %11 = arith.maximumf %9, %10 : vector<18x64xf32>
    %12 = arith.truncf %11 : vector<18x64xf32> to vector<18x64xbf16>
    %cst_13 = arith.constant 0.000000e+00 : f32
    %13 = vector.broadcast %cst_13 : f32 to vector<16x64xf32>
    %14 = vector.extract_strided_slice %12 {offsets = [0, 0], sizes = [16, 64], strides = [1, 1]} : vector<18x64xbf16> to vector<16x64xbf16>
    %cst_14 = arith.constant dense<0.000000e+00> : vector<16x64xf32>
    %15 = tpu.matmul %14, %3, %cst_14 {dimension_numbers = #tpu.dot_dimension_numbers<[1], [0], [0], [1], [0, 0, 1, 1], [], []>} : vector<16x64xbf16>, vector<64x64xbf16>, vector<16x64xf32> -> vector<16x64xf32>
    %16 = arith.addf %13, %15 : vector<16x64xf32>
    %17 = vector.extract_strided_slice %12 {offsets = [1, 0], sizes = [16, 64], strides = [1, 1]} : vector<18x64xbf16> to vector<16x64xbf16>
    %cst_15 = arith.constant dense<0.000000e+00> : vector<16x64xf32>
    %18 = tpu.matmul %17, %5, %cst_15 {dimension_numbers = #tpu.dot_dimension_numbers<[1], [0], [0], [1], [0, 0, 1, 1], [], []>} : vector<16x64xbf16>, vector<64x64xbf16>, vector<16x64xf32> -> vector<16x64xf32>
    %19 = arith.addf %16, %18 : vector<16x64xf32>
    %20 = vector.extract_strided_slice %12 {offsets = [2, 0], sizes = [16, 64], strides = [1, 1]} : vector<18x64xbf16> to vector<16x64xbf16>
    %cst_16 = arith.constant dense<0.000000e+00> : vector<16x64xf32>
    %21 = tpu.matmul %20, %7, %cst_16 {dimension_numbers = #tpu.dot_dimension_numbers<[1], [0], [0], [1], [0, 0, 1, 1], [], []>} : vector<16x64xbf16>, vector<64x64xbf16>, vector<16x64xf32> -> vector<16x64xf32>
    %22 = arith.addf %19, %21 : vector<16x64xf32>
    %23 = vector.broadcast %0 : vector<1x64xf32> to vector<16x64xf32>
    %24 = arith.mulf %22, %23 : vector<16x64xf32>
    %25 = vector.broadcast %1 : vector<1x64xf32> to vector<16x64xf32>
    %26 = arith.addf %24, %25 : vector<16x64xf32>
    %c0_17 = arith.constant 0 : index
    %c0_18 = arith.constant 0 : index
    %c0_19 = arith.constant 0 : index
    %27 = vector.load %arg4[%c0_17, %c0_18, %c0_19] : memref<2x16x64xf32, #tpu.memory_space<vmem>>, vector<1x16x64xf32>
    %28 = vector.shape_cast %27 : vector<1x16x64xf32> to vector<16x64xf32>
    %29 = vector.shape_cast %26 : vector<16x64xf32> to vector<1x16x64xf32>
    tpu.vector_store %arg4[%c0_17, %c0_18, %c0_19], %29 {strides = array<i32>} : memref<2x16x64xf32, #tpu.memory_space<vmem>>, vector<1x16x64xf32>,
    %c1_20 = arith.constant 1 : index
    %c0_21 = arith.constant 0 : index
    %c0_22 = arith.constant 0 : index
    %30 = vector.load %arg0[%c1_20, %c0_21, %c0_22] : memref<2x18x64xf32, #tpu.memory_space<vmem>>, vector<1x18x64xf32>
    %31 = vector.shape_cast %30 : vector<1x18x64xf32> to vector<18x64xf32>
    %cst_23 = arith.constant 0.000000e+00 : f32
    %32 = vector.broadcast %cst_23 : f32 to vector<18x64xf32>
    %33 = arith.maximumf %31, %32 : vector<18x64xf32>
    %34 = arith.truncf %33 : vector<18x64xf32> to vector<18x64xbf16>
    %cst_24 = arith.constant 0.000000e+00 : f32
    %35 = vector.broadcast %cst_24 : f32 to vector<16x64xf32>
    %36 = vector.extract_strided_slice %34 {offsets = [0, 0], sizes = [16, 64], strides = [1, 1]} : vector<18x64xbf16> to vector<16x64xbf16>
    %cst_25 = arith.constant dense<0.000000e+00> : vector<16x64xf32>
    %37 = tpu.matmul %36, %3, %cst_25 {dimension_numbers = #tpu.dot_dimension_numbers<[1], [0], [0], [1], [0, 0, 1, 1], [], []>} : vector<16x64xbf16>, vector<64x64xbf16>, vector<16x64xf32> -> vector<16x64xf32>
    %38 = arith.addf %35, %37 : vector<16x64xf32>
    %39 = vector.extract_strided_slice %34 {offsets = [1, 0], sizes = [16, 64], strides = [1, 1]} : vector<18x64xbf16> to vector<16x64xbf16>
    %cst_26 = arith.constant dense<0.000000e+00> : vector<16x64xf32>
    %40 = tpu.matmul %39, %5, %cst_26 {dimension_numbers = #tpu.dot_dimension_numbers<[1], [0], [0], [1], [0, 0, 1, 1], [], []>} : vector<16x64xbf16>, vector<64x64xbf16>, vector<16x64xf32> -> vector<16x64xf32>
    %41 = arith.addf %38, %40 : vector<16x64xf32>
    %42 = vector.extract_strided_slice %34 {offsets = [2, 0], sizes = [16, 64], strides = [1, 1]} : vector<18x64xbf16> to vector<16x64xbf16>
    %cst_27 = arith.constant dense<0.000000e+00> : vector<16x64xf32>
    %43 = tpu.matmul %42, %7, %cst_27 {dimension_numbers = #tpu.dot_dimension_numbers<[1], [0], [0], [1], [0, 0, 1, 1], [], []>} : vector<16x64xbf16>, vector<64x64xbf16>, vector<16x64xf32> -> vector<16x64xf32>
    %44 = arith.addf %41, %43 : vector<16x64xf32>
    %45 = vector.broadcast %0 : vector<1x64xf32> to vector<16x64xf32>
    %46 = arith.mulf %44, %45 : vector<16x64xf32>
    %47 = vector.broadcast %1 : vector<1x64xf32> to vector<16x64xf32>
    %48 = arith.addf %46, %47 : vector<16x64xf32>
    %c1_28 = arith.constant 1 : index
    %c0_29 = arith.constant 0 : index
    %c0_30 = arith.constant 0 : index
    %49 = vector.load %arg4[%c1_28, %c0_29, %c0_30] : memref<2x16x64xf32, #tpu.memory_space<vmem>>, vector<1x16x64xf32>
    %50 = vector.shape_cast %49 : vector<1x16x64xf32> to vector<16x64xf32>
    %51 = vector.shape_cast %48 : vector<16x64xf32> to vector<1x16x64xf32>
    tpu.vector_store %arg4[%c1_28, %c0_29, %c0_30], %51 {strides = array<i32>} : memref<2x16x64xf32, #tpu.memory_space<vmem>>, vector<1x16x64xf32>,
    return
  }
}

module attributes {stable_mosaic.version = 11 : i64} {
  func.func @_conv3x3_kernel(%arg0: memref<2x18x64xf32, #tpu.memory_space<vmem>>, %arg1: memref<3x64x64xbf16, #tpu.memory_space<vmem>>, %arg2: memref<1x64xf32, #tpu.memory_space<vmem>>, %arg3: memref<1x64xf32, #tpu.memory_space<vmem>>, %arg4: memref<2x16x64xf32, #tpu.memory_space<vmem>>, %arg5: memref<2x16x64xf32, #tpu.memory_space<vmem>>) attributes {dimension_semantics = [], scalar_prefetch = 0 : i64, scratch_operands = 0 : i64, tpu.core_type = #tpu.core_type<tc>} {
    %c0 = arith.constant 0 : index
    %c0_0 = arith.constant 0 : index
    %0 = vector.load %arg2[%c0, %c0_0] : memref<1x64xf32, #tpu.memory_space<vmem>>, vector<1x64xf32>
    %c0_1 = arith.constant 0 : index
    %c0_2 = arith.constant 0 : index
    %1 = vector.load %arg3[%c0_1, %c0_2] : memref<1x64xf32, #tpu.memory_space<vmem>>, vector<1x64xf32>
    %c0_3 = arith.constant 0 : index
    %c0_4 = arith.constant 0 : index
    %c0_5 = arith.constant 0 : index
    %2 = vector.load %arg1[%c0_3, %c0_4, %c0_5] : memref<3x64x64xbf16, #tpu.memory_space<vmem>>, vector<1x64x64xbf16>
    %3 = vector.shape_cast %2 : vector<1x64x64xbf16> to vector<64x64xbf16>
    %c1 = arith.constant 1 : index
    %c0_6 = arith.constant 0 : index
    %c0_7 = arith.constant 0 : index
    %4 = vector.load %arg1[%c1, %c0_6, %c0_7] : memref<3x64x64xbf16, #tpu.memory_space<vmem>>, vector<1x64x64xbf16>
    %5 = vector.shape_cast %4 : vector<1x64x64xbf16> to vector<64x64xbf16>
    %c2 = arith.constant 2 : index
    %c0_8 = arith.constant 0 : index
    %c0_9 = arith.constant 0 : index
    %6 = vector.load %arg1[%c2, %c0_8, %c0_9] : memref<3x64x64xbf16, #tpu.memory_space<vmem>>, vector<1x64x64xbf16>
    %7 = vector.shape_cast %6 : vector<1x64x64xbf16> to vector<64x64xbf16>
    %c0_10 = arith.constant 0 : index
    %c0_11 = arith.constant 0 : index
    %c0_12 = arith.constant 0 : index
    %8 = vector.load %arg0[%c0_10, %c0_11, %c0_12] : memref<2x18x64xf32, #tpu.memory_space<vmem>>, vector<1x18x64xf32>
    %9 = vector.shape_cast %8 : vector<1x18x64xf32> to vector<18x64xf32>
    %cst = arith.constant 0.000000e+00 : f32
    %10 = vector.broadcast %cst : f32 to vector<18x64xf32>
    %11 = arith.maximumf %9, %10 : vector<18x64xf32>
    %12 = arith.truncf %11 : vector<18x64xf32> to vector<18x64xbf16>
    %cst_13 = arith.constant 0.000000e+00 : f32
    %13 = vector.broadcast %cst_13 : f32 to vector<16x64xf32>
    %14 = vector.extract_strided_slice %12 {offsets = [0, 0], sizes = [16, 64], strides = [1, 1]} : vector<18x64xbf16> to vector<16x64xbf16>
    %cst_14 = arith.constant dense<0.000000e+00> : vector<16x64xf32>
    %15 = tpu.matmul %14, %3, %cst_14 {dimension_numbers = #tpu.dot_dimension_numbers<[1], [0], [0], [1], [0, 0, 1, 1], [], []>} : vector<16x64xbf16>, vector<64x64xbf16>, vector<16x64xf32> -> vector<16x64xf32>
    %16 = arith.addf %13, %15 : vector<16x64xf32>
    %17 = vector.extract_strided_slice %12 {offsets = [1, 0], sizes = [16, 64], strides = [1, 1]} : vector<18x64xbf16> to vector<16x64xbf16>
    %cst_15 = arith.constant dense<0.000000e+00> : vector<16x64xf32>
    %18 = tpu.matmul %17, %5, %cst_15 {dimension_numbers = #tpu.dot_dimension_numbers<[1], [0], [0], [1], [0, 0, 1, 1], [], []>} : vector<16x64xbf16>, vector<64x64xbf16>, vector<16x64xf32> -> vector<16x64xf32>
    %19 = arith.addf %16, %18 : vector<16x64xf32>
    %20 = vector.extract_strided_slice %12 {offsets = [2, 0], sizes = [16, 64], strides = [1, 1]} : vector<18x64xbf16> to vector<16x64xbf16>
    %cst_16 = arith.constant dense<0.000000e+00> : vector<16x64xf32>
    %21 = tpu.matmul %20, %7, %cst_16 {dimension_numbers = #tpu.dot_dimension_numbers<[1], [0], [0], [1], [0, 0, 1, 1], [], []>} : vector<16x64xbf16>, vector<64x64xbf16>, vector<16x64xf32> -> vector<16x64xf32>
    %22 = arith.addf %19, %21 : vector<16x64xf32>
    %23 = vector.broadcast %0 : vector<1x64xf32> to vector<16x64xf32>
    %24 = arith.mulf %22, %23 : vector<16x64xf32>
    %25 = vector.broadcast %1 : vector<1x64xf32> to vector<16x64xf32>
    %26 = arith.addf %24, %25 : vector<16x64xf32>
    %c0_17 = arith.constant 0 : index
    %c0_18 = arith.constant 0 : index
    %c0_19 = arith.constant 0 : index
    %27 = vector.load %arg4[%c0_17, %c0_18, %c0_19] : memref<2x16x64xf32, #tpu.memory_space<vmem>>, vector<1x16x64xf32>
    %28 = vector.shape_cast %27 : vector<1x16x64xf32> to vector<16x64xf32>
    %29 = arith.addf %26, %28 : vector<16x64xf32>
    %c0_20 = arith.constant 0 : index
    %c0_21 = arith.constant 0 : index
    %c0_22 = arith.constant 0 : index
    %30 = vector.load %arg5[%c0_20, %c0_21, %c0_22] : memref<2x16x64xf32, #tpu.memory_space<vmem>>, vector<1x16x64xf32>
    %31 = vector.shape_cast %30 : vector<1x16x64xf32> to vector<16x64xf32>
    %32 = vector.shape_cast %29 : vector<16x64xf32> to vector<1x16x64xf32>
    tpu.vector_store %arg5[%c0_20, %c0_21, %c0_22], %32 {strides = array<i32>} : memref<2x16x64xf32, #tpu.memory_space<vmem>>, vector<1x16x64xf32>,
    %c1_23 = arith.constant 1 : index
    %c0_24 = arith.constant 0 : index
    %c0_25 = arith.constant 0 : index
    %33 = vector.load %arg0[%c1_23, %c0_24, %c0_25] : memref<2x18x64xf32, #tpu.memory_space<vmem>>, vector<1x18x64xf32>
    %34 = vector.shape_cast %33 : vector<1x18x64xf32> to vector<18x64xf32>
    %cst_26 = arith.constant 0.000000e+00 : f32
    %35 = vector.broadcast %cst_26 : f32 to vector<18x64xf32>
    %36 = arith.maximumf %34, %35 : vector<18x64xf32>
    %37 = arith.truncf %36 : vector<18x64xf32> to vector<18x64xbf16>
    %cst_27 = arith.constant 0.000000e+00 : f32
    %38 = vector.broadcast %cst_27 : f32 to vector<16x64xf32>
    %39 = vector.extract_strided_slice %37 {offsets = [0, 0], sizes = [16, 64], strides = [1, 1]} : vector<18x64xbf16> to vector<16x64xbf16>
    %cst_28 = arith.constant dense<0.000000e+00> : vector<16x64xf32>
    %40 = tpu.matmul %39, %3, %cst_28 {dimension_numbers = #tpu.dot_dimension_numbers<[1], [0], [0], [1], [0, 0, 1, 1], [], []>} : vector<16x64xbf16>, vector<64x64xbf16>, vector<16x64xf32> -> vector<16x64xf32>
    %41 = arith.addf %38, %40 : vector<16x64xf32>
    %42 = vector.extract_strided_slice %37 {offsets = [1, 0], sizes = [16, 64], strides = [1, 1]} : vector<18x64xbf16> to vector<16x64xbf16>
    %cst_29 = arith.constant dense<0.000000e+00> : vector<16x64xf32>
    %43 = tpu.matmul %42, %5, %cst_29 {dimension_numbers = #tpu.dot_dimension_numbers<[1], [0], [0], [1], [0, 0, 1, 1], [], []>} : vector<16x64xbf16>, vector<64x64xbf16>, vector<16x64xf32> -> vector<16x64xf32>
    %44 = arith.addf %41, %43 : vector<16x64xf32>
    %45 = vector.extract_strided_slice %37 {offsets = [2, 0], sizes = [16, 64], strides = [1, 1]} : vector<18x64xbf16> to vector<16x64xbf16>
    %cst_30 = arith.constant dense<0.000000e+00> : vector<16x64xf32>
    %46 = tpu.matmul %45, %7, %cst_30 {dimension_numbers = #tpu.dot_dimension_numbers<[1], [0], [0], [1], [0, 0, 1, 1], [], []>} : vector<16x64xbf16>, vector<64x64xbf16>, vector<16x64xf32> -> vector<16x64xf32>
    %47 = arith.addf %44, %46 : vector<16x64xf32>
    %48 = vector.broadcast %0 : vector<1x64xf32> to vector<16x64xf32>
    %49 = arith.mulf %47, %48 : vector<16x64xf32>
    %50 = vector.broadcast %1 : vector<1x64xf32> to vector<16x64xf32>
    %51 = arith.addf %49, %50 : vector<16x64xf32>
    %c1_31 = arith.constant 1 : index
    %c0_32 = arith.constant 0 : index
    %c0_33 = arith.constant 0 : index
    %52 = vector.load %arg4[%c1_31, %c0_32, %c0_33] : memref<2x16x64xf32, #tpu.memory_space<vmem>>, vector<1x16x64xf32>
    %53 = vector.shape_cast %52 : vector<1x16x64xf32> to vector<16x64xf32>
    %54 = arith.addf %51, %53 : vector<16x64xf32>
    %c1_34 = arith.constant 1 : index
    %c0_35 = arith.constant 0 : index
    %c0_36 = arith.constant 0 : index
    %55 = vector.load %arg5[%c1_34, %c0_35, %c0_36] : memref<2x16x64xf32, #tpu.memory_space<vmem>>, vector<1x16x64xf32>
    %56 = vector.shape_cast %55 : vector<1x16x64xf32> to vector<16x64xf32>
    %57 = vector.shape_cast %54 : vector<16x64xf32> to vector<1x16x64xf32>
    tpu.vector_store %arg5[%c1_34, %c0_35, %c0_36], %57 {strides = array<i32>} : memref<2x16x64xf32, #tpu.memory_space<vmem>>, vector<1x16x64xf32>,
    return
  }
}

module attributes {stable_mosaic.version = 11 : i64} {
  func.func @_mm_affine_kernel(%arg0: memref<512x28xf32, #tpu.memory_space<vmem>>, %arg1: memref<28x16xbf16, #tpu.memory_space<vmem>>, %arg2: memref<1x16xf32, #tpu.memory_space<vmem>>, %arg3: memref<1x16xf32, #tpu.memory_space<vmem>>, %arg4: memref<512x16xf32, #tpu.memory_space<vmem>>) attributes {dimension_semantics = [], scalar_prefetch = 0 : i64, scratch_operands = 0 : i64, tpu.core_type = #tpu.core_type<tc>} {
    %c0 = arith.constant 0 : index
    %c0_0 = arith.constant 0 : index
    %0 = vector.load %arg0[%c0, %c0_0] : memref<512x28xf32, #tpu.memory_space<vmem>>, vector<512x28xf32>
    %cst = arith.constant 0.000000e+00 : f32
    %1 = vector.broadcast %cst : f32 to vector<512x28xf32>
    %2 = arith.maximumf %0, %1 : vector<512x28xf32>
    %3 = arith.truncf %2 : vector<512x28xf32> to vector<512x28xbf16>
    %c0_1 = arith.constant 0 : index
    %c0_2 = arith.constant 0 : index
    %4 = vector.load %arg1[%c0_1, %c0_2] : memref<28x16xbf16, #tpu.memory_space<vmem>>, vector<28x16xbf16>
    %cst_3 = arith.constant dense<0.000000e+00> : vector<512x16xf32>
    %5 = tpu.matmul %3, %4, %cst_3 {dimension_numbers = #tpu.dot_dimension_numbers<[1], [0], [0], [1], [0, 0, 1, 1], [], []>} : vector<512x28xbf16>, vector<28x16xbf16>, vector<512x16xf32> -> vector<512x16xf32>
    %c0_4 = arith.constant 0 : index
    %c0_5 = arith.constant 0 : index
    %6 = vector.load %arg2[%c0_4, %c0_5] : memref<1x16xf32, #tpu.memory_space<vmem>>, vector<1x16xf32>
    %7 = vector.broadcast %6 : vector<1x16xf32> to vector<512x16xf32>
    %8 = arith.mulf %5, %7 : vector<512x16xf32>
    %c0_6 = arith.constant 0 : index
    %c0_7 = arith.constant 0 : index
    %9 = vector.load %arg3[%c0_6, %c0_7] : memref<1x16xf32, #tpu.memory_space<vmem>>, vector<1x16xf32>
    %10 = vector.broadcast %9 : vector<1x16xf32> to vector<512x16xf32>
    %11 = arith.addf %8, %10 : vector<512x16xf32>
    %c0_8 = arith.constant 0 : index
    %c0_9 = arith.constant 0 : index
    %12 = vector.load %arg4[%c0_8, %c0_9] : memref<512x16xf32, #tpu.memory_space<vmem>>, vector<512x16xf32>
    tpu.vector_store %arg4[%c0_8, %c0_9], %11 {strides = array<i32>} : memref<512x16xf32, #tpu.memory_space<vmem>>, vector<512x16xf32>,
    return
  }
}

module attributes {stable_mosaic.version = 11 : i64} {
  func.func @_mm_affine_kernel(%arg0: memref<128x16xf32, #tpu.memory_space<vmem>>, %arg1: memref<16x8xbf16, #tpu.memory_space<vmem>>, %arg2: memref<1x8xf32, #tpu.memory_space<vmem>>, %arg3: memref<1x8xf32, #tpu.memory_space<vmem>>, %arg4: memref<128x8xf32, #tpu.memory_space<vmem>>) attributes {dimension_semantics = [], scalar_prefetch = 0 : i64, scratch_operands = 0 : i64, tpu.core_type = #tpu.core_type<tc>} {
    %c0 = arith.constant 0 : index
    %c0_0 = arith.constant 0 : index
    %0 = vector.load %arg0[%c0, %c0_0] : memref<128x16xf32, #tpu.memory_space<vmem>>, vector<128x16xf32>
    %cst = arith.constant 0.000000e+00 : f32
    %1 = vector.broadcast %cst : f32 to vector<128x16xf32>
    %2 = arith.maximumf %0, %1 : vector<128x16xf32>
    %3 = arith.truncf %2 : vector<128x16xf32> to vector<128x16xbf16>
    %c0_1 = arith.constant 0 : index
    %c0_2 = arith.constant 0 : index
    %4 = vector.load %arg1[%c0_1, %c0_2] : memref<16x8xbf16, #tpu.memory_space<vmem>>, vector<16x8xbf16>
    %cst_3 = arith.constant dense<0.000000e+00> : vector<128x8xf32>
    %5 = tpu.matmul %3, %4, %cst_3 {dimension_numbers = #tpu.dot_dimension_numbers<[1], [0], [0], [1], [0, 0, 1, 1], [], []>} : vector<128x16xbf16>, vector<16x8xbf16>, vector<128x8xf32> -> vector<128x8xf32>
    %c0_4 = arith.constant 0 : index
    %c0_5 = arith.constant 0 : index
    %6 = vector.load %arg2[%c0_4, %c0_5] : memref<1x8xf32, #tpu.memory_space<vmem>>, vector<1x8xf32>
    %7 = vector.broadcast %6 : vector<1x8xf32> to vector<128x8xf32>
    %8 = arith.mulf %5, %7 : vector<128x8xf32>
    %c0_6 = arith.constant 0 : index
    %c0_7 = arith.constant 0 : index
    %9 = vector.load %arg3[%c0_6, %c0_7] : memref<1x8xf32, #tpu.memory_space<vmem>>, vector<1x8xf32>
    %10 = vector.broadcast %9 : vector<1x8xf32> to vector<128x8xf32>
    %11 = arith.addf %8, %10 : vector<128x8xf32>
    %c0_8 = arith.constant 0 : index
    %c0_9 = arith.constant 0 : index
    %12 = vector.load %arg4[%c0_8, %c0_9] : memref<128x8xf32, #tpu.memory_space<vmem>>, vector<128x8xf32>
    tpu.vector_store %arg4[%c0_8, %c0_9], %11 {strides = array<i32>} : memref<128x8xf32, #tpu.memory_space<vmem>>, vector<128x8xf32>,
    return
  }
}

module attributes {stable_mosaic.version = 11 : i64} {
  func.func @_mm_affine_kernel(%arg0: memref<128x16xf32, #tpu.memory_space<vmem>>, %arg1: memref<16x8xbf16, #tpu.memory_space<vmem>>, %arg2: memref<1x8xf32, #tpu.memory_space<vmem>>, %arg3: memref<1x8xf32, #tpu.memory_space<vmem>>, %arg4: memref<128x8xf32, #tpu.memory_space<vmem>>, %arg5: memref<128x8xf32, #tpu.memory_space<vmem>>) attributes {dimension_semantics = [], scalar_prefetch = 0 : i64, scratch_operands = 0 : i64, tpu.core_type = #tpu.core_type<tc>} {
    %c0 = arith.constant 0 : index
    %c0_0 = arith.constant 0 : index
    %0 = vector.load %arg0[%c0, %c0_0] : memref<128x16xf32, #tpu.memory_space<vmem>>, vector<128x16xf32>
    %cst = arith.constant 0.000000e+00 : f32
    %1 = vector.broadcast %cst : f32 to vector<128x16xf32>
    %2 = arith.maximumf %0, %1 : vector<128x16xf32>
    %3 = arith.truncf %2 : vector<128x16xf32> to vector<128x16xbf16>
    %c0_1 = arith.constant 0 : index
    %c0_2 = arith.constant 0 : index
    %4 = vector.load %arg1[%c0_1, %c0_2] : memref<16x8xbf16, #tpu.memory_space<vmem>>, vector<16x8xbf16>
    %cst_3 = arith.constant dense<0.000000e+00> : vector<128x8xf32>
    %5 = tpu.matmul %3, %4, %cst_3 {dimension_numbers = #tpu.dot_dimension_numbers<[1], [0], [0], [1], [0, 0, 1, 1], [], []>} : vector<128x16xbf16>, vector<16x8xbf16>, vector<128x8xf32> -> vector<128x8xf32>
    %c0_4 = arith.constant 0 : index
    %c0_5 = arith.constant 0 : index
    %6 = vector.load %arg2[%c0_4, %c0_5] : memref<1x8xf32, #tpu.memory_space<vmem>>, vector<1x8xf32>
    %7 = vector.broadcast %6 : vector<1x8xf32> to vector<128x8xf32>
    %8 = arith.mulf %5, %7 : vector<128x8xf32>
    %c0_6 = arith.constant 0 : index
    %c0_7 = arith.constant 0 : index
    %9 = vector.load %arg3[%c0_6, %c0_7] : memref<1x8xf32, #tpu.memory_space<vmem>>, vector<1x8xf32>
    %10 = vector.broadcast %9 : vector<1x8xf32> to vector<128x8xf32>
    %11 = arith.addf %8, %10 : vector<128x8xf32>
    %c0_8 = arith.constant 0 : index
    %c0_9 = arith.constant 0 : index
    %12 = vector.load %arg4[%c0_8, %c0_9] : memref<128x8xf32, #tpu.memory_space<vmem>>, vector<128x8xf32>
    %13 = arith.addf %11, %12 : vector<128x8xf32>
    %c0_10 = arith.constant 0 : index
    %c0_11 = arith.constant 0 : index
    %14 = vector.load %arg5[%c0_10, %c0_11] : memref<128x8xf32, #tpu.memory_space<vmem>>, vector<128x8xf32>
    tpu.vector_store %arg5[%c0_10, %c0_11], %13 {strides = array<i32>} : memref<128x8xf32, #tpu.memory_space<vmem>>, vector<128x8xf32>,
    return
  }
}

module attributes {stable_mosaic.version = 11 : i64} {
  func.func @_gap_linear_kernel(%arg0: memref<2x64x32xf32, #tpu.memory_space<vmem>>, %arg1: memref<32x10xbf16, #tpu.memory_space<vmem>>, %arg2: memref<1x10xf32, #tpu.memory_space<vmem>>, %arg3: memref<2x10xf32, #tpu.memory_space<vmem>>) attributes {dimension_semantics = [], scalar_prefetch = 0 : i64, scratch_operands = 0 : i64, tpu.core_type = #tpu.core_type<tc>} {
    %c0 = arith.constant 0 : index
    %c0_0 = arith.constant 0 : index
    %c0_1 = arith.constant 0 : index
    %0 = vector.load %arg0[%c0, %c0_0, %c0_1] : memref<2x64x32xf32, #tpu.memory_space<vmem>>, vector<2x64x32xf32>
    %cst = arith.constant dense<0.000000e+00> : vector<2x32xf32>
    %1 = vector.multi_reduction <add>, %0, %cst [1] : vector<2x64x32xf32> to vector<2x32xf32>
    %cst_2 = arith.constant 6.400000e+01 : f32
    %2 = vector.broadcast %cst_2 : f32 to vector<2x32xf32>
    %3 = arith.divf %1, %2 : vector<2x32xf32>
    %4 = arith.truncf %3 : vector<2x32xf32> to vector<2x32xbf16>
    %c0_3 = arith.constant 0 : index
    %c0_4 = arith.constant 0 : index
    %5 = vector.load %arg1[%c0_3, %c0_4] : memref<32x10xbf16, #tpu.memory_space<vmem>>, vector<32x10xbf16>
    %cst_5 = arith.constant dense<0.000000e+00> : vector<2x10xf32>
    %6 = tpu.matmul %4, %5, %cst_5 {dimension_numbers = #tpu.dot_dimension_numbers<[1], [0], [0], [1], [0, 0, 1, 1], [], []>} : vector<2x32xbf16>, vector<32x10xbf16>, vector<2x10xf32> -> vector<2x10xf32>
    %c0_6 = arith.constant 0 : index
    %c0_7 = arith.constant 0 : index
    %7 = vector.load %arg2[%c0_6, %c0_7] : memref<1x10xf32, #tpu.memory_space<vmem>>, vector<1x10xf32>
    %8 = vector.broadcast %7 : vector<1x10xf32> to vector<2x10xf32>
    %9 = arith.addf %6, %8 : vector<2x10xf32>
    %c0_8 = arith.constant 0 : index
    %c0_9 = arith.constant 0 : index
    %10 = vector.load %arg3[%c0_8, %c0_9] : memref<2x10xf32, #tpu.memory_space<vmem>>, vector<2x10xf32>
    tpu.vector_store %arg3[%c0_8, %c0_9], %9 {strides = array<i32>} : memref<2x10xf32, #tpu.memory_space<vmem>>, vector<2x10xf32>,
    return
  }
}

</mosaic_0001>

<bundles_post_ra>
// kernel: _lambda_.11
= control target key start
LH: loop header
LB: loop body
LE: loop exit
PB: predicated region body
PF: predicated region fallthrough
CT: control target
= control target key end

     0   :  { %v583_v1 = vmov 0   ;;  %vm88_vm0 = vcmask 392192   ;;  %vm45_vm1 = vsmask.f32 7424  ;;  %vm212_vm2 = vcmask 1046528   ;;  %s755_s1 = inlined_call_operand.vmem [shape: bf16[3,48,192], index: 1, kind: input, shape index: {}]   ;;  %s756_s0 = inlined_call_operand.vmem [shape: f32[2,18,48], index: 0, kind: input, shape index: {}]   ;;  %s757_s2 = inlined_call_operand.vmem [shape: f32[1,192], index: 2, kind: input, shape index: {}]   ;;  %s758_s3 = inlined_call_operand.vmem [shape: f32[1,192], index: 3, kind: input, shape index: {}]   ;;  %s759_s4 = inlined_call_operand.vmem [shape: f32[2,16,192], index: 4, kind: output, shape index: {}]  }
   0x1   :  { %v556_v0 = vld [vmem:[%s755_s1 + $0x54] ss:$8 sps:$4 sm:$0xff]   ;;  %124 = vmatprep.mubr.bf16.mxu0 %v583_v1  ;;  %199 = vmatprep.mubr.bf16.mxu1 %v583_v1  ;;  %v617_v2 = vld [vmem:[%s755_s1 + $0x24] ss:$8 sps:$4 sm:$0xff]   ;;  %v560_v3 = vld [vmem:[%s755_s1 + $0x50] ss:$8 sps:$4 sm:$0xff]   ;;  %v297_v51 = vlaneseq }
   0x2   :  { %102 = vmatprep.subr.bf16.mxu0 %v556_v0  ;;  %v625_v4 = vld [vmem:[%s755_s1 + $0x20] ss:$8 sps:$4 sm:$0xff]   ;;  %177 = vmatprep.subr.bf16.mxu1 %v617_v2  ;;  %v562_v5 = vld [vmem:[%s755_s1 + $0x44] ss:$8 sps:$4 sm:$0xff]   ;;  %v635_v6 = vld [vmem:[%s755_s1 + $0x14] ss:$8 sps:$4 sm:$0xff]  }
   0x3   :  { %103 = vmatpush1.bf16.msra.mxu0 %v560_v3  ;;  %178 = vmatpush1.bf16.msra.mxu1 %v625_v4  ;;  %v566_v7 = vld [vmem:[%s755_s1 + $0x40] ss:$8 sps:$4 sm:$0xff]   ;;  %v643_v8 = vld [vmem:[%s755_s1 + $0x10] ss:$8 sps:$4 sm:$0xff]   ;;  %v568_v9 = vld [vmem:[%s755_s1 + $0x34] ss:$8 sps:$4 sm:$0xff]  }
   0x4   :  { %104 = vmatprep.subr.bf16.mxu0 %v562_v5  ;;  %179 = vmatprep.subr.bf16.mxu1 %v635_v6  ;;  %v652_v10 = vld [vmem:[%s755_s1 + $0x4] ss:$8 sps:$4 sm:$0xff]   ;;  %v572_v11 = vld [vmem:[%s755_s1 + $0x30] ss:$8 sps:$4 sm:$0xff]   ;;  %v660_v12 = vld [vmem:[%s755_s1] ss:$8 sps:$4 sm:$0xff]  }
   0x5   :  { %v40_v13 = vld [vmem:[%s756_s0] sm:$0xff]  ;;  %v41_v14 = vld [vmem:[%s756_s0 + $0x8] sm:$0xff]  ;;  %v42_v15 = vld [vmem:[%s756_s0 + $0x10] sm:$0x3]  ;;  %v298_v55 = vshrl.u32 %v297_v51, 7  ;;  %vm327_vm3 = vcmask 523264  }
   0x6   :  { %v43_v16 = vpack.c.bf16 %v41_v14, %v40_v13  ;;  %v44_v17 = vpack.c.bf16 %v42_v15, %v42_v15  ;;  %v576_v18 = vld [vmem:[%s755_s1 + $0x84] ss:$8 sps:$4 sm:$0xff]   ;;  %v545_v24 = vld [vmem:[%s756_s0 + $0x18] sm:$0xff]  ;;  %v547_v26 = vld [vmem:[%s756_s0 + $0x28] sm:$0x3] }
   0x7   :  { %105 = vmatpush1.bf16.msra.mxu0 %v566_v7  ;;  %180 = vmatpush1.bf16.msra.mxu1 %v643_v8  ;;  %v546_v25 = vld [vmem:[%s756_s0 + $0x20] sm:$0xff]  ;;  %v336_v30 = vpack.c.bf16 %v547_v26, %v547_v26  ;;  %v579_v31 = vld [vmem:[%s755_s1 + $0x74] ss:$8 sps:$4 sm:$0xff]   ;;  %v577_v36 = vld [vmem:[%s755_s1 + $0x70] ss:$8 sps:$4 sm:$0xff]   ;;  %v299_v58 = vsub.s32 0, %v298_v55 }
   0x8   :  { %106 = vmatprep.subr.bf16.mxu0 %v568_v9  ;;  %181 = vmatprep.subr.bf16.mxu1 %v652_v10  ;;  %v47_v19 = vshrl.u32 %v43_v16, 16  ;;  %v49_v20 = vshll.u32 %v43_v16, 16  ;;  %v54_v21 = vshll.u32 %v44_v17, 16  ;;  %v574_v28 = vld [vmem:[%s755_s1 + $0x80] ss:$8 sps:$4 sm:$0xff]   ;;  %v335_v29 = vpack.c.bf16 %v546_v25, %v545_v24 }
   0x9   :  { %v345_v35 = vshll.u32 %v336_v30, 16  ;;  %v582_v38 = vld [vmem:[%s755_s1 + $0x64] ss:$8 sps:$4 sm:$0xff]   ;;  %v580_v41 = vld [vmem:[%s755_s1 + $0x60] ss:$8 sps:$4 sm:$0xff]   ;;  %v213_v42 = vrot.slane %v43_v16, 1 }
   0xa   :  { %v51_v22 = vrot.slane %v49_v20, 1  ;;  %v56_v23 = vrot.slane %v54_v21, 1  ;;  %v338_v33 = vshrl.u32 %v335_v29, 16  ;;  %v340_v34 = vshll.u32 %v335_v29, 16  ;;  %v18_v59 = vld [vmem:[%s757_s2] sm:$0x3] }
   0xb   :  { %107 = vmatpush1.bf16.msra.mxu0 %v572_v11  ;;  %182 = vmatpush1.bf16.msra.mxu1 %v660_v12  ;;  %v347_v39 = vrot.slane %v345_v35, 1  ;;  %v214_v43 = vrot.slane %v44_v17, 1  ;;  %v442_v46 = vrot.slane %v335_v29, 1  ;;  %v443_v47 = vrot.slane %v336_v30, 1  ;;  %v19_v63 = vld [vmem:[%s758_s3] sm:$0x3] }
   0xc   :  { %259 = vmatprep.subr.bf16.mxu0 %v576_v18  ;;  %362 = vmatprep.subr.bf16.mxu1 %v556_v0  ;;  %v52_v27 = vor.u32 %v51_v22, %v47_v19  ;;  %v342_v37 = vrot.slane %v340_v34, 1  ;;  %v303_v61 = vsub.s32 1, %v298_v55 }
   0xd   :  { %v215_v45 = vsel %vm212_vm2, %v213_v42, %v214_v43  ;;  %v444_v48 = vsel %vm212_vm2, %v442_v46, %v443_v47 }
   0xe   :  { %537 = vmatmul.mubr.msk.bf16.vlgmr.msra.gmra.mxu1 %vm88_vm0, %v43_v16  ;;  %v57_v32 = vsel %vm45_vm1, %v52_v27, %v56_v23  ;;  %v343_v40 = vor.u32 %v342_v37, %v338_v33 }
   0xf   :  { %363 = vmatpush1.bf16.msra.mxu1 %v560_v3  ;;  %384 = vmatprep.mubr.bf16.mxu1 %v583_v1 }
  0x10   :  { %364 = vmatprep.subr.bf16.mxu1 %v562_v5  ;;  %530 = vmatmul.mubr.msk.bf16.vlgmr.msra.gmra.mxu0 %vm88_vm0, %v57_v32  ;;  %v348_v44 = vsel %vm45_vm1, %v343_v40, %v347_v39 }
  0x11   :  { %260 = vmatpush1.bf16.msra.mxu0 %v574_v28  ;;  %281 = vmatprep.mubr.bf16.mxu0 %v583_v1 }
  0x12   :  { %261 = vmatprep.subr.bf16.mxu0 %v579_v31 }
  0x13   :  { %365 = vmatpush1.bf16.msra.mxu1 %v566_v7  ;;  %v304_v7 = vrot.slane %v18_v59, %v303_v61 }
  0x14   :  { %366 = vmatprep.subr.bf16.mxu1 %v568_v9 }
  0x15   :  { %262 = vmatpush1.bf16.msra.mxu0 %v577_v36 }
  0x16   :  { %263 = vmatprep.subr.bf16.mxu0 %v582_v38 }
  0x17   :  { %367 = vmatpush1.bf16.msra.mxu1 %v572_v11 }
  0x18   :  { %458 = vmatprep.subr.bf16.mxu1 %v576_v18 }
  0x19   :  { %264 = vmatpush1.bf16.msra.mxu0 %v580_v41 }
  0x1a   :  { %548 = vmatmul.mubr.msk.bf16.vlgmr.msra.gmra.mxu1 %vm88_vm0, %v348_v44  ;;  %407 = vmatprep.subr.bf16.mxu0 %v617_v2 }
  0x1b   :  { %459 = vmatpush1.bf16.msra.mxu1 %v574_v28  ;;  %480 = vmatprep.mubr.bf16.mxu1 %v583_v1 }
  0x1c   :  { %460 = vmatprep.subr.bf16.mxu1 %v579_v31  ;;  %544 = vmatmul.mubr.msk.bf16.vlgmr.msra.gmra.mxu0 %vm88_vm0, %v215_v45 }
  0x1d   :  { %408 = vmatpush1.bf16.msra.mxu0 %v625_v4  ;;  %429 = vmatprep.mubr.bf16.mxu0 %v583_v1  ;;  %v300_v1 = vrot.slane %v18_v59, %v299_v58 }
  0x1e   :  { %409 = vmatprep.subr.bf16.mxu0 %v635_v6  ;;  %v315_v6 = vrot.slane %v19_v63, %v299_v58 }
  0x1f   :  { %461 = vmatpush1.bf16.msra.mxu1 %v577_v36 }
  0x20   :  { %462 = vmatprep.subr.bf16.mxu1 %v582_v38 }
  0x21   :  { %410 = vmatpush1.bf16.msra.mxu0 %v643_v8 }
  0x22   :  { %411 = vmatprep.subr.bf16.mxu0 %v652_v10 }
  0x23   :  { %463 = vmatpush1.bf16.msra.mxu1 %v580_v41 }
  0x25   :  { %412 = vmatpush1.bf16.msra.mxu0 %v660_v12  ;;  %v319_v12 = vrot.slane %v19_v63, %v303_v61 }
  0x26   :  { %550 = vmatmul.mubr.msk.bf16.vlgmr.msra.gmra.mxu1 %vm88_vm0, %v444_v48 }
  0x28   :  { %549 = vmatmul.mubr.msk.bf16.vlgmr.msra.gmra.mxu0 %vm88_vm0, %v335_v29 }
  0xce   :  { %v201_v49 = vpop.f32.mrf.mxu1 }
  0xd0   :  { %v203_v50 = vpop.f32.mrf.mxu1  ;;  %v126_v52 = vpop.f32.mrf.mxu0 }
  0xd1   :  { %v202_v0 = vadd.f32 %v201_v49, %v126_v52 }
  0xd2   :  { %v128_v53 = vpop.f32.mrf.mxu0  ;;  %v205_v54 = vpop.f32.mrf.mxu1 }
  0xd3   :  { %v204_v4 = vadd.f32 %v203_v50, %v128_v53 }
  0xd4   :  { %v130_v56 = vpop.f32.mrf.mxu0  ;;  %v207_v57 = vpop.f32.mrf.mxu1 }
  0xd5   :  { %v206_v9 = vadd.f32 %v205_v54, %v130_v56 }
  0xd6   :  { %v132_v62 = vpop.f32.mrf.mxu0 }
  0xd7   :  { %v208_v15 = vadd.f32 %v207_v57, %v132_v62 }
  0xda   :  { %v386_v60 = vpop.f32.mrf.mxu1 }
  0xdc   :  { %v388_v2 = vpop.f32.mrf.mxu1  ;;  %v283_v3 = vpop.f32.mrf.mxu0 }
  0xdd   :  { %v292_v5 = vadd.f32 %v283_v3, %v202_v0 }
  0xde   :  { %v285_v8 = vpop.f32.mrf.mxu0  ;;  %v390_v13 = vpop.f32.mrf.mxu1 }
  0xdf   :  { %v307_v10 = vmul.f32 %v300_v1, %v292_v5  ;;  %v293_v11 = vadd.f32 %v285_v8, %v204_v4 }
  0xe0   :  { %v287_v14 = vpop.f32.mrf.mxu0  ;;  %v392_v23 = vpop.f32.mrf.mxu1 }
  0xe1   :  { %v322_v16 = vadd.f32 %v315_v6, %v307_v10  ;;  %v308_v17 = vmul.f32 %v304_v7, %v293_v11  ;;  %v294_v18 = vadd.f32 %v287_v14, %v206_v9 }
  0xe2   :  { %v289_v19 = vpop.f32.mrf.mxu0 }
  0xe3   :  { %326 = vst [vmem:[%s759_s4] sm:$0xff] %v322_v16  ;;  %v323_v20 = vadd.f32 %v319_v12, %v308_v17  ;;  %v309_v21 = vmul.f32 %v300_v1, %v294_v18  ;;  %v295_v22 = vadd.f32 %v289_v19, %v208_v15 }
  0xe5   :  { %328 = vst.msk [vmem:[%s759_s4 + $0x8] sm:$0xff] %vm327_vm3, %v323_v20  ;;  %v324_v24 = vadd.f32 %v315_v6, %v309_v21  ;;  %v310_v25 = vmul.f32 %v304_v7, %v295_v22 }
  0xe6   :  { %v482_v26 = vpop.f32.mrf.mxu1 }
  0xe7   :  { %329 = vst [vmem:[%s759_s4 + $0x10] sm:$0xff] %v324_v24  ;;  %v325_v27 = vadd.f32 %v319_v12, %v310_v25 }
  0xe8   :  { %v431_v28 = vpop.f32.mrf.mxu0  ;;  %v484_v29 = vpop.f32.mrf.mxu1 }
  0xe9   :  { %330 = vst.msk [vmem:[%s759_s4 + $0x18] sm:$0xff] %vm327_vm3, %v325_v27  ;;  %v432_v30 = vadd.f32 %v431_v28, %v386_v60 }
  0xea   :  { %v433_v31 = vpop.f32.mrf.mxu0  ;;  %v486_v35 = vpop.f32.mrf.mxu1 }
  0xeb   :  { %v491_v32 = vadd.f32 %v482_v26, %v432_v30  ;;  %v434_v33 = vadd.f32 %v433_v31, %v388_v2 }
  0xec   :  { %v435_v34 = vpop.f32.mrf.mxu0  ;;  %v488_v44 = vpop.f32.mrf.mxu1 }
  0xed   :  { %v495_v36 = vmul.f32 %v491_v32, %v300_v1  ;;  %v492_v37 = vadd.f32 %v484_v29, %v434_v33  ;;  %v436_v38 = vadd.f32 %v435_v34, %v390_v13 }
  0xee   :  { %v437_v39 = vpop.f32.mrf.mxu0 }
  0xef   :  { %v499_v40 = vadd.f32 %v495_v36, %v315_v6  ;;  %v496_v41 = vmul.f32 %v492_v37, %v304_v7  ;;  %v493_v42 = vadd.f32 %v486_v35, %v436_v38  ;;  %v438_v43 = vadd.f32 %v437_v39, %v392_v23 }
  0xf1   :  { %551 = vst [vmem:[%s759_s4 + $0x20] sm:$0xff] %v499_v40  ;;  %v500_v45 = vadd.f32 %v496_v41, %v319_v12  ;;  %v497_v46 = vmul.f32 %v493_v42, %v300_v1  ;;  %v494_v47 = vadd.f32 %v488_v44, %v438_v43 }
  0xf3   :  { %552 = vst.msk [vmem:[%s759_s4 + $0x28] sm:$0xff] %vm327_vm3, %v500_v45  ;;  %v501_v48 = vadd.f32 %v497_v46, %v315_v6  ;;  %v498_v49 = vmul.f32 %v494_v47, %v304_v7 }
  0xf5   :  { %553 = vst [vmem:[%s759_s4 + $0x30] sm:$0xff] %v501_v48  ;;  %v502_v50 = vadd.f32 %v498_v49, %v319_v12 }
  0xf7   :  { %554 = vst.msk [vmem:[%s759_s4 + $0x38] sm:$0xff] %vm327_vm3, %v502_v50 }

// kernel: _lambda_.12
= control target key start
LH: loop header
LB: loop body
LE: loop exit
PB: predicated region body
PF: predicated region fallthrough
CT: control target
= control target key end

     0   :  { %vm282_vm0 = vcmask 1045504   ;;  %vm185_vm1 = vcmask 97280   ;;  %vm717_vm2 = vcmask 64512   ;;  %s1571_s1 = inlined_call_operand.vmem [shape: bf16[12,8], index: 1, kind: input, shape index: {}]   ;;  %s1572_s0 = inlined_call_operand.vmem [shape: f32[512,12], index: 0, kind: input, shape index: {}]   ;;  %s1573_s2 = inlined_call_operand.vmem [shape: f32[1,8], index: 2, kind: input, shape index: {}]   ;;  %s1574_s3 = inlined_call_operand.vmem [shape: f32[1,8], index: 3, kind: input, shape index: {}]   ;;  %s1575_s4 = inlined_call_operand.vmem [shape: f32[512,8], index: 4, kind: output, shape index: {}]  }
   0x1   :  { %v924_v0 = vld [vmem:[%s1571_s1] sm:$0x3f]   ;;  %v19_v2 = vld [vmem:[%s1572_s0 + $0x8] sm:$0xff]  ;;  %v20_v9 = vld [vmem:[%s1572_s0 + $0x10] sm:$0xff] }
   0x2   :  { %v18_v1 = vld [vmem:[%s1572_s0] sm:$0xff]  ;;  %922 = vmatprep.subr.msk.bf16.mxu0 %vm282_vm0, %v924_v0  ;;  %923 = vmatprep.subr.msk.bf16.mxu1 %vm282_vm0, %v924_v0  ;;  %v284_v4 = vsel %vm282_vm0, %v924_v0, 0  ;;  %v83_v6 = vmax.f32 %v19_v2, 0.0  ;;  %v51_v7 = vld [vmem:[%s1572_s0 + $0x108] sm:$0xff]  ;;  %v21_v11 = vld [vmem:[%s1572_s0 + $0x18] sm:$0xff]  ;;  %v84_v12 = vmax.f32 %v20_v9, 0.0 }
   0x3   :  { %v50_v3 = vld [vmem:[%s1572_s0 + $0x100] sm:$0xff]  ;;  %v82_v5 = vmax.f32 %v18_v1, 0.0  ;;  %855 = vmatpush3.bf16.msra.mxu0 %v284_v4  ;;  %921 = vmatpush3.bf16.msra.mxu1 %v284_v4  ;;  %v115_v10 = vmax.f32 %v51_v7, 0.0  ;;  %v52_v13 = vld [vmem:[%s1572_s0 + $0x110] sm:$0xff]  ;;  %v53_v14 = vld [vmem:[%s1572_s0 + $0x118] sm:$0xff]  ;;  %v85_v16 = vmax.f32 %v21_v11, 0.0 }
   0x4   :  { %v114_v8 = vmax.f32 %v50_v3, 0.0  ;;  %v116_v17 = vmax.f32 %v52_v13, 0.0  ;;  %v117_v18 = vmax.f32 %v53_v14, 0.0  ;;  %v22_v19 = vld [vmem:[%s1572_s0 + $0x20] sm:$0xff]  ;;  %v23_v20 = vld [vmem:[%s1572_s0 + $0x28] sm:$0xff]  ;;  %v24_v27 = vld [vmem:[%s1572_s0 + $0x30] sm:$0xff] }
   0x5   :  { %v146_v15 = vpack.c.bf16 %v83_v6, %v82_v5  ;;  %v54_v21 = vld [vmem:[%s1572_s0 + $0x120] sm:$0xff]  ;;  %v86_v23 = vmax.f32 %v22_v19, 0.0  ;;  %v87_v24 = vmax.f32 %v23_v20, 0.0  ;;  %v55_v25 = vld [vmem:[%s1572_s0 + $0x128] sm:$0xff]  ;;  %v25_v28 = vld [vmem:[%s1572_s0 + $0x38] sm:$0xff]  ;;  %v147_v29 = vpack.c.bf16 %v85_v16, %v84_v12 }
   0x6   :  { %v162_v22 = vpack.c.bf16 %v115_v10, %v114_v8  ;;  %v118_v26 = vmax.f32 %v54_v21, 0.0  ;;  %v163_v30 = vpack.c.bf16 %v117_v18, %v116_v17  ;;  %v119_v31 = vmax.f32 %v55_v25, 0.0  ;;  %v56_v32 = vld [vmem:[%s1572_s0 + $0x130] sm:$0xff]  ;;  %v57_v33 = vld [vmem:[%s1572_s0 + $0x138] sm:$0xff]  ;;  %v26_v34 = vld [vmem:[%s1572_s0 + $0x40] sm:$0xff] }
   0x7   :  { %856 = vmatprep.mubr.msk.bf16.mxu0 %vm185_vm1, %v146_v15  ;;  %v148_v35 = vpack.c.bf16 %v87_v24, %v86_v23  ;;  %v88_v36 = vmax.f32 %v24_v27, 0.0  ;;  %v27_v37 = vld [vmem:[%s1572_s0 + $0x48] sm:$0xff]  ;;  %v58_v38 = vld [vmem:[%s1572_s0 + $0x140] sm:$0xff]  ;;  %v89_v41 = vmax.f32 %v25_v28, 0.0  ;;  %v120_v42 = vmax.f32 %v56_v32, 0.0  ;;  %v28_v50 = vld [vmem:[%s1572_s0 + $0x50] sm:$0xff] }
   0x8   :  { %888 = vmatprep.mubr.msk.bf16.mxu1 %vm185_vm1, %v162_v22  ;;  %v59_v39 = vld [vmem:[%s1572_s0 + $0x148] sm:$0xff]  ;;  %857 = vmatmul.mubr.msk.bf16.vlgmr.msra.gmra.mxu0 %vm185_vm1, %v147_v29  ;;  %v164_v40 = vpack.c.bf16 %v119_v31, %v118_v26  ;;  %v121_v43 = vmax.f32 %v57_v33, 0.0  ;;  %v90_v44 = vmax.f32 %v26_v34, 0.0  ;;  %v91_v45 = vmax.f32 %v27_v37, 0.0  ;;  %v29_v51 = vld [vmem:[%s1572_s0 + $0x58] sm:$0xff]  ;;  %v60_v54 = vld [vmem:[%s1572_s0 + $0x150] sm:$0xff] }
   0x9   :  { %889 = vmatmul.mubr.msk.bf16.vlgmr.msra.gmra.mxu1 %vm185_vm1, %v163_v30  ;;  %860 = vmatprep.mubr.msk.bf16.mxu0 %vm185_vm1, %v148_v35  ;;  %v122_v46 = vmax.f32 %v58_v38, 0.0  ;;  %v123_v47 = vmax.f32 %v59_v39, 0.0  ;;  %v149_v48 = vpack.c.bf16 %v89_v41, %v88_v36  ;;  %v61_v55 = vld [vmem:[%s1572_s0 + $0x158] sm:$0xff]  ;;  %v30_v56 = vld [vmem:[%s1572_s0 + $0x60] sm:$0xff]  ;;  %v31_v57 = vld [vmem:[%s1572_s0 + $0x68] sm:$0xff]  ;;  %v92_v60 = vmax.f32 %v28_v50, 0.0 }
   0xa   :  { %892 = vmatprep.mubr.msk.bf16.mxu1 %vm185_vm1, %v164_v40  ;;  %v165_v49 = vpack.c.bf16 %v121_v43, %v120_v42  ;;  %v150_v52 = vpack.c.bf16 %v91_v45, %v90_v44  ;;  %v62_v58 = vld [vmem:[%s1572_s0 + $0x160] sm:$0xff]  ;;  %v63_v59 = vld [vmem:[%s1572_s0 + $0x168] sm:$0xff]  ;;  %v93_v61 = vmax.f32 %v29_v51, 0.0  ;;  %v124_v62 = vmax.f32 %v60_v54, 0.0  ;;  %v32_v6 = vld [vmem:[%s1572_s0 + $0x70] sm:$0xff] }
   0xb   :  { %v166_v53 = vpack.c.bf16 %v123_v47, %v122_v46  ;;  %v125_v63 = vmax.f32 %v61_v55, 0.0  ;;  %v94_v0 = vmax.f32 %v30_v56, 0.0  ;;  %v95_v1 = vmax.f32 %v31_v57, 0.0  ;;  %v33_v7 = vld [vmem:[%s1572_s0 + $0x78] sm:$0xff]  ;;  %v64_v10 = vld [vmem:[%s1572_s0 + $0x170] sm:$0xff]  ;;  %v34_v12 = vld [vmem:[%s1572_s0 + $0x80] sm:$0xff] }
   0xc   :  { %v126_v2 = vmax.f32 %v62_v58, 0.0  ;;  %v127_v3 = vmax.f32 %v63_v59, 0.0  ;;  %v151_v4 = vpack.c.bf16 %v93_v61, %v92_v60  ;;  %v65_v11 = vld [vmem:[%s1572_s0 + $0x178] sm:$0xff]  ;;  %v35_v13 = vld [vmem:[%s1572_s0 + $0x88] sm:$0xff]  ;;  %v66_v14 = vld [vmem:[%s1572_s0 + $0x180] sm:$0xff]  ;;  %v96_v16 = vmax.f32 %v32_v6, 0.0 }
   0xd   :  { %v167_v5 = vpack.c.bf16 %v125_v63, %v124_v62  ;;  %v152_v8 = vpack.c.bf16 %v95_v1, %v94_v0  ;;  %v67_v15 = vld [vmem:[%s1572_s0 + $0x188] sm:$0xff]  ;;  %v97_v17 = vmax.f32 %v33_v7, 0.0  ;;  %v128_v18 = vmax.f32 %v64_v10, 0.0  ;;  %v36_v26 = vld [vmem:[%s1572_s0 + $0x90] sm:$0xff]  ;;  %v37_v27 = vld [vmem:[%s1572_s0 + $0x98] sm:$0xff] }
   0xe   :  { %v168_v9 = vpack.c.bf16 %v127_v3, %v126_v2  ;;  %v129_v19 = vmax.f32 %v65_v11, 0.0  ;;  %v98_v20 = vmax.f32 %v34_v12, 0.0  ;;  %v99_v21 = vmax.f32 %v35_v13, 0.0  ;;  %v68_v30 = vld [vmem:[%s1572_s0 + $0x190] sm:$0xff]  ;;  %v69_v31 = vld [vmem:[%s1572_s0 + $0x198] sm:$0xff]  ;;  %v38_v32 = vld [vmem:[%s1572_s0 + $0xa0] sm:$0xff] }
   0xf   :  { %v130_v22 = vmax.f32 %v66_v14, 0.0  ;;  %v131_v23 = vmax.f32 %v67_v15, 0.0  ;;  %v153_v24 = vpack.c.bf16 %v97_v17, %v96_v16  ;;  %v39_v33 = vld [vmem:[%s1572_s0 + $0xa8] sm:$0xff]  ;;  %v70_v34 = vld [vmem:[%s1572_s0 + $0x1a0] sm:$0xff]  ;;  %v100_v36 = vmax.f32 %v36_v26, 0.0  ;;  %v40_v46 = vld [vmem:[%s1572_s0 + $0xb0] sm:$0xff] }
  0x10   :  { %861 = vmatmul.mubr.msk.bf16.gmra.mxu0 %vm185_vm1, %v149_v48  ;;  %v169_v25 = vpack.c.bf16 %v129_v19, %v128_v18  ;;  %v154_v28 = vpack.c.bf16 %v99_v21, %v98_v20  ;;  %v71_v35 = vld [vmem:[%s1572_s0 + $0x1a8] sm:$0xff]  ;;  %v101_v37 = vmax.f32 %v37_v27, 0.0  ;;  %v132_v38 = vmax.f32 %v68_v30, 0.0  ;;  %v41_v47 = vld [vmem:[%s1572_s0 + $0xb8] sm:$0xff]  ;;  %v72_v50 = vld [vmem:[%s1572_s0 + $0x1b0] sm:$0xff] }
  0x11   :  { %893 = vmatmul.mubr.msk.bf16.gmra.mxu1 %vm185_vm1, %v165_v49  ;;  %864 = vmatprep.mubr.msk.bf16.mxu0 %vm185_vm1, %v150_v52  ;;  %v170_v29 = vpack.c.bf16 %v131_v23, %v130_v22  ;;  %v133_v39 = vmax.f32 %v69_v31, 0.0  ;;  %v102_v40 = vmax.f32 %v38_v32, 0.0  ;;  %v103_v41 = vmax.f32 %v39_v33, 0.0  ;;  %v73_v51 = vld [vmem:[%s1572_s0 + $0x1b8] sm:$0xff]  ;;  %v42_v52 = vld [vmem:[%s1572_s0 + $0xc0] sm:$0xff]  ;;  %v75_v55 = vld [vmem:[%s1572_s0 + $0x1c8] sm:$0xff] }
  0x12   :  { %896 = vmatprep.mubr.msk.bf16.mxu1 %vm185_vm1, %v166_v53  ;;  %v134_v42 = vmax.f32 %v70_v34, 0.0  ;;  %v135_v43 = vmax.f32 %v71_v35, 0.0  ;;  %v155_v44 = vpack.c.bf16 %v101_v37, %v100_v36  ;;  %v43_v53 = vld [vmem:[%s1572_s0 + $0xc8] sm:$0xff]  ;;  %v74_v54 = vld [vmem:[%s1572_s0 + $0x1c0] sm:$0xff]  ;;  %v104_v56 = vmax.f32 %v40_v46, 0.0  ;;  %v44_v2 = vld [vmem:[%s1572_s0 + $0xd0] sm:$0xff] }
  0x13   :  { %v171_v45 = vpack.c.bf16 %v133_v39, %v132_v38  ;;  %v156_v48 = vpack.c.bf16 %v103_v41, %v102_v40  ;;  %v105_v57 = vmax.f32 %v41_v47, 0.0  ;;  %v136_v58 = vmax.f32 %v72_v50, 0.0  ;;  %v45_v3 = vld [vmem:[%s1572_s0 + $0xd8] sm:$0xff]  ;;  %v76_v6 = vld [vmem:[%s1572_s0 + $0x1d0] sm:$0xff]  ;;  %v78_v10 = vld [vmem:[%s1572_s0 + $0x1e0] sm:$0xff] }
  0x14   :  { %v172_v49 = vpack.c.bf16 %v135_v43, %v134_v42  ;;  %v137_v59 = vmax.f32 %v73_v51, 0.0  ;;  %v106_v60 = vmax.f32 %v42_v52, 0.0  ;;  %v107_v61 = vmax.f32 %v43_v53, 0.0  ;;  %v77_v7 = vld [vmem:[%s1572_s0 + $0x1d8] sm:$0xff]  ;;  %v79_v11 = vld [vmem:[%s1572_s0 + $0x1e8] sm:$0xff]  ;;  %v48_v22 = vld [vmem:[%s1572_s0 + $0xf0] sm:$0xff] }
  0x15   :  { %v138_v62 = vmax.f32 %v74_v54, 0.0  ;;  %v139_v63 = vmax.f32 %v75_v55, 0.0  ;;  %v157_v0 = vpack.c.bf16 %v105_v57, %v104_v56  ;;  %v108_v12 = vmax.f32 %v44_v2, 0.0  ;;  %v80_v26 = vld [vmem:[%s1572_s0 + $0x1f0] sm:$0xff]  ;;  %v81_v27 = vld [vmem:[%s1572_s0 + $0x1f8] sm:$0xff] }
  0x16   :  { %v173_v1 = vpack.c.bf16 %v137_v59, %v136_v58  ;;  %v109_v13 = vmax.f32 %v45_v3, 0.0  ;;  %v140_v14 = vmax.f32 %v76_v6, 0.0  ;;  %v141_v15 = vmax.f32 %v77_v7, 0.0  ;;  %v1180_v34 = vld [vmem:[%s1573_s2] ss:$0 sm:$0xff] }
  0x17   :  { %v142_v18 = vmax.f32 %v78_v10, 0.0  ;;  %v143_v19 = vmax.f32 %v79_v11, 0.0  ;;  %v144_v30 = vmax.f32 %v80_v26, 0.0  ;;  %v145_v31 = vmax.f32 %v81_v27, 0.0  ;;  %v1185_v36 = vld [vmem:[%s1574_s3] ss:$0 sm:$0xff] }
  0x18   :  { %865 = vmatmul.mubr.msk.bf16.gmra.mxu0 %vm185_vm1, %v151_v4  ;;  %v158_v4 = vpack.c.bf16 %v107_v61, %v106_v60  ;;  %v159_v20 = vpack.c.bf16 %v109_v13, %v108_v12  ;;  %v175_v21 = vpack.c.bf16 %v141_v15, %v140_v14 }
  0x19   :  { %897 = vmatmul.mubr.msk.bf16.gmra.mxu1 %vm185_vm1, %v167_v5  ;;  %868 = vmatprep.mubr.msk.bf16.mxu0 %vm185_vm1, %v152_v8  ;;  %v174_v5 = vpack.c.bf16 %v139_v63, %v138_v62  ;;  %v46_v8 = vld [vmem:[%s1572_s0 + $0xe0] sm:$0xff]  ;;  %v177_v33 = vpack.c.bf16 %v145_v31, %v144_v30 }
  0x1a   :  { %900 = vmatprep.mubr.msk.bf16.mxu1 %vm185_vm1, %v168_v9  ;;  %v47_v9 = vld [vmem:[%s1572_s0 + $0xe8] sm:$0xff]  ;;  %v110_v16 = vmax.f32 %v46_v8, 0.0 }
  0x1b   :  { %v111_v17 = vmax.f32 %v47_v9, 0.0 }
  0x1d   :  { %v160_v23 = vpack.c.bf16 %v111_v17, %v110_v16 }
  0x20   :  { %869 = vmatmul.mubr.msk.bf16.gmra.mxu0 %vm185_vm1, %v153_v24  ;;  %v176_v24 = vpack.c.bf16 %v143_v19, %v142_v18 }
  0x21   :  { %901 = vmatmul.mubr.msk.bf16.gmra.mxu1 %vm185_vm1, %v169_v25  ;;  %872 = vmatprep.mubr.msk.bf16.mxu0 %vm185_vm1, %v154_v28  ;;  %v49_v25 = vld [vmem:[%s1572_s0 + $0xf8] sm:$0xff]  ;;  %v112_v28 = vmax.f32 %v48_v22, 0.0 }
  0x22   :  { %904 = vmatprep.mubr.msk.bf16.mxu1 %vm185_vm1, %v170_v29  ;;  %v113_v29 = vmax.f32 %v49_v25, 0.0 }
  0x24   :  { %v161_v32 = vpack.c.bf16 %v113_v29, %v112_v28 }
  0x28   :  { %873 = vmatmul.mubr.msk.bf16.gmra.mxu0 %vm185_vm1, %v155_v44 }
  0x29   :  { %905 = vmatmul.mubr.msk.bf16.gmra.mxu1 %vm185_vm1, %v171_v45  ;;  %876 = vmatprep.mubr.msk.bf16.mxu0 %vm185_vm1, %v156_v48 }
  0x2a   :  { %908 = vmatprep.mubr.msk.bf16.mxu1 %vm185_vm1, %v172_v49 }
  0x30   :  { %877 = vmatmul.mubr.msk.bf16.gmra.mxu0 %vm185_vm1, %v157_v0 }
  0x31   :  { %909 = vmatmul.mubr.msk.bf16.gmra.mxu1 %vm185_vm1, %v173_v1  ;;  %880 = vmatprep.mubr.msk.bf16.mxu0 %vm185_vm1, %v158_v4 }
  0x32   :  { %912 = vmatprep.mubr.msk.bf16.mxu1 %vm185_vm1, %v174_v5 }
  0x38   :  { %881 = vmatmul.mubr.msk.bf16.gmra.mxu0 %vm185_vm1, %v159_v20 }
  0x39   :  { %913 = vmatmul.mubr.msk.bf16.gmra.mxu1 %vm185_vm1, %v175_v21  ;;  %884 = vmatprep.mubr.msk.bf16.mxu0 %vm185_vm1, %v160_v23 }
  0x3a   :  { %916 = vmatprep.mubr.msk.bf16.mxu1 %vm185_vm1, %v176_v24 }
  0x40   :  { %885 = vmatmul.mubr.msk.bf16.gmra.mxu0 %vm185_vm1, %v161_v32 }
  0x41   :  { %917 = vmatmul.mubr.msk.bf16.gmra.mxu1 %vm185_vm1, %v177_v33 }
  0xc8   :  { %v858_v35 = vpop.f32.mrf.mxu0 }
  0xc9   :  { %v890_v37 = vpop.f32.mrf.mxu1  ;;  %v584_v38 = vmul.f32 %v858_v35, %v1180_v34 }
  0xca   :  { %v616_v39 = vmul.f32 %v890_v37, %v1180_v34  ;;  %v320_v40 = vpop.f32.mrf.mxu0 }
  0xcb   :  { %v448_v41 = vpop.f32.mrf.mxu1  ;;  %v655_v42 = vadd.f32 %v1185_v36, %v584_v38  ;;  %v582_v44 = vmul.f32 %v1180_v34, %v320_v40 }
  0xcc   :  { %v687_v43 = vadd.f32 %v1185_v36, %v616_v39  ;;  %v614_v45 = vmul.f32 %v1180_v34, %v448_v41  ;;  %v859_v46 = vpop.f32.mrf.mxu0 }
  0xcd   :  { %v891_v47 = vpop.f32.mrf.mxu1  ;;  %720 = vst.msk [vmem:[%s1575_s4 + $0x10] sm:$0xff] %vm717_vm2, %v655_v42  ;;  %v653_v48 = vadd.f32 %v1185_v36, %v582_v44  ;;  %v585_v50 = vmul.f32 %v859_v46, %v1180_v34 }
  0xce   :  { %752 = vst.msk [vmem:[%s1575_s4 + $0x110] sm:$0xff] %vm717_vm2, %v687_v43  ;;  %v685_v49 = vadd.f32 %v1185_v36, %v614_v45  ;;  %v617_v51 = vmul.f32 %v891_v47, %v1180_v34  ;;  %v323_v52 = vpop.f32.mrf.mxu0 }
  0xcf   :  { %v451_v53 = vpop.f32.mrf.mxu1  ;;  %718 = vst.msk [vmem:[%s1575_s4] sm:$0xff] %vm717_vm2, %v653_v48  ;;  %v656_v54 = vadd.f32 %v1185_v36, %v585_v50  ;;  %v583_v56 = vmul.f32 %v1180_v34, %v323_v52 }
  0xd0   :  { %750 = vst.msk [vmem:[%s1575_s4 + $0x100] sm:$0xff] %vm717_vm2, %v685_v49  ;;  %v688_v55 = vadd.f32 %v1185_v36, %v617_v51  ;;  %v615_v57 = vmul.f32 %v1180_v34, %v451_v53  ;;  %v862_v58 = vpop.f32.mrf.mxu0 }
  0xd1   :  { %v894_v59 = vpop.f32.mrf.mxu1  ;;  %721 = vst.msk [vmem:[%s1575_s4 + $0x18] sm:$0xff] %vm717_vm2, %v656_v54  ;;  %v654_v60 = vadd.f32 %v1185_v36, %v583_v56  ;;  %v588_v62 = vmul.f32 %v862_v58, %v1180_v34 }
  0xd2   :  { %753 = vst.msk [vmem:[%s1575_s4 + $0x118] sm:$0xff] %vm717_vm2, %v688_v55  ;;  %v686_v61 = vadd.f32 %v1185_v36, %v615_v57  ;;  %v620_v63 = vmul.f32 %v894_v59, %v1180_v34  ;;  %v336_v0 = vpop.f32.mrf.mxu0 }
  0xd3   :  { %v464_v1 = vpop.f32.mrf.mxu1  ;;  %719 = vst.msk [vmem:[%s1575_s4 + $0x8] sm:$0xff] %vm717_vm2, %v654_v60  ;;  %v659_v2 = vadd.f32 %v1185_v36, %v588_v62  ;;  %v586_v4 = vmul.f32 %v1180_v34, %v336_v0 }
  0xd4   :  { %751 = vst.msk [vmem:[%s1575_s4 + $0x108] sm:$0xff] %vm717_vm2, %v686_v61  ;;  %v691_v3 = vadd.f32 %v1185_v36, %v620_v63  ;;  %v618_v5 = vmul.f32 %v1180_v34, %v464_v1  ;;  %v863_v6 = vpop.f32.mrf.mxu0 }
  0xd5   :  { %v895_v7 = vpop.f32.mrf.mxu1  ;;  %724 = vst.msk [vmem:[%s1575_s4 + $0x30] sm:$0xff] %vm717_vm2, %v659_v2  ;;  %v657_v8 = vadd.f32 %v1185_v36, %v586_v4  ;;  %v589_v10 = vmul.f32 %v863_v6, %v1180_v34 }
  0xd6   :  { %756 = vst.msk [vmem:[%s1575_s4 + $0x130] sm:$0xff] %vm717_vm2, %v691_v3  ;;  %v689_v9 = vadd.f32 %v1185_v36, %v618_v5  ;;  %v621_v11 = vmul.f32 %v895_v7, %v1180_v34  ;;  %v339_v12 = vpop.f32.mrf.mxu0 }
  0xd7   :  { %v467_v13 = vpop.f32.mrf.mxu1  ;;  %722 = vst.msk [vmem:[%s1575_s4 + $0x20] sm:$0xff] %vm717_vm2, %v657_v8  ;;  %v660_v14 = vadd.f32 %v1185_v36, %v589_v10  ;;  %v587_v16 = vmul.f32 %v1180_v34, %v339_v12 }
  0xd8   :  { %754 = vst.msk [vmem:[%s1575_s4 + $0x120] sm:$0xff] %vm717_vm2, %v689_v9  ;;  %v692_v15 = vadd.f32 %v1185_v36, %v621_v11  ;;  %v619_v17 = vmul.f32 %v1180_v34, %v467_v13  ;;  %v866_v18 = vpop.f32.mrf.mxu0 }
  0xd9   :  { %v898_v19 = vpop.f32.mrf.mxu1  ;;  %725 = vst.msk [vmem:[%s1575_s4 + $0x38] sm:$0xff] %vm717_vm2, %v660_v14  ;;  %v658_v20 = vadd.f32 %v1185_v36, %v587_v16  ;;  %v592_v22 = vmul.f32 %v866_v18, %v1180_v34 }
  0xda   :  { %757 = vst.msk [vmem:[%s1575_s4 + $0x138] sm:$0xff] %vm717_vm2, %v692_v15  ;;  %v690_v21 = vadd.f32 %v1185_v36, %v619_v17  ;;  %v624_v23 = vmul.f32 %v898_v19, %v1180_v34  ;;  %v352_v24 = vpop.f32.mrf.mxu0 }
  0xdb   :  { %v480_v25 = vpop.f32.mrf.mxu1  ;;  %723 = vst.msk [vmem:[%s1575_s4 + $0x28] sm:$0xff] %vm717_vm2, %v658_v20  ;;  %v663_v26 = vadd.f32 %v1185_v36, %v592_v22  ;;  %v590_v28 = vmul.f32 %v1180_v34, %v352_v24 }
  0xdc   :  { %755 = vst.msk [vmem:[%s1575_s4 + $0x128] sm:$0xff] %vm717_vm2, %v690_v21  ;;  %v695_v27 = vadd.f32 %v1185_v36, %v624_v23  ;;  %v622_v29 = vmul.f32 %v1180_v34, %v480_v25  ;;  %v867_v30 = vpop.f32.mrf.mxu0 }
  0xdd   :  { %v899_v31 = vpop.f32.mrf.mxu1  ;;  %728 = vst.msk [vmem:[%s1575_s4 + $0x50] sm:$0xff] %vm717_vm2, %v663_v26  ;;  %v661_v32 = vadd.f32 %v1185_v36, %v590_v28  ;;  %v593_v35 = vmul.f32 %v867_v30, %v1180_v34 }
  0xde   :  { %760 = vst.msk [vmem:[%s1575_s4 + $0x150] sm:$0xff] %vm717_vm2, %v695_v27  ;;  %v693_v33 = vadd.f32 %v1185_v36, %v622_v29  ;;  %v625_v37 = vmul.f32 %v899_v31, %v1180_v34  ;;  %v355_v38 = vpop.f32.mrf.mxu0 }
  0xdf   :  { %v483_v39 = vpop.f32.mrf.mxu1  ;;  %726 = vst.msk [vmem:[%s1575_s4 + $0x40] sm:$0xff] %vm717_vm2, %v661_v32  ;;  %v664_v40 = vadd.f32 %v1185_v36, %v593_v35  ;;  %v591_v42 = vmul.f32 %v1180_v34, %v355_v38 }
  0xe0   :  { %758 = vst.msk [vmem:[%s1575_s4 + $0x140] sm:$0xff] %vm717_vm2, %v693_v33  ;;  %v696_v41 = vadd.f32 %v1185_v36, %v625_v37  ;;  %v623_v43 = vmul.f32 %v1180_v34, %v483_v39  ;;  %v870_v44 = vpop.f32.mrf.mxu0 }
  0xe1   :  { %v902_v45 = vpop.f32.mrf.mxu1  ;;  %729 = vst.msk [vmem:[%s1575_s4 + $0x58] sm:$0xff] %vm717_vm2, %v664_v40  ;;  %v662_v46 = vadd.f32 %v1185_v36, %v591_v42  ;;  %v596_v48 = vmul.f32 %v870_v44, %v1180_v34 }
  0xe2   :  { %761 = vst.msk [vmem:[%s1575_s4 + $0x158] sm:$0xff] %vm717_vm2, %v696_v41  ;;  %v694_v47 = vadd.f32 %v1185_v36, %v623_v43  ;;  %v628_v49 = vmul.f32 %v902_v45, %v1180_v34  ;;  %v368_v50 = vpop.f32.mrf.mxu0 }
  0xe3   :  { %v496_v51 = vpop.f32.mrf.mxu1  ;;  %727 = vst.msk [vmem:[%s1575_s4 + $0x48] sm:$0xff] %vm717_vm2, %v662_v46  ;;  %v667_v52 = vadd.f32 %v1185_v36, %v596_v48  ;;  %v594_v54 = vmul.f32 %v1180_v34, %v368_v50 }
  0xe4   :  { %759 = vst.msk [vmem:[%s1575_s4 + $0x148] sm:$0xff] %vm717_vm2, %v694_v47  ;;  %v699_v53 = vadd.f32 %v1185_v36, %v628_v49  ;;  %v626_v55 = vmul.f32 %v1180_v34, %v496_v51  ;;  %v871_v56 = vpop.f32.mrf.mxu0 }
  0xe5   :  { %v903_v57 = vpop.f32.mrf.mxu1  ;;  %732 = vst.msk [vmem:[%s1575_s4 + $0x70] sm:$0xff] %vm717_vm2, %v667_v52  ;;  %v665_v58 = vadd.f32 %v1185_v36, %v594_v54  ;;  %v597_v60 = vmul.f32 %v871_v56, %v1180_v34 }
  0xe6   :  { %764 = vst.msk [vmem:[%s1575_s4 + $0x170] sm:$0xff] %vm717_vm2, %v699_v53  ;;  %v697_v59 = vadd.f32 %v1185_v36, %v626_v55  ;;  %v629_v61 = vmul.f32 %v903_v57, %v1180_v34  ;;  %v371_v62 = vpop.f32.mrf.mxu0 }
  0xe7   :  { %v499_v63 = vpop.f32.mrf.mxu1  ;;  %730 = vst.msk [vmem:[%s1575_s4 + $0x60] sm:$0xff] %vm717_vm2, %v665_v58  ;;  %v668_v0 = vadd.f32 %v1185_v36, %v597_v60  ;;  %v595_v2 = vmul.f32 %v1180_v34, %v371_v62 }
  0xe8   :  { %762 = vst.msk [vmem:[%s1575_s4 + $0x160] sm:$0xff] %vm717_vm2, %v697_v59  ;;  %v700_v1 = vadd.f32 %v1185_v36, %v629_v61  ;;  %v627_v3 = vmul.f32 %v1180_v34, %v499_v63  ;;  %v874_v4 = vpop.f32.mrf.mxu0 }
  0xe9   :  { %v906_v5 = vpop.f32.mrf.mxu1  ;;  %733 = vst.msk [vmem:[%s1575_s4 + $0x78] sm:$0xff] %vm717_vm2, %v668_v0  ;;  %v666_v6 = vadd.f32 %v1185_v36, %v595_v2  ;;  %v600_v8 = vmul.f32 %v874_v4, %v1180_v34 }
  0xea   :  { %765 = vst.msk [vmem:[%s1575_s4 + $0x178] sm:$0xff] %vm717_vm2, %v700_v1  ;;  %v698_v7 = vadd.f32 %v1185_v36, %v627_v3  ;;  %v632_v9 = vmul.f32 %v906_v5, %v1180_v34  ;;  %v384_v10 = vpop.f32.mrf.mxu0 }
  0xeb   :  { %v512_v11 = vpop.f32.mrf.mxu1  ;;  %731 = vst.msk [vmem:[%s1575_s4 + $0x68] sm:$0xff] %vm717_vm2, %v666_v6  ;;  %v671_v12 = vadd.f32 %v1185_v36, %v600_v8  ;;  %v598_v14 = vmul.f32 %v1180_v34, %v384_v10 }
  0xec   :  { %763 = vst.msk [vmem:[%s1575_s4 + $0x168] sm:$0xff] %vm717_vm2, %v698_v7  ;;  %v703_v13 = vadd.f32 %v1185_v36, %v632_v9  ;;  %v630_v15 = vmul.f32 %v1180_v34, %v512_v11  ;;  %v875_v16 = vpop.f32.mrf.mxu0 }
  0xed   :  { %v907_v17 = vpop.f32.mrf.mxu1  ;;  %736 = vst.msk [vmem:[%s1575_s4 + $0x90] sm:$0xff] %vm717_vm2, %v671_v12  ;;  %v669_v18 = vadd.f32 %v1185_v36, %v598_v14  ;;  %v601_v20 = vmul.f32 %v875_v16, %v1180_v34 }
  0xee   :  { %768 = vst.msk [vmem:[%s1575_s4 + $0x190] sm:$0xff] %vm717_vm2, %v703_v13  ;;  %v701_v19 = vadd.f32 %v1185_v36, %v630_v15  ;;  %v633_v21 = vmul.f32 %v907_v17, %v1180_v34  ;;  %v387_v22 = vpop.f32.mrf.mxu0 }
  0xef   :  { %v515_v23 = vpop.f32.mrf.mxu1  ;;  %734 = vst.msk [vmem:[%s1575_s4 + $0x80] sm:$0xff] %vm717_vm2, %v669_v18  ;;  %v672_v24 = vadd.f32 %v1185_v36, %v601_v20  ;;  %v599_v26 = vmul.f32 %v1180_v34, %v387_v22 }
  0xf0   :  { %766 = vst.msk [vmem:[%s1575_s4 + $0x180] sm:$0xff] %vm717_vm2, %v701_v19  ;;  %v704_v25 = vadd.f32 %v1185_v36, %v633_v21  ;;  %v631_v27 = vmul.f32 %v1180_v34, %v515_v23  ;;  %v878_v28 = vpop.f32.mrf.mxu0 }
  0xf1   :  { %v910_v29 = vpop.f32.mrf.mxu1  ;;  %737 = vst.msk [vmem:[%s1575_s4 + $0x98] sm:$0xff] %vm717_vm2, %v672_v24  ;;  %v670_v30 = vadd.f32 %v1185_v36, %v599_v26  ;;  %v604_v32 = vmul.f32 %v878_v28, %v1180_v34 }
  0xf2   :  { %769 = vst.msk [vmem:[%s1575_s4 + $0x198] sm:$0xff] %vm717_vm2, %v704_v25  ;;  %v702_v31 = vadd.f32 %v1185_v36, %v631_v27  ;;  %v636_v33 = vmul.f32 %v910_v29, %v1180_v34  ;;  %v400_v35 = vpop.f32.mrf.mxu0 }
  0xf3   :  { %v528_v37 = vpop.f32.mrf.mxu1  ;;  %735 = vst.msk [vmem:[%s1575_s4 + $0x88] sm:$0xff] %vm717_vm2, %v670_v30  ;;  %v675_v38 = vadd.f32 %v1185_v36, %v604_v32  ;;  %v602_v40 = vmul.f32 %v1180_v34, %v400_v35 }
  0xf4   :  { %767 = vst.msk [vmem:[%s1575_s4 + $0x188] sm:$0xff] %vm717_vm2, %v702_v31  ;;  %v707_v39 = vadd.f32 %v1185_v36, %v636_v33  ;;  %v634_v41 = vmul.f32 %v1180_v34, %v528_v37  ;;  %v879_v42 = vpop.f32.mrf.mxu0 }
  0xf5   :  { %v911_v43 = vpop.f32.mrf.mxu1  ;;  %740 = vst.msk [vmem:[%s1575_s4 + $0xb0] sm:$0xff] %vm717_vm2, %v675_v38  ;;  %v673_v44 = vadd.f32 %v1185_v36, %v602_v40  ;;  %v605_v46 = vmul.f32 %v879_v42, %v1180_v34 }
  0xf6   :  { %772 = vst.msk [vmem:[%s1575_s4 + $0x1b0] sm:$0xff] %vm717_vm2, %v707_v39  ;;  %v705_v45 = vadd.f32 %v1185_v36, %v634_v41  ;;  %v637_v47 = vmul.f32 %v911_v43, %v1180_v34  ;;  %v403_v48 = vpop.f32.mrf.mxu0 }
  0xf7   :  { %v531_v49 = vpop.f32.mrf.mxu1  ;;  %738 = vst.msk [vmem:[%s1575_s4 + $0xa0] sm:$0xff] %vm717_vm2, %v673_v44  ;;  %v676_v50 = vadd.f32 %v1185_v36, %v605_v46  ;;  %v603_v52 = vmul.f32 %v1180_v34, %v403_v48 }
  0xf8   :  { %770 = vst.msk [vmem:[%s1575_s4 + $0x1a0] sm:$0xff] %vm717_vm2, %v705_v45  ;;  %v708_v51 = vadd.f32 %v1185_v36, %v637_v47  ;;  %v635_v53 = vmul.f32 %v1180_v34, %v531_v49  ;;  %v882_v54 = vpop.f32.mrf.mxu0 }
  0xf9   :  { %v914_v55 = vpop.f32.mrf.mxu1  ;;  %741 = vst.msk [vmem:[%s1575_s4 + $0xb8] sm:$0xff] %vm717_vm2, %v676_v50  ;;  %v674_v56 = vadd.f32 %v1185_v36, %v603_v52  ;;  %v608_v58 = vmul.f32 %v882_v54, %v1180_v34 }
  0xfa   :  { %773 = vst.msk [vmem:[%s1575_s4 + $0x1b8] sm:$0xff] %vm717_vm2, %v708_v51  ;;  %v706_v57 = vadd.f32 %v1185_v36, %v635_v53  ;;  %v640_v59 = vmul.f32 %v914_v55, %v1180_v34  ;;  %v416_v60 = vpop.f32.mrf.mxu0 }
  0xfb   :  { %v544_v61 = vpop.f32.mrf.mxu1  ;;  %739 = vst.msk [vmem:[%s1575_s4 + $0xa8] sm:$0xff] %vm717_vm2, %v674_v56  ;;  %v679_v62 = vadd.f32 %v1185_v36, %v608_v58  ;;  %v606_v0 = vmul.f32 %v1180_v34, %v416_v60 }
  0xfc   :  { %771 = vst.msk [vmem:[%s1575_s4 + $0x1a8] sm:$0xff] %vm717_vm2, %v706_v57  ;;  %v711_v63 = vadd.f32 %v1185_v36, %v640_v59  ;;  %v638_v1 = vmul.f32 %v1180_v34, %v544_v61  ;;  %v883_v2 = vpop.f32.mrf.mxu0 }
  0xfd   :  { %v915_v3 = vpop.f32.mrf.mxu1  ;;  %744 = vst.msk [vmem:[%s1575_s4 + $0xd0] sm:$0xff] %vm717_vm2, %v679_v62  ;;  %v677_v4 = vadd.f32 %v1185_v36, %v606_v0  ;;  %v609_v6 = vmul.f32 %v883_v2, %v1180_v34 }
  0xfe   :  { %776 = vst.msk [vmem:[%s1575_s4 + $0x1d0] sm:$0xff] %vm717_vm2, %v711_v63  ;;  %v709_v5 = vadd.f32 %v1185_v36, %v638_v1  ;;  %v641_v7 = vmul.f32 %v915_v3, %v1180_v34  ;;  %v419_v8 = vpop.f32.mrf.mxu0 }
  0xff   :  { %v547_v9 = vpop.f32.mrf.mxu1  ;;  %742 = vst.msk [vmem:[%s1575_s4 + $0xc0] sm:$0xff] %vm717_vm2, %v677_v4  ;;  %v680_v10 = vadd.f32 %v1185_v36, %v609_v6  ;;  %v607_v12 = vmul.f32 %v1180_v34, %v419_v8 }
 0x100   :  { %774 = vst.msk [vmem:[%s1575_s4 + $0x1c0] sm:$0xff] %vm717_vm2, %v709_v5  ;;  %v712_v11 = vadd.f32 %v1185_v36, %v641_v7  ;;  %v639_v13 = vmul.f32 %v1180_v34, %v547_v9  ;;  %v886_v14 = vpop.f32.mrf.mxu0 }
 0x101   :  { %v918_v15 = vpop.f32.mrf.mxu1  ;;  %745 = vst.msk [vmem:[%s1575_s4 + $0xd8] sm:$0xff] %vm717_vm2, %v680_v10  ;;  %v678_v16 = vadd.f32 %v1185_v36, %v607_v12  ;;  %v612_v18 = vmul.f32 %v886_v14, %v1180_v34 }
 0x102   :  { %777 = vst.msk [vmem:[%s1575_s4 + $0x1d8] sm:$0xff] %vm717_vm2, %v712_v11  ;;  %v710_v17 = vadd.f32 %v1185_v36, %v639_v13  ;;  %v644_v19 = vmul.f32 %v918_v15, %v1180_v34  ;;  %v432_v20 = vpop.f32.mrf.mxu0 }
 0x103   :  { %v560_v21 = vpop.f32.mrf.mxu1  ;;  %743 = vst.msk [vmem:[%s1575_s4 + $0xc8] sm:$0xff] %vm717_vm2, %v678_v16  ;;  %v683_v22 = vadd.f32 %v1185_v36, %v612_v18  ;;  %v610_v24 = vmul.f32 %v1180_v34, %v432_v20 }
 0x104   :  { %775 = vst.msk [vmem:[%s1575_s4 + $0x1c8] sm:$0xff] %vm717_vm2, %v710_v17  ;;  %v715_v23 = vadd.f32 %v1185_v36, %v644_v19  ;;  %v642_v25 = vmul.f32 %v1180_v34, %v560_v21  ;;  %v887_v26 = vpop.f32.mrf.mxu0 }
 0x105   :  { %v919_v27 = vpop.f32.mrf.mxu1  ;;  %748 = vst.msk [vmem:[%s1575_s4 + $0xf0] sm:$0xff] %vm717_vm2, %v683_v22  ;;  %v681_v28 = vadd.f32 %v1185_v36, %v610_v24  ;;  %v613_v30 = vmul.f32 %v887_v26, %v1180_v34 }
 0x106   :  { %780 = vst.msk [vmem:[%s1575_s4 + $0x1f0] sm:$0xff] %vm717_vm2, %v715_v23  ;;  %v713_v29 = vadd.f32 %v1185_v36, %v642_v25  ;;  %v645_v31 = vmul.f32 %v919_v27, %v1180_v34  ;;  %v435_v32 = vpop.f32.mrf.mxu0 }
 0x107   :  { %v563_v33 = vpop.f32.mrf.mxu1  ;;  %746 = vst.msk [vmem:[%s1575_s4 + $0xe0] sm:$0xff] %vm717_vm2, %v681_v28  ;;  %v684_v35 = vadd.f32 %v1185_v36, %v613_v30  ;;  %v611_v38 = vmul.f32 %v1180_v34, %v435_v32 }
 0x108   :  { %778 = vst.msk [vmem:[%s1575_s4 + $0x1e0] sm:$0xff] %vm717_vm2, %v713_v29  ;;  %v716_v37 = vadd.f32 %v1185_v36, %v645_v31  ;;  %v643_v39 = vmul.f32 %v1180_v34, %v563_v33 }
 0x109   :  { %749 = vst.msk [vmem:[%s1575_s4 + $0xf8] sm:$0xff] %vm717_vm2, %v684_v35  ;;  %v682_v40 = vadd.f32 %v1185_v36, %v611_v38 }
 0x10a   :  { %781 = vst.msk [vmem:[%s1575_s4 + $0x1f8] sm:$0xff] %vm717_vm2, %v716_v37  ;;  %v714_v41 = vadd.f32 %v1185_v36, %v643_v39 }
 0x10b   :  { %747 = vst.msk [vmem:[%s1575_s4 + $0xe8] sm:$0xff] %vm717_vm2, %v682_v40 }
 0x10c   :  { %779 = vst.msk [vmem:[%s1575_s4 + $0x1e8] sm:$0xff] %vm717_vm2, %v714_v41 }

// kernel: _lambda_.13
= control target key start
LH: loop header
LB: loop body
LE: loop exit
PB: predicated region body
PF: predicated region fallthrough
CT: control target
= control target key end

     0   :  { %v624_v0 = vmov 0.0   ;;  %vm625_vm0 = vmmov 0   ;;  %vm91_vm1 = vcmask 523264   ;;  %vm54_vm2 = vsmask.f32 7424  ;;  %s789_s1 = inlined_call_operand.vmem [shape: bf16[3,64,64], index: 1, kind: input, shape index: {}]   ;;  %s790_s0 = inlined_call_operand.vmem [shape: f32[2,18,64], index: 0, kind: input, shape index: {}]   ;;  %s791_s2 = inlined_call_operand.vmem [shape: f32[1,64], index: 2, kind: input, shape index: {}]   ;;  %s792_s3 = inlined_call_operand.vmem [shape: f32[1,64], index: 3, kind: input, shape index: {}]   ;;  %s793_s4 = inlined_call_operand.vmem [shape: f32[2,16,64], index: 4, kind: output, shape index: {}]  }
   0x1   :  { %538 = vmatprep.subr.bf16.mxu0 %v624_v0  ;;  %550 = vmatprep.subr.bf16.mxu1 %v624_v0  ;;  %v612_v1 = vld [vmem:[%s789_s1 + $0x38] sm:$0xff]   ;;  %v614_v3 = vld [vmem:[%s789_s1 + $0x30] sm:$0xff]   ;;  %v616_v5 = vld [vmem:[%s789_s1 + $0x28] sm:$0xff]   ;;  %vm205_vm3 = vcmask 1046528  }
   0x2   :  { %v659_v2 = vld [vmem:[%s789_s1 + $0x18] sm:$0xff]   ;;  %546 = vmatprep.mubr.msk.bf16.mxu0 %vm625_vm0, %v624_v0  ;;  %558 = vmatprep.mubr.msk.bf16.mxu1 %vm625_vm0, %v624_v0  ;;  %v673_v4 = vld [vmem:[%s789_s1 + $0x10] sm:$0xff]   ;;  %v684_v6 = vld [vmem:[%s789_s1 + $0x8] sm:$0xff]  }
   0x3   :  { %539 = vmatpush3.bf16.msra.mxu0 %v612_v1  ;;  %551 = vmatpush3.bf16.msra.mxu1 %v659_v2  ;;  %v46_v7 = vld [vmem:[%s790_s0] sm:$0xff]  ;;  %v47_v8 = vld [vmem:[%s790_s0 + $0x8] sm:$0xff]  ;;  %v48_v9 = vld [vmem:[%s790_s0 + $0x10] sm:$0x3] }
   0x4   :  { %540 = vmatprep.subr.bf16.mxu0 %v624_v0  ;;  %552 = vmatprep.subr.bf16.mxu1 %v624_v0  ;;  %v618_v10 = vld [vmem:[%s789_s1 + $0x20] sm:$0xff]   ;;  %v49_v11 = vmax.f32 %v46_v7, 0.0  ;;  %v50_v12 = vmax.f32 %v47_v8, 0.0  ;;  %v51_v13 = vmax.f32 %v48_v9, 0.0  ;;  %v500_v20 = vld [vmem:[%s790_s0 + $0x18] sm:$0xff]  ;;  %v621_v34 = vld [vmem:[%s789_s1 + $0x50] sm:$0xff]  }
   0x5   :  { %v704_v14 = vld [vmem:[%s789_s1] sm:$0xff]   ;;  %v502_v22 = vld [vmem:[%s790_s0 + $0x28] sm:$0x3]  ;;  %v301_v23 = vmax.f32 %v500_v20, 0.0  ;;  %v620_v29 = vld [vmem:[%s789_s1 + $0x58] sm:$0xff]  }
   0x6   :  { %v52_v15 = vpack.c.bf16 %v50_v12, %v49_v11  ;;  %v53_v16 = vpack.c.bf16 %v51_v13, %v51_v13  ;;  %v501_v21 = vld [vmem:[%s790_s0 + $0x20] sm:$0xff]  ;;  %v303_v27 = vmax.f32 %v502_v22, 0.0  ;;  %v622_v38 = vld [vmem:[%s789_s1 + $0x48] sm:$0xff]  }
   0x7   :  { %541 = vmatpush3.bf16.msra.mxu0 %v614_v3  ;;  %553 = vmatpush3.bf16.msra.mxu1 %v673_v4  ;;  %v302_v26 = vmax.f32 %v501_v21, 0.0  ;;  %v623_v41 = vld [vmem:[%s789_s1 + $0x40] sm:$0xff]  }
   0x8   :  { %542 = vmatprep.subr.bf16.mxu0 %v624_v0  ;;  %554 = vmatprep.subr.bf16.mxu1 %v624_v0  ;;  %v56_v17 = vshrl.u32 %v52_v15, 16  ;;  %v58_v18 = vshll.u32 %v52_v15, 16  ;;  %v63_v19 = vshll.u32 %v53_v16, 16  ;;  %v305_v32 = vpack.c.bf16 %v303_v27, %v303_v27  ;;  %v498_v59 = vld [vmem:[%s791_s2] ss:$0 sm:$0xff] }
   0x9   :  { %v304_v30 = vpack.c.bf16 %v302_v26, %v301_v23  ;;  %v206_v42 = vrot.slane %v52_v15, 1  ;;  %v207_v43 = vrot.slane %v53_v16, 1  ;;  %v499_v63 = vld [vmem:[%s792_s3] ss:$0 sm:$0xff] }
   0xa   :  { %v60_v24 = vrot.slane %v58_v18, 1  ;;  %v65_v25 = vrot.slane %v63_v19, 1  ;;  %v314_v37 = vshll.u32 %v305_v32, 16  ;;  %v408_v47 = vrot.slane %v305_v32, 1 }
   0xb   :  { %543 = vmatpush3.bf16.msra.mxu0 %v616_v5  ;;  %555 = vmatpush3.bf16.msra.mxu1 %v684_v6  ;;  %v309_v33 = vshll.u32 %v304_v30, 16  ;;  %v307_v35 = vshrl.u32 %v304_v30, 16  ;;  %v208_v45 = vsel %vm205_vm3, %v206_v42, %v207_v43  ;;  %v407_v46 = vrot.slane %v304_v30, 1 }
   0xc   :  { %544 = vmatprep.subr.bf16.mxu0 %v624_v0  ;;  %556 = vmatprep.subr.bf16.mxu1 %v624_v0  ;;  %v61_v28 = vor.u32 %v60_v24, %v56_v17  ;;  %v316_v40 = vrot.slane %v314_v37, 1 }
   0xd   :  { %v311_v36 = vrot.slane %v309_v33, 1  ;;  %v409_v48 = vsel %vm205_vm3, %v407_v46, %v408_v47 }
   0xe   :  { %v66_v31 = vsel %vm54_vm2, %v61_v28, %v65_v25 }
   0xf   :  { %545 = vmatpush3.bf16.msra.mxu0 %v618_v10  ;;  %557 = vmatpush3.bf16.msra.mxu1 %v704_v14  ;;  %v312_v39 = vor.u32 %v311_v36, %v307_v35 }
  0x10   :  { %562 = vmatprep.subr.bf16.mxu0 %v624_v0  ;;  %574 = vmatprep.subr.bf16.mxu1 %v624_v0 }
  0x11   :  { %v317_v44 = vsel %vm54_vm2, %v312_v39, %v316_v40 }
  0x12   :  { %559 = vmatmul.mubr.msk.bf16.vlgmr.msra.gmra.mxu1 %vm91_vm1, %v52_v15  ;;  %547 = vmatmul.mubr.msk.bf16.vlgmr.msra.gmra.mxu0 %vm91_vm1, %v66_v31 }
  0x13   :  { %575 = vmatpush3.bf16.msra.mxu1 %v612_v1  ;;  %582 = vmatprep.mubr.msk.bf16.mxu1 %vm625_vm0, %v624_v0 }
  0x14   :  { %576 = vmatprep.subr.bf16.mxu1 %v624_v0  ;;  %563 = vmatpush3.bf16.msra.mxu0 %v620_v29 }
  0x15   :  { %570 = vmatprep.mubr.msk.bf16.mxu0 %vm625_vm0, %v624_v0  ;;  %564 = vmatprep.subr.bf16.mxu0 %v624_v0 }
  0x17   :  { %577 = vmatpush3.bf16.msra.mxu1 %v614_v3 }
  0x18   :  { %578 = vmatprep.subr.bf16.mxu1 %v624_v0  ;;  %565 = vmatpush3.bf16.msra.mxu0 %v621_v34 }
  0x19   :  { %566 = vmatprep.subr.bf16.mxu0 %v624_v0 }
  0x1b   :  { %579 = vmatpush3.bf16.msra.mxu1 %v616_v5 }
  0x1c   :  { %580 = vmatprep.subr.bf16.mxu1 %v624_v0  ;;  %567 = vmatpush3.bf16.msra.mxu0 %v622_v38 }
  0x1d   :  { %568 = vmatprep.subr.bf16.mxu0 %v624_v0 }
  0x1f   :  { %581 = vmatpush3.bf16.msra.mxu1 %v618_v10 }
  0x20   :  { %598 = vmatprep.subr.bf16.mxu1 %v624_v0  ;;  %569 = vmatpush3.bf16.msra.mxu0 %v623_v41 }
  0x21   :  { %586 = vmatprep.subr.bf16.mxu0 %v624_v0 }
  0x22   :  { %583 = vmatmul.mubr.msk.bf16.vlgmr.msra.gmra.mxu1 %vm91_vm1, %v317_v44 }
  0x23   :  { %599 = vmatpush3.bf16.msra.mxu1 %v620_v29  ;;  %606 = vmatprep.mubr.msk.bf16.mxu1 %vm625_vm0, %v624_v0 }
  0x24   :  { %571 = vmatmul.mubr.msk.bf16.vlgmr.msra.gmra.mxu0 %vm91_vm1, %v208_v45  ;;  %600 = vmatprep.subr.bf16.mxu1 %v624_v0 }
  0x25   :  { %587 = vmatpush3.bf16.msra.mxu0 %v659_v2  ;;  %594 = vmatprep.mubr.msk.bf16.mxu0 %vm625_vm0, %v624_v0 }
  0x26   :  { %588 = vmatprep.subr.bf16.mxu0 %v624_v0 }
  0x27   :  { %601 = vmatpush3.bf16.msra.mxu1 %v621_v34 }
  0x28   :  { %602 = vmatprep.subr.bf16.mxu1 %v624_v0 }
  0x29   :  { %589 = vmatpush3.bf16.msra.mxu0 %v673_v4 }
  0x2a   :  { %590 = vmatprep.subr.bf16.mxu0 %v624_v0 }
  0x2b   :  { %603 = vmatpush3.bf16.msra.mxu1 %v622_v38 }
  0x2c   :  { %604 = vmatprep.subr.bf16.mxu1 %v624_v0 }
  0x2d   :  { %591 = vmatpush3.bf16.msra.mxu0 %v684_v6 }
  0x2e   :  { %592 = vmatprep.subr.bf16.mxu0 %v624_v0 }
  0x2f   :  { %605 = vmatpush3.bf16.msra.mxu1 %v623_v41 }
  0x31   :  { %593 = vmatpush3.bf16.msra.mxu0 %v704_v14 }
  0x32   :  { %607 = vmatmul.mubr.msk.bf16.vlgmr.msra.gmra.mxu1 %vm91_vm1, %v409_v48 }
  0x34   :  { %595 = vmatmul.mubr.msk.bf16.vlgmr.msra.gmra.mxu0 %vm91_vm1, %v304_v30 }
  0xd2   :  { %v196_v49 = vpop.f32.mrf.mxu1  ;;  %v129_v50 = vpop.f32.mrf.mxu0 }
  0xd3   :  { %v197_v58 = vadd.f32 %v196_v49, %v129_v50 }
  0xd4   :  { %v560_v51 = vpop.f32.mrf.mxu1  ;;  %v548_v52 = vpop.f32.mrf.mxu0 }
  0xd6   :  { %v199_v53 = vpop.f32.mrf.mxu1  ;;  %v132_v54 = vpop.f32.mrf.mxu0 }
  0xd7   :  { %v200_v2 = vadd.f32 %v199_v53, %v132_v54 }
  0xd8   :  { %v561_v55 = vpop.f32.mrf.mxu1  ;;  %v549_v56 = vpop.f32.mrf.mxu0 }
  0xe2   :  { %v355_v57 = vpop.f32.mrf.mxu1 }
  0xe4   :  { %v270_v60 = vpop.f32.mrf.mxu0  ;;  %v584_v61 = vpop.f32.mrf.mxu1 }
  0xe5   :  { %v277_v62 = vadd.f32 %v270_v60, %v197_v58 }
  0xe6   :  { %v572_v0 = vpop.f32.mrf.mxu0  ;;  %v358_v1 = vpop.f32.mrf.mxu1 }
  0xe7   :  { %v285_v3 = vmul.f32 %v498_v59, %v277_v62 }
  0xe8   :  { %v273_v4 = vpop.f32.mrf.mxu0  ;;  %v585_v5 = vpop.f32.mrf.mxu1 }
  0xe9   :  { %v293_v6 = vadd.f32 %v499_v63, %v285_v3  ;;  %v278_v7 = vadd.f32 %v273_v4, %v200_v2 }
  0xea   :  { %v573_v8 = vpop.f32.mrf.mxu0 }
  0xeb   :  { %295 = vst.msk [vmem:[%s793_s4] sm:$0xff] %vm91_vm1, %v293_v6  ;;  %v286_v9 = vmul.f32 %v498_v59, %v278_v7 }
  0xed   :  { %v294_v10 = vadd.f32 %v499_v63, %v286_v9 }
  0xef   :  { %296 = vst.msk [vmem:[%s793_s4 + $0x8] sm:$0xff] %vm91_vm1, %v294_v10 }
  0xf2   :  { %v447_v11 = vpop.f32.mrf.mxu1 }
  0xf4   :  { %v398_v12 = vpop.f32.mrf.mxu0  ;;  %v608_v13 = vpop.f32.mrf.mxu1 }
  0xf5   :  { %v399_v14 = vadd.f32 %v398_v12, %v355_v57 }
  0xf6   :  { %v596_v15 = vpop.f32.mrf.mxu0  ;;  %v450_v16 = vpop.f32.mrf.mxu1 }
  0xf7   :  { %v454_v17 = vadd.f32 %v447_v11, %v399_v14 }
  0xf8   :  { %v401_v18 = vpop.f32.mrf.mxu0  ;;  %v609_v19 = vpop.f32.mrf.mxu1 }
  0xf9   :  { %v456_v20 = vmul.f32 %v498_v59, %v454_v17  ;;  %v402_v21 = vadd.f32 %v401_v18, %v358_v1 }
  0xfa   :  { %v597_v22 = vpop.f32.mrf.mxu0 }
  0xfb   :  { %v458_v23 = vadd.f32 %v499_v63, %v456_v20  ;;  %v455_v24 = vadd.f32 %v450_v16, %v402_v21 }
  0xfd   :  { %506 = vst.msk [vmem:[%s793_s4 + $0x10] sm:$0xff] %vm91_vm1, %v458_v23  ;;  %v457_v25 = vmul.f32 %v498_v59, %v455_v24 }
  0xff   :  { %v459_v26 = vadd.f32 %v499_v63, %v457_v25 }
 0x101   :  { %507 = vst.msk [vmem:[%s793_s4 + $0x18] sm:$0xff] %vm91_vm1, %v459_v26 }

// kernel: _lambda_.14
= control target key start
LH: loop header
LB: loop body
LE: loop exit
PB: predicated region body
PF: predicated region fallthrough
CT: control target
= control target key end

     0   :  { %v638_v0 = vmov 0.0   ;;  %vm639_vm0 = vmmov 0   ;;  %vm94_vm1 = vcmask 523264   ;;  %vm57_vm2 = vsmask.f32 7424  ;;  %s820_s1 = inlined_call_operand.vmem [shape: bf16[3,64,64], index: 1, kind: input, shape index: {}]   ;;  %s821_s0 = inlined_call_operand.vmem [shape: f32[2,18,64], index: 0, kind: input, shape index: {}]   ;;  %s822_s2 = inlined_call_operand.vmem [shape: f32[1,64], index: 2, kind: input, shape index: {}]   ;;  %s823_s3 = inlined_call_operand.vmem [shape: f32[1,64], index: 3, kind: input, shape index: {}]   ;;  %s824_s4 = inlined_call_operand.vmem [shape: f32[2,16,64], index: 4, kind: input, shape index: {}]   ;;  %s825_s5 = inlined_call_operand.vmem [shape: f32[2,16,64], index: 5, kind: output, shape index: {}]  }
   0x1   :  { %552 = vmatprep.subr.bf16.mxu0 %v638_v0  ;;  %564 = vmatprep.subr.bf16.mxu1 %v638_v0  ;;  %v626_v1 = vld [vmem:[%s820_s1 + $0x38] sm:$0xff]   ;;  %v628_v3 = vld [vmem:[%s820_s1 + $0x30] sm:$0xff]   ;;  %v630_v5 = vld [vmem:[%s820_s1 + $0x28] sm:$0xff]   ;;  %vm208_vm3 = vcmask 1046528  }
   0x2   :  { %v678_v2 = vld [vmem:[%s820_s1 + $0x18] sm:$0xff]   ;;  %560 = vmatprep.mubr.msk.bf16.mxu0 %vm639_vm0, %v638_v0  ;;  %572 = vmatprep.mubr.msk.bf16.mxu1 %vm639_vm0, %v638_v0  ;;  %v692_v4 = vld [vmem:[%s820_s1 + $0x10] sm:$0xff]   ;;  %v703_v6 = vld [vmem:[%s820_s1 + $0x8] sm:$0xff]  }
   0x3   :  { %553 = vmatpush3.bf16.msra.mxu0 %v626_v1  ;;  %565 = vmatpush3.bf16.msra.mxu1 %v678_v2  ;;  %v49_v7 = vld [vmem:[%s821_s0] sm:$0xff]  ;;  %v50_v8 = vld [vmem:[%s821_s0 + $0x8] sm:$0xff]  ;;  %v51_v9 = vld [vmem:[%s821_s0 + $0x10] sm:$0x3] }
   0x4   :  { %554 = vmatprep.subr.bf16.mxu0 %v638_v0  ;;  %566 = vmatprep.subr.bf16.mxu1 %v638_v0  ;;  %v632_v10 = vld [vmem:[%s820_s1 + $0x20] sm:$0xff]   ;;  %v52_v11 = vmax.f32 %v49_v7, 0.0  ;;  %v53_v12 = vmax.f32 %v50_v8, 0.0  ;;  %v54_v13 = vmax.f32 %v51_v9, 0.0  ;;  %v512_v20 = vld [vmem:[%s821_s0 + $0x18] sm:$0xff]  ;;  %v635_v34 = vld [vmem:[%s820_s1 + $0x50] sm:$0xff]  }
   0x5   :  { %v723_v14 = vld [vmem:[%s820_s1] sm:$0xff]   ;;  %v514_v22 = vld [vmem:[%s821_s0 + $0x28] sm:$0x3]  ;;  %v308_v23 = vmax.f32 %v512_v20, 0.0  ;;  %v634_v29 = vld [vmem:[%s820_s1 + $0x58] sm:$0xff]  }
   0x6   :  { %v55_v15 = vpack.c.bf16 %v53_v12, %v52_v11  ;;  %v56_v16 = vpack.c.bf16 %v54_v13, %v54_v13  ;;  %v513_v21 = vld [vmem:[%s821_s0 + $0x20] sm:$0xff]  ;;  %v310_v27 = vmax.f32 %v514_v22, 0.0  ;;  %v636_v38 = vld [vmem:[%s820_s1 + $0x48] sm:$0xff]  }
   0x7   :  { %555 = vmatpush3.bf16.msra.mxu0 %v628_v3  ;;  %567 = vmatpush3.bf16.msra.mxu1 %v692_v4  ;;  %v309_v26 = vmax.f32 %v513_v21, 0.0  ;;  %v637_v41 = vld [vmem:[%s820_s1 + $0x40] sm:$0xff]   ;;  %v299_v12 = vld [vmem:[%s824_s4 + $0x8] sm:$0xff] }
   0x8   :  { %556 = vmatprep.subr.bf16.mxu0 %v638_v0  ;;  %568 = vmatprep.subr.bf16.mxu1 %v638_v0  ;;  %v59_v17 = vshrl.u32 %v55_v15, 16  ;;  %v61_v18 = vshll.u32 %v55_v15, 16  ;;  %v66_v19 = vshll.u32 %v56_v16, 16  ;;  %v312_v32 = vpack.c.bf16 %v310_v27, %v310_v27  ;;  %v510_v59 = vld [vmem:[%s822_s2] ss:$0 sm:$0xff] }
   0x9   :  { %v311_v30 = vpack.c.bf16 %v309_v26, %v308_v23  ;;  %v209_v42 = vrot.slane %v55_v15, 1  ;;  %v210_v43 = vrot.slane %v56_v16, 1  ;;  %v511_v63 = vld [vmem:[%s823_s3] ss:$0 sm:$0xff]  ;;  %v518_v26 = vld [vmem:[%s824_s4 + $0x10] sm:$0xff] }
   0xa   :  { %v63_v24 = vrot.slane %v61_v18, 1  ;;  %v68_v25 = vrot.slane %v66_v19, 1  ;;  %v321_v37 = vshll.u32 %v312_v32, 16  ;;  %v415_v47 = vrot.slane %v312_v32, 1  ;;  %v519_v32 = vld [vmem:[%s824_s4 + $0x18] sm:$0xff] }
   0xb   :  { %557 = vmatpush3.bf16.msra.mxu0 %v630_v5  ;;  %569 = vmatpush3.bf16.msra.mxu1 %v703_v6  ;;  %v316_v33 = vshll.u32 %v311_v30, 16  ;;  %v314_v35 = vshrl.u32 %v311_v30, 16  ;;  %v211_v45 = vsel %vm208_vm3, %v209_v42, %v210_v43  ;;  %v414_v46 = vrot.slane %v311_v30, 1 }
   0xc   :  { %558 = vmatprep.subr.bf16.mxu0 %v638_v0  ;;  %570 = vmatprep.subr.bf16.mxu1 %v638_v0  ;;  %v64_v28 = vor.u32 %v63_v24, %v59_v17  ;;  %v323_v40 = vrot.slane %v321_v37, 1 }
   0xd   :  { %v318_v36 = vrot.slane %v316_v33, 1  ;;  %v416_v48 = vsel %vm208_vm3, %v414_v46, %v415_v47 }
   0xe   :  { %v69_v31 = vsel %vm57_vm2, %v64_v28, %v68_v25 }
   0xf   :  { %559 = vmatpush3.bf16.msra.mxu0 %v632_v10  ;;  %571 = vmatpush3.bf16.msra.mxu1 %v723_v14  ;;  %v319_v39 = vor.u32 %v318_v36, %v314_v35 }
  0x10   :  { %576 = vmatprep.subr.bf16.mxu0 %v638_v0  ;;  %588 = vmatprep.subr.bf16.mxu1 %v638_v0 }
  0x11   :  { %v324_v44 = vsel %vm57_vm2, %v319_v39, %v323_v40 }
  0x12   :  { %573 = vmatmul.mubr.msk.bf16.vlgmr.msra.gmra.mxu1 %vm94_vm1, %v55_v15  ;;  %561 = vmatmul.mubr.msk.bf16.vlgmr.msra.gmra.mxu0 %vm94_vm1, %v69_v31 }
  0x13   :  { %589 = vmatpush3.bf16.msra.mxu1 %v626_v1  ;;  %596 = vmatprep.mubr.msk.bf16.mxu1 %vm639_vm0, %v638_v0 }
  0x14   :  { %590 = vmatprep.subr.bf16.mxu1 %v638_v0  ;;  %577 = vmatpush3.bf16.msra.mxu0 %v634_v29 }
  0x15   :  { %584 = vmatprep.mubr.msk.bf16.mxu0 %vm639_vm0, %v638_v0  ;;  %578 = vmatprep.subr.bf16.mxu0 %v638_v0 }
  0x17   :  { %591 = vmatpush3.bf16.msra.mxu1 %v628_v3 }
  0x18   :  { %592 = vmatprep.subr.bf16.mxu1 %v638_v0  ;;  %579 = vmatpush3.bf16.msra.mxu0 %v635_v34 }
  0x19   :  { %580 = vmatprep.subr.bf16.mxu0 %v638_v0 }
  0x1b   :  { %593 = vmatpush3.bf16.msra.mxu1 %v630_v5 }
  0x1c   :  { %594 = vmatprep.subr.bf16.mxu1 %v638_v0  ;;  %581 = vmatpush3.bf16.msra.mxu0 %v636_v38 }
  0x1d   :  { %582 = vmatprep.subr.bf16.mxu0 %v638_v0 }
  0x1f   :  { %595 = vmatpush3.bf16.msra.mxu1 %v632_v10 }
  0x20   :  { %612 = vmatprep.subr.bf16.mxu1 %v638_v0  ;;  %583 = vmatpush3.bf16.msra.mxu0 %v637_v41 }
  0x21   :  { %600 = vmatprep.subr.bf16.mxu0 %v638_v0 }
  0x22   :  { %597 = vmatmul.mubr.msk.bf16.vlgmr.msra.gmra.mxu1 %vm94_vm1, %v324_v44 }
  0x23   :  { %613 = vmatpush3.bf16.msra.mxu1 %v634_v29  ;;  %620 = vmatprep.mubr.msk.bf16.mxu1 %vm639_vm0, %v638_v0 }
  0x24   :  { %585 = vmatmul.mubr.msk.bf16.vlgmr.msra.gmra.mxu0 %vm94_vm1, %v211_v45  ;;  %614 = vmatprep.subr.bf16.mxu1 %v638_v0 }
  0x25   :  { %601 = vmatpush3.bf16.msra.mxu0 %v678_v2  ;;  %608 = vmatprep.mubr.msk.bf16.mxu0 %vm639_vm0, %v638_v0 }
  0x26   :  { %602 = vmatprep.subr.bf16.mxu0 %v638_v0 }
  0x27   :  { %615 = vmatpush3.bf16.msra.mxu1 %v635_v34 }
  0x28   :  { %616 = vmatprep.subr.bf16.mxu1 %v638_v0 }
  0x29   :  { %603 = vmatpush3.bf16.msra.mxu0 %v692_v4  ;;  %v298_v4 = vld [vmem:[%s824_s4] sm:$0xff] }
  0x2a   :  { %604 = vmatprep.subr.bf16.mxu0 %v638_v0 }
  0x2b   :  { %617 = vmatpush3.bf16.msra.mxu1 %v636_v38 }
  0x2c   :  { %618 = vmatprep.subr.bf16.mxu1 %v638_v0 }
  0x2d   :  { %605 = vmatpush3.bf16.msra.mxu0 %v703_v6 }
  0x2e   :  { %606 = vmatprep.subr.bf16.mxu0 %v638_v0 }
  0x2f   :  { %619 = vmatpush3.bf16.msra.mxu1 %v637_v41 }
  0x31   :  { %607 = vmatpush3.bf16.msra.mxu0 %v723_v14 }
  0x32   :  { %621 = vmatmul.mubr.msk.bf16.vlgmr.msra.gmra.mxu1 %vm94_vm1, %v416_v48 }
  0x34   :  { %609 = vmatmul.mubr.msk.bf16.vlgmr.msra.gmra.mxu0 %vm94_vm1, %v311_v30 }
  0xd2   :  { %v199_v49 = vpop.f32.mrf.mxu1  ;;  %v132_v50 = vpop.f32.mrf.mxu0 }
  0xd3   :  { %v200_v58 = vadd.f32 %v199_v49, %v132_v50 }
  0xd4   :  { %v574_v51 = vpop.f32.mrf.mxu1  ;;  %v562_v52 = vpop.f32.mrf.mxu0 }
  0xd6   :  { %v202_v53 = vpop.f32.mrf.mxu1  ;;  %v135_v54 = vpop.f32.mrf.mxu0 }
  0xd7   :  { %v203_v2 = vadd.f32 %v202_v53, %v135_v54 }
  0xd8   :  { %v575_v55 = vpop.f32.mrf.mxu1  ;;  %v563_v56 = vpop.f32.mrf.mxu0 }
  0xe2   :  { %v362_v57 = vpop.f32.mrf.mxu1 }
  0xe4   :  { %v273_v60 = vpop.f32.mrf.mxu0  ;;  %v598_v61 = vpop.f32.mrf.mxu1 }
  0xe5   :  { %v280_v62 = vadd.f32 %v273_v60, %v200_v58 }
  0xe6   :  { %v586_v0 = vpop.f32.mrf.mxu0  ;;  %v365_v1 = vpop.f32.mrf.mxu1 }
  0xe7   :  { %v288_v3 = vmul.f32 %v510_v59, %v280_v62 }
  0xe8   :  { %v276_v5 = vpop.f32.mrf.mxu0  ;;  %v599_v6 = vpop.f32.mrf.mxu1 }
  0xe9   :  { %v296_v7 = vadd.f32 %v511_v63, %v288_v3  ;;  %v281_v8 = vadd.f32 %v276_v5, %v203_v2 }
  0xea   :  { %v587_v9 = vpop.f32.mrf.mxu0 }
  0xeb   :  { %v300_v10 = vadd.f32 %v298_v4, %v296_v7  ;;  %v289_v11 = vmul.f32 %v510_v59, %v281_v8 }
  0xed   :  { %302 = vst.msk [vmem:[%s825_s5] sm:$0xff] %vm94_vm1, %v300_v10  ;;  %v297_v13 = vadd.f32 %v511_v63, %v289_v11 }
  0xef   :  { %v301_v14 = vadd.f32 %v299_v12, %v297_v13 }
  0xf1   :  { %303 = vst.msk [vmem:[%s825_s5 + $0x8] sm:$0xff] %vm94_vm1, %v301_v14 }
  0xf2   :  { %v454_v15 = vpop.f32.mrf.mxu1 }
  0xf4   :  { %v405_v16 = vpop.f32.mrf.mxu0  ;;  %v622_v17 = vpop.f32.mrf.mxu1 }
  0xf5   :  { %v406_v18 = vadd.f32 %v405_v16, %v362_v57 }
  0xf6   :  { %v610_v19 = vpop.f32.mrf.mxu0  ;;  %v457_v20 = vpop.f32.mrf.mxu1 }
  0xf7   :  { %v461_v21 = vadd.f32 %v454_v15, %v406_v18 }
  0xf8   :  { %v408_v22 = vpop.f32.mrf.mxu0  ;;  %v623_v23 = vpop.f32.mrf.mxu1 }
  0xf9   :  { %v463_v24 = vmul.f32 %v510_v59, %v461_v21  ;;  %v409_v25 = vadd.f32 %v408_v22, %v365_v1 }
  0xfa   :  { %v611_v27 = vpop.f32.mrf.mxu0 }
  0xfb   :  { %v465_v28 = vadd.f32 %v511_v63, %v463_v24  ;;  %v462_v29 = vadd.f32 %v457_v20, %v409_v25 }
  0xfd   :  { %v470_v30 = vadd.f32 %v518_v26, %v465_v28  ;;  %v464_v31 = vmul.f32 %v510_v59, %v462_v29 }
  0xff   :  { %520 = vst.msk [vmem:[%s825_s5 + $0x10] sm:$0xff] %vm94_vm1, %v470_v30  ;;  %v466_v33 = vadd.f32 %v511_v63, %v464_v31 }
 0x101   :  { %v471_v34 = vadd.f32 %v519_v32, %v466_v33 }
 0x103   :  { %521 = vst.msk [vmem:[%s825_s5 + $0x18] sm:$0xff] %vm94_vm1, %v471_v34 }

// kernel: _lambda_.17
= control target key start
LH: loop header
LB: loop body
LE: loop exit
PB: predicated region body
PF: predicated region fallthrough
CT: control target
= control target key end

     0   :  { %vm290_vm0 = vcmask 1045504   ;;  %vm193_vm1 = vcmask 228352   ;;  %vm725_vm2 = vcmask 130048   ;;  %s1589_s1 = inlined_call_operand.vmem [shape: bf16[28,16], index: 1, kind: input, shape index: {}]   ;;  %s1590_s0 = inlined_call_operand.vmem [shape: f32[512,28], index: 0, kind: input, shape index: {}]   ;;  %s1591_s2 = inlined_call_operand.vmem [shape: f32[1,16], index: 2, kind: input, shape index: {}]   ;;  %s1592_s3 = inlined_call_operand.vmem [shape: f32[1,16], index: 3, kind: input, shape index: {}]   ;;  %s1593_s4 = inlined_call_operand.vmem [shape: f32[512,16], index: 4, kind: output, shape index: {}]  }
   0x1   :  { %v938_v0 = vld [vmem:[%s1589_s1 + $0x8] sm:$0x3f]   ;;  %v939_v1 = vld [vmem:[%s1589_s1] sm:$0xff]   ;;  %v20_v10 = vld [vmem:[%s1590_s0 + $0x10] sm:$0xff] }
   0x2   :  { %936 = vmatprep.subr.msk.bf16.mxu0 %vm290_vm0, %v938_v0  ;;  %937 = vmatprep.subr.msk.bf16.mxu1 %vm290_vm0, %v938_v0  ;;  %v292_v2 = vsel %vm290_vm0, %v938_v0, 0  ;;  %v18_v3 = vld [vmem:[%s1590_s0] sm:$0xff]  ;;  %v19_v4 = vld [vmem:[%s1590_s0 + $0x8] sm:$0xff]  ;;  %v21_v11 = vld [vmem:[%s1590_s0 + $0x18] sm:$0xff]  ;;  %v84_v13 = vmax.f32 %v20_v10, 0.0 }
   0x3   :  { %v50_v5 = vld [vmem:[%s1590_s0 + $0x100] sm:$0xff]  ;;  %865 = vmatpush3.bf16.msra.mxu0 %v292_v2  ;;  %934 = vmatpush3.bf16.msra.mxu1 %v292_v2  ;;  %v82_v6 = vmax.f32 %v18_v3, 0.0  ;;  %v83_v7 = vmax.f32 %v19_v4, 0.0  ;;  %v51_v8 = vld [vmem:[%s1590_s0 + $0x108] sm:$0xff]  ;;  %v85_v14 = vmax.f32 %v21_v11, 0.0  ;;  %v52_v15 = vld [vmem:[%s1590_s0 + $0x110] sm:$0xff] }
   0x4   :  { %v114_v9 = vmax.f32 %v50_v5, 0.0  ;;  %866 = vmatprep.subr.bf16.mxu0 %v939_v1  ;;  %933 = vmatprep.subr.bf16.mxu1 %v939_v1  ;;  %v115_v12 = vmax.f32 %v51_v8, 0.0  ;;  %v53_v16 = vld [vmem:[%s1590_s0 + $0x118] sm:$0xff]  ;;  %v22_v17 = vld [vmem:[%s1590_s0 + $0x20] sm:$0xff]  ;;  %v116_v19 = vmax.f32 %v52_v15, 0.0  ;;  %v23_v21 = vld [vmem:[%s1590_s0 + $0x28] sm:$0xff] }
   0x5   :  { %v146_v18 = vpack.c.bf16 %v83_v7, %v82_v6  ;;  %v117_v20 = vmax.f32 %v53_v16, 0.0  ;;  %v86_v22 = vmax.f32 %v22_v17, 0.0  ;;  %v54_v23 = vld [vmem:[%s1590_s0 + $0x120] sm:$0xff]  ;;  %v55_v24 = vld [vmem:[%s1590_s0 + $0x128] sm:$0xff]  ;;  %v147_v26 = vpack.c.bf16 %v85_v14, %v84_v13  ;;  %v24_v29 = vld [vmem:[%s1590_s0 + $0x30] sm:$0xff] }
   0x6   :  { %v162_v25 = vpack.c.bf16 %v115_v12, %v114_v9  ;;  %v87_v27 = vmax.f32 %v23_v21, 0.0  ;;  %v118_v28 = vmax.f32 %v54_v23, 0.0  ;;  %v25_v30 = vld [vmem:[%s1590_s0 + $0x38] sm:$0xff]  ;;  %v119_v32 = vmax.f32 %v55_v24, 0.0  ;;  %v56_v33 = vld [vmem:[%s1590_s0 + $0x130] sm:$0xff]  ;;  %v26_v35 = vld [vmem:[%s1590_s0 + $0x40] sm:$0xff] }
   0x7   :  { %867 = vmatpush3.bf16.msra.mxu0 %v939_v1  ;;  %935 = vmatpush3.bf16.msra.mxu1 %v939_v1  ;;  %v163_v31 = vpack.c.bf16 %v117_v20, %v116_v19  ;;  %v57_v34 = vld [vmem:[%s1590_s0 + $0x138] sm:$0xff]  ;;  %v27_v37 = vld [vmem:[%s1590_s0 + $0x48] sm:$0xff]  ;;  %v58_v38 = vld [vmem:[%s1590_s0 + $0x140] sm:$0xff]  ;;  %v88_v41 = vmax.f32 %v24_v29, 0.0  ;;  %v89_v42 = vmax.f32 %v25_v30, 0.0  ;;  %v120_v43 = vmax.f32 %v56_v33, 0.0 }
   0x8   :  { %868 = vmatprep.mubr.msk.bf16.mxu0 %vm193_vm1, %v146_v18  ;;  %900 = vmatprep.mubr.msk.bf16.mxu1 %vm193_vm1, %v162_v25  ;;  %v148_v36 = vpack.c.bf16 %v87_v27, %v86_v22  ;;  %v59_v39 = vld [vmem:[%s1590_s0 + $0x148] sm:$0xff]  ;;  %v164_v40 = vpack.c.bf16 %v119_v32, %v118_v28  ;;  %v121_v44 = vmax.f32 %v57_v34, 0.0  ;;  %v90_v45 = vmax.f32 %v26_v35, 0.0  ;;  %v28_v51 = vld [vmem:[%s1590_s0 + $0x50] sm:$0xff]  ;;  %v29_v52 = vld [vmem:[%s1590_s0 + $0x58] sm:$0xff] }
   0x9   :  { %v91_v46 = vmax.f32 %v27_v37, 0.0  ;;  %v122_v47 = vmax.f32 %v58_v38, 0.0  ;;  %v123_v48 = vmax.f32 %v59_v39, 0.0  ;;  %v149_v49 = vpack.c.bf16 %v89_v42, %v88_v41  ;;  %v60_v55 = vld [vmem:[%s1590_s0 + $0x150] sm:$0xff]  ;;  %v61_v56 = vld [vmem:[%s1590_s0 + $0x158] sm:$0xff]  ;;  %v30_v57 = vld [vmem:[%s1590_s0 + $0x60] sm:$0xff] }
   0xa   :  { %869 = vmatmul.mubr.msk.bf16.vlgmr.msra.gmra.mxu0 %vm193_vm1, %v147_v26  ;;  %901 = vmatmul.mubr.msk.bf16.vlgmr.msra.gmra.mxu1 %vm193_vm1, %v163_v31  ;;  %v165_v50 = vpack.c.bf16 %v121_v44, %v120_v43  ;;  %v31_v58 = vld [vmem:[%s1590_s0 + $0x68] sm:$0xff]  ;;  %v62_v59 = vld [vmem:[%s1590_s0 + $0x160] sm:$0xff]  ;;  %v92_v61 = vmax.f32 %v28_v51, 0.0  ;;  %v93_v62 = vmax.f32 %v29_v52, 0.0  ;;  %v124_v63 = vmax.f32 %v60_v55, 0.0  ;;  %v32_v7 = vld [vmem:[%s1590_s0 + $0x70] sm:$0xff] }
   0xb   :  { %872 = vmatprep.mubr.msk.bf16.mxu0 %vm193_vm1, %v148_v36  ;;  %904 = vmatprep.mubr.msk.bf16.mxu1 %vm193_vm1, %v164_v40  ;;  %v150_v53 = vpack.c.bf16 %v91_v46, %v90_v45  ;;  %v166_v54 = vpack.c.bf16 %v123_v48, %v122_v47  ;;  %v63_v60 = vld [vmem:[%s1590_s0 + $0x168] sm:$0xff]  ;;  %v125_v0 = vmax.f32 %v61_v56, 0.0  ;;  %v94_v1 = vmax.f32 %v30_v57, 0.0  ;;  %v33_v8 = vld [vmem:[%s1590_s0 + $0x78] sm:$0xff]  ;;  %v64_v11 = vld [vmem:[%s1590_s0 + $0x170] sm:$0xff] }
   0xc   :  { %v95_v2 = vmax.f32 %v31_v58, 0.0  ;;  %v126_v3 = vmax.f32 %v62_v59, 0.0  ;;  %v127_v4 = vmax.f32 %v63_v60, 0.0  ;;  %v151_v5 = vpack.c.bf16 %v93_v62, %v92_v61  ;;  %v65_v12 = vld [vmem:[%s1590_s0 + $0x178] sm:$0xff]  ;;  %v34_v13 = vld [vmem:[%s1590_s0 + $0x80] sm:$0xff]  ;;  %v35_v14 = vld [vmem:[%s1590_s0 + $0x88] sm:$0xff] }
   0xd   :  { %v167_v6 = vpack.c.bf16 %v125_v0, %v124_v63  ;;  %v66_v15 = vld [vmem:[%s1590_s0 + $0x180] sm:$0xff]  ;;  %v67_v16 = vld [vmem:[%s1590_s0 + $0x188] sm:$0xff]  ;;  %v96_v17 = vmax.f32 %v32_v7, 0.0  ;;  %v97_v18 = vmax.f32 %v33_v8, 0.0  ;;  %v128_v19 = vmax.f32 %v64_v11, 0.0  ;;  %v36_v27 = vld [vmem:[%s1590_s0 + $0x90] sm:$0xff] }
   0xe   :  { %v152_v9 = vpack.c.bf16 %v95_v2, %v94_v1  ;;  %v168_v10 = vpack.c.bf16 %v127_v4, %v126_v3  ;;  %v129_v20 = vmax.f32 %v65_v12, 0.0  ;;  %v98_v21 = vmax.f32 %v34_v13, 0.0  ;;  %v37_v28 = vld [vmem:[%s1590_s0 + $0x98] sm:$0xff]  ;;  %v68_v31 = vld [vmem:[%s1590_s0 + $0x190] sm:$0xff]  ;;  %v38_v33 = vld [vmem:[%s1590_s0 + $0xa0] sm:$0xff] }
   0xf   :  { %v99_v22 = vmax.f32 %v35_v14, 0.0  ;;  %v130_v23 = vmax.f32 %v66_v15, 0.0  ;;  %v131_v24 = vmax.f32 %v67_v16, 0.0  ;;  %v153_v25 = vpack.c.bf16 %v97_v18, %v96_v17  ;;  %v69_v32 = vld [vmem:[%s1590_s0 + $0x198] sm:$0xff]  ;;  %v39_v34 = vld [vmem:[%s1590_s0 + $0xa8] sm:$0xff]  ;;  %v70_v35 = vld [vmem:[%s1590_s0 + $0x1a0] sm:$0xff] }
  0x10   :  { %v169_v26 = vpack.c.bf16 %v129_v20, %v128_v19  ;;  %v71_v36 = vld [vmem:[%s1590_s0 + $0x1a8] sm:$0xff]  ;;  %v100_v37 = vmax.f32 %v36_v27, 0.0  ;;  %v101_v38 = vmax.f32 %v37_v28, 0.0  ;;  %v132_v39 = vmax.f32 %v68_v31, 0.0  ;;  %v40_v47 = vld [vmem:[%s1590_s0 + $0xb0] sm:$0xff]  ;;  %v41_v48 = vld [vmem:[%s1590_s0 + $0xb8] sm:$0xff] }
  0x11   :  { %v154_v29 = vpack.c.bf16 %v99_v22, %v98_v21  ;;  %v170_v30 = vpack.c.bf16 %v131_v24, %v130_v23  ;;  %v133_v40 = vmax.f32 %v69_v32, 0.0  ;;  %v102_v41 = vmax.f32 %v38_v33, 0.0  ;;  %v72_v51 = vld [vmem:[%s1590_s0 + $0x1b0] sm:$0xff]  ;;  %v73_v52 = vld [vmem:[%s1590_s0 + $0x1b8] sm:$0xff]  ;;  %v74_v55 = vld [vmem:[%s1590_s0 + $0x1c0] sm:$0xff] }
  0x12   :  { %873 = vmatmul.mubr.msk.bf16.gmra.mxu0 %vm193_vm1, %v149_v49  ;;  %905 = vmatmul.mubr.msk.bf16.gmra.mxu1 %vm193_vm1, %v165_v50  ;;  %v103_v42 = vmax.f32 %v39_v34, 0.0  ;;  %v134_v43 = vmax.f32 %v70_v35, 0.0  ;;  %v135_v44 = vmax.f32 %v71_v36, 0.0  ;;  %v155_v45 = vpack.c.bf16 %v101_v38, %v100_v37  ;;  %v75_v56 = vld [vmem:[%s1590_s0 + $0x1c8] sm:$0xff]  ;;  %v44_v3 = vld [vmem:[%s1590_s0 + $0xd0] sm:$0xff]  ;;  %v45_v4 = vld [vmem:[%s1590_s0 + $0xd8] sm:$0xff] }
  0x13   :  { %876 = vmatprep.mubr.msk.bf16.mxu0 %vm193_vm1, %v150_v53  ;;  %908 = vmatprep.mubr.msk.bf16.mxu1 %vm193_vm1, %v166_v54  ;;  %v171_v46 = vpack.c.bf16 %v133_v40, %v132_v39  ;;  %v42_v53 = vld [vmem:[%s1590_s0 + $0xc0] sm:$0xff]  ;;  %v43_v54 = vld [vmem:[%s1590_s0 + $0xc8] sm:$0xff]  ;;  %v104_v57 = vmax.f32 %v40_v47, 0.0  ;;  %v105_v58 = vmax.f32 %v41_v48, 0.0  ;;  %v136_v59 = vmax.f32 %v72_v51, 0.0  ;;  %v76_v7 = vld [vmem:[%s1590_s0 + $0x1d0] sm:$0xff] }
  0x14   :  { %v156_v49 = vpack.c.bf16 %v103_v42, %v102_v41  ;;  %v172_v50 = vpack.c.bf16 %v135_v44, %v134_v43  ;;  %v137_v60 = vmax.f32 %v73_v52, 0.0  ;;  %v106_v61 = vmax.f32 %v42_v53, 0.0  ;;  %v77_v8 = vld [vmem:[%s1590_s0 + $0x1d8] sm:$0xff]  ;;  %v78_v11 = vld [vmem:[%s1590_s0 + $0x1e0] sm:$0xff]  ;;  %v79_v12 = vld [vmem:[%s1590_s0 + $0x1e8] sm:$0xff] }
  0x15   :  { %v107_v62 = vmax.f32 %v43_v54, 0.0  ;;  %v138_v63 = vmax.f32 %v74_v55, 0.0  ;;  %v139_v0 = vmax.f32 %v75_v56, 0.0  ;;  %v157_v1 = vpack.c.bf16 %v105_v58, %v104_v57  ;;  %v48_v23 = vld [vmem:[%s1590_s0 + $0xf0] sm:$0xff]  ;;  %v81_v28 = vld [vmem:[%s1590_s0 + $0x1f8] sm:$0xff] }
  0x16   :  { %v173_v2 = vpack.c.bf16 %v137_v60, %v136_v59  ;;  %v108_v13 = vmax.f32 %v44_v3, 0.0  ;;  %v109_v14 = vmax.f32 %v45_v4, 0.0  ;;  %v140_v15 = vmax.f32 %v76_v7, 0.0  ;;  %v80_v27 = vld [vmem:[%s1590_s0 + $0x1f0] sm:$0xff]  ;;  %v1198_v35 = vld [vmem:[%s1591_s2] ss:$0 sm:$0xff] }
  0x17   :  { %v141_v16 = vmax.f32 %v77_v8, 0.0  ;;  %v142_v19 = vmax.f32 %v78_v11, 0.0  ;;  %v143_v20 = vmax.f32 %v79_v12, 0.0  ;;  %v144_v31 = vmax.f32 %v80_v27, 0.0  ;;  %v1203_v37 = vld [vmem:[%s1592_s3] ss:$0 sm:$0xff] }
  0x18   :  { %v159_v21 = vpack.c.bf16 %v109_v14, %v108_v13  ;;  %v145_v32 = vmax.f32 %v81_v28, 0.0 }
  0x19   :  { %v175_v22 = vpack.c.bf16 %v141_v16, %v140_v15 }
  0x1a   :  { %877 = vmatmul.mubr.msk.bf16.gmra.mxu0 %vm193_vm1, %v151_v5  ;;  %909 = vmatmul.mubr.msk.bf16.gmra.mxu1 %vm193_vm1, %v167_v6  ;;  %v158_v5 = vpack.c.bf16 %v107_v62, %v106_v61  ;;  %v174_v6 = vpack.c.bf16 %v139_v0, %v138_v63  ;;  %v177_v34 = vpack.c.bf16 %v145_v32, %v144_v31 }
  0x1b   :  { %880 = vmatprep.mubr.msk.bf16.mxu0 %vm193_vm1, %v152_v9  ;;  %912 = vmatprep.mubr.msk.bf16.mxu1 %vm193_vm1, %v168_v10  ;;  %v46_v9 = vld [vmem:[%s1590_s0 + $0xe0] sm:$0xff]  ;;  %v47_v10 = vld [vmem:[%s1590_s0 + $0xe8] sm:$0xff] }
  0x1c   :  { %v110_v17 = vmax.f32 %v46_v9, 0.0  ;;  %v111_v18 = vmax.f32 %v47_v10, 0.0 }
  0x1e   :  { %v160_v24 = vpack.c.bf16 %v111_v18, %v110_v17 }
  0x22   :  { %881 = vmatmul.mubr.msk.bf16.gmra.mxu0 %vm193_vm1, %v153_v25  ;;  %913 = vmatmul.mubr.msk.bf16.gmra.mxu1 %vm193_vm1, %v169_v26  ;;  %v176_v25 = vpack.c.bf16 %v143_v20, %v142_v19  ;;  %v49_v26 = vld [vmem:[%s1590_s0 + $0xf8] sm:$0xff] }
  0x23   :  { %884 = vmatprep.mubr.msk.bf16.mxu0 %vm193_vm1, %v154_v29  ;;  %916 = vmatprep.mubr.msk.bf16.mxu1 %vm193_vm1, %v170_v30  ;;  %v112_v29 = vmax.f32 %v48_v23, 0.0  ;;  %v113_v30 = vmax.f32 %v49_v26, 0.0 }
  0x25   :  { %v161_v33 = vpack.c.bf16 %v113_v30, %v112_v29 }
  0x2a   :  { %885 = vmatmul.mubr.msk.bf16.gmra.mxu0 %vm193_vm1, %v155_v45  ;;  %917 = vmatmul.mubr.msk.bf16.gmra.mxu1 %vm193_vm1, %v171_v46 }
  0x2b   :  { %888 = vmatprep.mubr.msk.bf16.mxu0 %vm193_vm1, %v156_v49  ;;  %920 = vmatprep.mubr.msk.bf16.mxu1 %vm193_vm1, %v172_v50 }
  0x32   :  { %889 = vmatmul.mubr.msk.bf16.gmra.mxu0 %vm193_vm1, %v157_v1  ;;  %921 = vmatmul.mubr.msk.bf16.gmra.mxu1 %vm193_vm1, %v173_v2 }
  0x33   :  { %892 = vmatprep.mubr.msk.bf16.mxu0 %vm193_vm1, %v158_v5  ;;  %924 = vmatprep.mubr.msk.bf16.mxu1 %vm193_vm1, %v174_v6 }
  0x3a   :  { %893 = vmatmul.mubr.msk.bf16.gmra.mxu0 %vm193_vm1, %v159_v21  ;;  %925 = vmatmul.mubr.msk.bf16.gmra.mxu1 %vm193_vm1, %v175_v22 }
  0x3b   :  { %896 = vmatprep.mubr.msk.bf16.mxu0 %vm193_vm1, %v160_v24  ;;  %928 = vmatprep.mubr.msk.bf16.mxu1 %vm193_vm1, %v176_v25 }
  0x42   :  { %897 = vmatmul.mubr.msk.bf16.gmra.mxu0 %vm193_vm1, %v161_v33  ;;  %929 = vmatmul.mubr.msk.bf16.gmra.mxu1 %vm193_vm1, %v177_v34 }
  0xca   :  { %v870_v36 = vpop.f32.mrf.mxu0  ;;  %v902_v38 = vpop.f32.mrf.mxu1 }
  0xcb   :  { %v592_v39 = vmul.f32 %v870_v36, %v1198_v35  ;;  %v624_v40 = vmul.f32 %v902_v38, %v1198_v35 }
  0xcc   :  { %v328_v41 = vpop.f32.mrf.mxu0  ;;  %v456_v42 = vpop.f32.mrf.mxu1 }
  0xcd   :  { %v663_v43 = vadd.f32 %v1203_v37, %v592_v39  ;;  %v695_v44 = vadd.f32 %v1203_v37, %v624_v40  ;;  %v590_v45 = vmul.f32 %v1198_v35, %v328_v41  ;;  %v622_v46 = vmul.f32 %v1198_v35, %v456_v42 }
  0xce   :  { %v871_v47 = vpop.f32.mrf.mxu0  ;;  %v903_v48 = vpop.f32.mrf.mxu1 }
  0xcf   :  { %728 = vst.msk [vmem:[%s1593_s4 + $0x10] sm:$0xff] %vm725_vm2, %v663_v43  ;;  %760 = vst.msk [vmem:[%s1593_s4 + $0x110] sm:$0xff] %vm725_vm2, %v695_v44  ;;  %v661_v49 = vadd.f32 %v1203_v37, %v590_v45  ;;  %v693_v50 = vadd.f32 %v1203_v37, %v622_v46  ;;  %v593_v51 = vmul.f32 %v871_v47, %v1198_v35 }
  0xd0   :  { %v625_v52 = vmul.f32 %v903_v48, %v1198_v35  ;;  %v331_v53 = vpop.f32.mrf.mxu0  ;;  %v459_v54 = vpop.f32.mrf.mxu1 }
  0xd1   :  { %726 = vst.msk [vmem:[%s1593_s4] sm:$0xff] %vm725_vm2, %v661_v49  ;;  %758 = vst.msk [vmem:[%s1593_s4 + $0x100] sm:$0xff] %vm725_vm2, %v693_v50  ;;  %v664_v55 = vadd.f32 %v1203_v37, %v593_v51  ;;  %v591_v57 = vmul.f32 %v1198_v35, %v331_v53  ;;  %v623_v58 = vmul.f32 %v1198_v35, %v459_v54 }
  0xd2   :  { %v696_v56 = vadd.f32 %v1203_v37, %v625_v52  ;;  %v874_v59 = vpop.f32.mrf.mxu0  ;;  %v906_v60 = vpop.f32.mrf.mxu1 }
  0xd3   :  { %729 = vst.msk [vmem:[%s1593_s4 + $0x18] sm:$0xff] %vm725_vm2, %v664_v55  ;;  %v662_v61 = vadd.f32 %v1203_v37, %v591_v57  ;;  %v694_v62 = vadd.f32 %v1203_v37, %v623_v58  ;;  %v596_v63 = vmul.f32 %v874_v59, %v1198_v35  ;;  %v628_v0 = vmul.f32 %v906_v60, %v1198_v35 }
  0xd4   :  { %761 = vst.msk [vmem:[%s1593_s4 + $0x118] sm:$0xff] %vm725_vm2, %v696_v56  ;;  %v344_v1 = vpop.f32.mrf.mxu0  ;;  %v472_v2 = vpop.f32.mrf.mxu1 }
  0xd5   :  { %727 = vst.msk [vmem:[%s1593_s4 + $0x8] sm:$0xff] %vm725_vm2, %v662_v61  ;;  %759 = vst.msk [vmem:[%s1593_s4 + $0x108] sm:$0xff] %vm725_vm2, %v694_v62  ;;  %v667_v3 = vadd.f32 %v1203_v37, %v596_v63  ;;  %v699_v4 = vadd.f32 %v1203_v37, %v628_v0  ;;  %v594_v5 = vmul.f32 %v1198_v35, %v344_v1 }
  0xd6   :  { %v626_v6 = vmul.f32 %v1198_v35, %v472_v2  ;;  %v875_v7 = vpop.f32.mrf.mxu0  ;;  %v907_v8 = vpop.f32.mrf.mxu1 }
  0xd7   :  { %732 = vst.msk [vmem:[%s1593_s4 + $0x30] sm:$0xff] %vm725_vm2, %v667_v3  ;;  %764 = vst.msk [vmem:[%s1593_s4 + $0x130] sm:$0xff] %vm725_vm2, %v699_v4  ;;  %v665_v9 = vadd.f32 %v1203_v37, %v594_v5  ;;  %v597_v11 = vmul.f32 %v875_v7, %v1198_v35  ;;  %v629_v12 = vmul.f32 %v907_v8, %v1198_v35 }
  0xd8   :  { %v697_v10 = vadd.f32 %v1203_v37, %v626_v6  ;;  %v347_v13 = vpop.f32.mrf.mxu0  ;;  %v475_v14 = vpop.f32.mrf.mxu1 }
  0xd9   :  { %730 = vst.msk [vmem:[%s1593_s4 + $0x20] sm:$0xff] %vm725_vm2, %v665_v9  ;;  %v668_v15 = vadd.f32 %v1203_v37, %v597_v11  ;;  %v700_v16 = vadd.f32 %v1203_v37, %v629_v12  ;;  %v595_v17 = vmul.f32 %v1198_v35, %v347_v13  ;;  %v627_v18 = vmul.f32 %v1198_v35, %v475_v14 }
  0xda   :  { %762 = vst.msk [vmem:[%s1593_s4 + $0x120] sm:$0xff] %vm725_vm2, %v697_v10  ;;  %v878_v19 = vpop.f32.mrf.mxu0  ;;  %v910_v20 = vpop.f32.mrf.mxu1 }
  0xdb   :  { %733 = vst.msk [vmem:[%s1593_s4 + $0x38] sm:$0xff] %vm725_vm2, %v668_v15  ;;  %765 = vst.msk [vmem:[%s1593_s4 + $0x138] sm:$0xff] %vm725_vm2, %v700_v16  ;;  %v666_v21 = vadd.f32 %v1203_v37, %v595_v17  ;;  %v698_v22 = vadd.f32 %v1203_v37, %v627_v18  ;;  %v600_v23 = vmul.f32 %v878_v19, %v1198_v35 }
  0xdc   :  { %v632_v24 = vmul.f32 %v910_v20, %v1198_v35  ;;  %v360_v25 = vpop.f32.mrf.mxu0  ;;  %v488_v26 = vpop.f32.mrf.mxu1 }
  0xdd   :  { %731 = vst.msk [vmem:[%s1593_s4 + $0x28] sm:$0xff] %vm725_vm2, %v666_v21  ;;  %763 = vst.msk [vmem:[%s1593_s4 + $0x128] sm:$0xff] %vm725_vm2, %v698_v22  ;;  %v671_v27 = vadd.f32 %v1203_v37, %v600_v23  ;;  %v598_v29 = vmul.f32 %v1198_v35, %v360_v25  ;;  %v630_v30 = vmul.f32 %v1198_v35, %v488_v26 }
  0xde   :  { %v703_v28 = vadd.f32 %v1203_v37, %v632_v24  ;;  %v879_v31 = vpop.f32.mrf.mxu0  ;;  %v911_v32 = vpop.f32.mrf.mxu1 }
  0xdf   :  { %736 = vst.msk [vmem:[%s1593_s4 + $0x50] sm:$0xff] %vm725_vm2, %v671_v27  ;;  %v669_v33 = vadd.f32 %v1203_v37, %v598_v29  ;;  %v701_v34 = vadd.f32 %v1203_v37, %v630_v30  ;;  %v601_v36 = vmul.f32 %v879_v31, %v1198_v35  ;;  %v633_v38 = vmul.f32 %v911_v32, %v1198_v35 }
  0xe0   :  { %768 = vst.msk [vmem:[%s1593_s4 + $0x150] sm:$0xff] %vm725_vm2, %v703_v28  ;;  %v363_v39 = vpop.f32.mrf.mxu0  ;;  %v491_v40 = vpop.f32.mrf.mxu1 }
  0xe1   :  { %734 = vst.msk [vmem:[%s1593_s4 + $0x40] sm:$0xff] %vm725_vm2, %v669_v33  ;;  %766 = vst.msk [vmem:[%s1593_s4 + $0x140] sm:$0xff] %vm725_vm2, %v701_v34  ;;  %v672_v41 = vadd.f32 %v1203_v37, %v601_v36  ;;  %v704_v42 = vadd.f32 %v1203_v37, %v633_v38  ;;  %v599_v43 = vmul.f32 %v1198_v35, %v363_v39 }
  0xe2   :  { %v631_v44 = vmul.f32 %v1198_v35, %v491_v40  ;;  %v882_v45 = vpop.f32.mrf.mxu0  ;;  %v914_v46 = vpop.f32.mrf.mxu1 }
  0xe3   :  { %737 = vst.msk [vmem:[%s1593_s4 + $0x58] sm:$0xff] %vm725_vm2, %v672_v41  ;;  %769 = vst.msk [vmem:[%s1593_s4 + $0x158] sm:$0xff] %vm725_vm2, %v704_v42  ;;  %v670_v47 = vadd.f32 %v1203_v37, %v599_v43  ;;  %v604_v49 = vmul.f32 %v882_v45, %v1198_v35  ;;  %v636_v50 = vmul.f32 %v914_v46, %v1198_v35 }
  0xe4   :  { %v702_v48 = vadd.f32 %v1203_v37, %v631_v44  ;;  %v376_v51 = vpop.f32.mrf.mxu0  ;;  %v504_v52 = vpop.f32.mrf.mxu1 }
  0xe5   :  { %735 = vst.msk [vmem:[%s1593_s4 + $0x48] sm:$0xff] %vm725_vm2, %v670_v47  ;;  %v675_v53 = vadd.f32 %v1203_v37, %v604_v49  ;;  %v707_v54 = vadd.f32 %v1203_v37, %v636_v50  ;;  %v602_v55 = vmul.f32 %v1198_v35, %v376_v51  ;;  %v634_v56 = vmul.f32 %v1198_v35, %v504_v52 }
  0xe6   :  { %767 = vst.msk [vmem:[%s1593_s4 + $0x148] sm:$0xff] %vm725_vm2, %v702_v48  ;;  %v883_v57 = vpop.f32.mrf.mxu0  ;;  %v915_v58 = vpop.f32.mrf.mxu1 }
  0xe7   :  { %740 = vst.msk [vmem:[%s1593_s4 + $0x70] sm:$0xff] %vm725_vm2, %v675_v53  ;;  %772 = vst.msk [vmem:[%s1593_s4 + $0x170] sm:$0xff] %vm725_vm2, %v707_v54  ;;  %v673_v59 = vadd.f32 %v1203_v37, %v602_v55  ;;  %v705_v60 = vadd.f32 %v1203_v37, %v634_v56  ;;  %v605_v61 = vmul.f32 %v883_v57, %v1198_v35 }
  0xe8   :  { %v637_v62 = vmul.f32 %v915_v58, %v1198_v35  ;;  %v379_v63 = vpop.f32.mrf.mxu0  ;;  %v507_v0 = vpop.f32.mrf.mxu1 }
  0xe9   :  { %738 = vst.msk [vmem:[%s1593_s4 + $0x60] sm:$0xff] %vm725_vm2, %v673_v59  ;;  %770 = vst.msk [vmem:[%s1593_s4 + $0x160] sm:$0xff] %vm725_vm2, %v705_v60  ;;  %v676_v1 = vadd.f32 %v1203_v37, %v605_v61  ;;  %v603_v3 = vmul.f32 %v1198_v35, %v379_v63  ;;  %v635_v4 = vmul.f32 %v1198_v35, %v507_v0 }
  0xea   :  { %v708_v2 = vadd.f32 %v1203_v37, %v637_v62  ;;  %v886_v5 = vpop.f32.mrf.mxu0  ;;  %v918_v6 = vpop.f32.mrf.mxu1 }
  0xeb   :  { %741 = vst.msk [vmem:[%s1593_s4 + $0x78] sm:$0xff] %vm725_vm2, %v676_v1  ;;  %v674_v7 = vadd.f32 %v1203_v37, %v603_v3  ;;  %v706_v8 = vadd.f32 %v1203_v37, %v635_v4  ;;  %v608_v9 = vmul.f32 %v886_v5, %v1198_v35  ;;  %v640_v10 = vmul.f32 %v918_v6, %v1198_v35 }
  0xec   :  { %773 = vst.msk [vmem:[%s1593_s4 + $0x178] sm:$0xff] %vm725_vm2, %v708_v2  ;;  %v392_v11 = vpop.f32.mrf.mxu0  ;;  %v520_v12 = vpop.f32.mrf.mxu1 }
  0xed   :  { %739 = vst.msk [vmem:[%s1593_s4 + $0x68] sm:$0xff] %vm725_vm2, %v674_v7  ;;  %771 = vst.msk [vmem:[%s1593_s4 + $0x168] sm:$0xff] %vm725_vm2, %v706_v8  ;;  %v679_v13 = vadd.f32 %v1203_v37, %v608_v9  ;;  %v711_v14 = vadd.f32 %v1203_v37, %v640_v10  ;;  %v606_v15 = vmul.f32 %v1198_v35, %v392_v11 }
  0xee   :  { %v638_v16 = vmul.f32 %v1198_v35, %v520_v12  ;;  %v887_v17 = vpop.f32.mrf.mxu0  ;;  %v919_v18 = vpop.f32.mrf.mxu1 }
  0xef   :  { %744 = vst.msk [vmem:[%s1593_s4 + $0x90] sm:$0xff] %vm725_vm2, %v679_v13  ;;  %776 = vst.msk [vmem:[%s1593_s4 + $0x190] sm:$0xff] %vm725_vm2, %v711_v14  ;;  %v677_v19 = vadd.f32 %v1203_v37, %v606_v15  ;;  %v609_v21 = vmul.f32 %v887_v17, %v1198_v35  ;;  %v641_v22 = vmul.f32 %v919_v18, %v1198_v35 }
  0xf0   :  { %v709_v20 = vadd.f32 %v1203_v37, %v638_v16  ;;  %v395_v23 = vpop.f32.mrf.mxu0  ;;  %v523_v24 = vpop.f32.mrf.mxu1 }
  0xf1   :  { %742 = vst.msk [vmem:[%s1593_s4 + $0x80] sm:$0xff] %vm725_vm2, %v677_v19  ;;  %v680_v25 = vadd.f32 %v1203_v37, %v609_v21  ;;  %v712_v26 = vadd.f32 %v1203_v37, %v641_v22  ;;  %v607_v27 = vmul.f32 %v1198_v35, %v395_v23  ;;  %v639_v28 = vmul.f32 %v1198_v35, %v523_v24 }
  0xf2   :  { %774 = vst.msk [vmem:[%s1593_s4 + $0x180] sm:$0xff] %vm725_vm2, %v709_v20  ;;  %v890_v29 = vpop.f32.mrf.mxu0  ;;  %v922_v30 = vpop.f32.mrf.mxu1 }
  0xf3   :  { %745 = vst.msk [vmem:[%s1593_s4 + $0x98] sm:$0xff] %vm725_vm2, %v680_v25  ;;  %777 = vst.msk [vmem:[%s1593_s4 + $0x198] sm:$0xff] %vm725_vm2, %v712_v26  ;;  %v678_v31 = vadd.f32 %v1203_v37, %v607_v27  ;;  %v710_v32 = vadd.f32 %v1203_v37, %v639_v28  ;;  %v612_v33 = vmul.f32 %v890_v29, %v1198_v35 }
  0xf4   :  { %v644_v34 = vmul.f32 %v922_v30, %v1198_v35  ;;  %v408_v36 = vpop.f32.mrf.mxu0  ;;  %v536_v38 = vpop.f32.mrf.mxu1 }
  0xf5   :  { %743 = vst.msk [vmem:[%s1593_s4 + $0x88] sm:$0xff] %vm725_vm2, %v678_v31  ;;  %775 = vst.msk [vmem:[%s1593_s4 + $0x188] sm:$0xff] %vm725_vm2, %v710_v32  ;;  %v683_v39 = vadd.f32 %v1203_v37, %v612_v33  ;;  %v610_v41 = vmul.f32 %v1198_v35, %v408_v36  ;;  %v642_v42 = vmul.f32 %v1198_v35, %v536_v38 }
  0xf6   :  { %v715_v40 = vadd.f32 %v1203_v37, %v644_v34  ;;  %v891_v43 = vpop.f32.mrf.mxu0  ;;  %v923_v44 = vpop.f32.mrf.mxu1 }
  0xf7   :  { %748 = vst.msk [vmem:[%s1593_s4 + $0xb0] sm:$0xff] %vm725_vm2, %v683_v39  ;;  %v681_v45 = vadd.f32 %v1203_v37, %v610_v41  ;;  %v713_v46 = vadd.f32 %v1203_v37, %v642_v42  ;;  %v613_v47 = vmul.f32 %v891_v43, %v1198_v35  ;;  %v645_v48 = vmul.f32 %v923_v44, %v1198_v35 }
  0xf8   :  { %780 = vst.msk [vmem:[%s1593_s4 + $0x1b0] sm:$0xff] %vm725_vm2, %v715_v40  ;;  %v411_v49 = vpop.f32.mrf.mxu0  ;;  %v539_v50 = vpop.f32.mrf.mxu1 }
  0xf9   :  { %746 = vst.msk [vmem:[%s1593_s4 + $0xa0] sm:$0xff] %vm725_vm2, %v681_v45  ;;  %778 = vst.msk [vmem:[%s1593_s4 + $0x1a0] sm:$0xff] %vm725_vm2, %v713_v46  ;;  %v684_v51 = vadd.f32 %v1203_v37, %v613_v47  ;;  %v716_v52 = vadd.f32 %v1203_v37, %v645_v48  ;;  %v611_v53 = vmul.f32 %v1198_v35, %v411_v49 }
  0xfa   :  { %v643_v54 = vmul.f32 %v1198_v35, %v539_v50  ;;  %v894_v55 = vpop.f32.mrf.mxu0  ;;  %v926_v56 = vpop.f32.mrf.mxu1 }
  0xfb   :  { %749 = vst.msk [vmem:[%s1593_s4 + $0xb8] sm:$0xff] %vm725_vm2, %v684_v51  ;;  %781 = vst.msk [vmem:[%s1593_s4 + $0x1b8] sm:$0xff] %vm725_vm2, %v716_v52  ;;  %v682_v57 = vadd.f32 %v1203_v37, %v611_v53  ;;  %v616_v59 = vmul.f32 %v894_v55, %v1198_v35  ;;  %v648_v60 = vmul.f32 %v926_v56, %v1198_v35 }
  0xfc   :  { %v714_v58 = vadd.f32 %v1203_v37, %v643_v54  ;;  %v424_v61 = vpop.f32.mrf.mxu0  ;;  %v552_v62 = vpop.f32.mrf.mxu1 }
  0xfd   :  { %747 = vst.msk [vmem:[%s1593_s4 + $0xa8] sm:$0xff] %vm725_vm2, %v682_v57  ;;  %v687_v63 = vadd.f32 %v1203_v37, %v616_v59  ;;  %v719_v0 = vadd.f32 %v1203_v37, %v648_v60  ;;  %v614_v1 = vmul.f32 %v1198_v35, %v424_v61  ;;  %v646_v2 = vmul.f32 %v1198_v35, %v552_v62 }
  0xfe   :  { %779 = vst.msk [vmem:[%s1593_s4 + $0x1a8] sm:$0xff] %vm725_vm2, %v714_v58  ;;  %v895_v3 = vpop.f32.mrf.mxu0  ;;  %v927_v4 = vpop.f32.mrf.mxu1 }
  0xff   :  { %752 = vst.msk [vmem:[%s1593_s4 + $0xd0] sm:$0xff] %vm725_vm2, %v687_v63  ;;  %784 = vst.msk [vmem:[%s1593_s4 + $0x1d0] sm:$0xff] %vm725_vm2, %v719_v0  ;;  %v685_v5 = vadd.f32 %v1203_v37, %v614_v1  ;;  %v717_v6 = vadd.f32 %v1203_v37, %v646_v2  ;;  %v617_v7 = vmul.f32 %v895_v3, %v1198_v35 }
 0x100   :  { %v649_v8 = vmul.f32 %v927_v4, %v1198_v35  ;;  %v427_v9 = vpop.f32.mrf.mxu0  ;;  %v555_v10 = vpop.f32.mrf.mxu1 }
 0x101   :  { %750 = vst.msk [vmem:[%s1593_s4 + $0xc0] sm:$0xff] %vm725_vm2, %v685_v5  ;;  %782 = vst.msk [vmem:[%s1593_s4 + $0x1c0] sm:$0xff] %vm725_vm2, %v717_v6  ;;  %v688_v11 = vadd.f32 %v1203_v37, %v617_v7  ;;  %v615_v13 = vmul.f32 %v1198_v35, %v427_v9  ;;  %v647_v14 = vmul.f32 %v1198_v35, %v555_v10 }
 0x102   :  { %v720_v12 = vadd.f32 %v1203_v37, %v649_v8  ;;  %v898_v15 = vpop.f32.mrf.mxu0  ;;  %v930_v16 = vpop.f32.mrf.mxu1 }
 0x103   :  { %753 = vst.msk [vmem:[%s1593_s4 + $0xd8] sm:$0xff] %vm725_vm2, %v688_v11  ;;  %v686_v17 = vadd.f32 %v1203_v37, %v615_v13  ;;  %v718_v18 = vadd.f32 %v1203_v37, %v647_v14  ;;  %v620_v19 = vmul.f32 %v898_v15, %v1198_v35  ;;  %v652_v20 = vmul.f32 %v930_v16, %v1198_v35 }
 0x104   :  { %785 = vst.msk [vmem:[%s1593_s4 + $0x1d8] sm:$0xff] %vm725_vm2, %v720_v12  ;;  %v440_v21 = vpop.f32.mrf.mxu0  ;;  %v568_v22 = vpop.f32.mrf.mxu1 }
 0x105   :  { %751 = vst.msk [vmem:[%s1593_s4 + $0xc8] sm:$0xff] %vm725_vm2, %v686_v17  ;;  %783 = vst.msk [vmem:[%s1593_s4 + $0x1c8] sm:$0xff] %vm725_vm2, %v718_v18  ;;  %v691_v23 = vadd.f32 %v1203_v37, %v620_v19  ;;  %v723_v24 = vadd.f32 %v1203_v37, %v652_v20  ;;  %v618_v25 = vmul.f32 %v1198_v35, %v440_v21 }
 0x106   :  { %v650_v26 = vmul.f32 %v1198_v35, %v568_v22  ;;  %v899_v27 = vpop.f32.mrf.mxu0  ;;  %v931_v28 = vpop.f32.mrf.mxu1 }
 0x107   :  { %756 = vst.msk [vmem:[%s1593_s4 + $0xf0] sm:$0xff] %vm725_vm2, %v691_v23  ;;  %788 = vst.msk [vmem:[%s1593_s4 + $0x1f0] sm:$0xff] %vm725_vm2, %v723_v24  ;;  %v689_v29 = vadd.f32 %v1203_v37, %v618_v25  ;;  %v621_v31 = vmul.f32 %v899_v27, %v1198_v35  ;;  %v653_v32 = vmul.f32 %v931_v28, %v1198_v35 }
 0x108   :  { %v721_v30 = vadd.f32 %v1203_v37, %v650_v26  ;;  %v443_v33 = vpop.f32.mrf.mxu0  ;;  %v571_v34 = vpop.f32.mrf.mxu1 }
 0x109   :  { %754 = vst.msk [vmem:[%s1593_s4 + $0xe0] sm:$0xff] %vm725_vm2, %v689_v29  ;;  %v692_v36 = vadd.f32 %v1203_v37, %v621_v31  ;;  %v724_v38 = vadd.f32 %v1203_v37, %v653_v32  ;;  %v619_v39 = vmul.f32 %v1198_v35, %v443_v33  ;;  %v651_v40 = vmul.f32 %v1198_v35, %v571_v34 }
 0x10a   :  { %786 = vst.msk [vmem:[%s1593_s4 + $0x1e0] sm:$0xff] %vm725_vm2, %v721_v30 }
 0x10b   :  { %757 = vst.msk [vmem:[%s1593_s4 + $0xf8] sm:$0xff] %vm725_vm2, %v692_v36  ;;  %789 = vst.msk [vmem:[%s1593_s4 + $0x1f8] sm:$0xff] %vm725_vm2, %v724_v38  ;;  %v690_v41 = vadd.f32 %v1203_v37, %v619_v39  ;;  %v722_v42 = vadd.f32 %v1203_v37, %v651_v40 }
 0x10d   :  { %755 = vst.msk [vmem:[%s1593_s4 + $0xe8] sm:$0xff] %vm725_vm2, %v690_v41  ;;  %787 = vst.msk [vmem:[%s1593_s4 + $0x1e8] sm:$0xff] %vm725_vm2, %v722_v42 }

// kernel: _lambda_.18
= control target key start
LH: loop header
LB: loop body
LE: loop exit
PB: predicated region body
PF: predicated region fallthrough
CT: control target
= control target key end

     0   :  { %vm66_vm0 = vcmask 130048   ;;  %vm234_vm1 = vcmask 64512   ;;  %s468_s1 = inlined_call_operand.vmem [shape: bf16[16,8], index: 1, kind: input, shape index: {}]   ;;  %s469_s0 = inlined_call_operand.vmem [shape: f32[128,16], index: 0, kind: input, shape index: {}]   ;;  %s470_s2 = inlined_call_operand.vmem [shape: f32[1,8], index: 2, kind: input, shape index: {}]   ;;  %s471_s3 = inlined_call_operand.vmem [shape: f32[1,8], index: 3, kind: input, shape index: {}]   ;;  %s472_s4 = inlined_call_operand.vmem [shape: f32[128,8], index: 4, kind: output, shape index: {}]  }
   0x1   :  { %v295_v0 = vld [vmem:[%s468_s1] sm:$0xff]   ;;  %v19_v2 = vld [vmem:[%s469_s0 + $0x8] sm:$0xff]  ;;  %v20_v8 = vld [vmem:[%s469_s0 + $0x10] sm:$0xff] }
   0x2   :  { %v18_v1 = vld [vmem:[%s469_s0] sm:$0xff]  ;;  %275 = vmatprep.subr.bf16.mxu0 %v295_v0  ;;  %293 = vmatprep.subr.bf16.mxu1 %v295_v0  ;;  %v35_v5 = vmax.f32 %v19_v2, 0.0  ;;  %v27_v6 = vld [vmem:[%s469_s0 + $0x48] sm:$0xff]  ;;  %v21_v9 = vld [vmem:[%s469_s0 + $0x18] sm:$0xff]  ;;  %v36_v11 = vmax.f32 %v20_v8, 0.0 }
   0x3   :  { %v26_v3 = vld [vmem:[%s469_s0 + $0x40] sm:$0xff]  ;;  %v34_v4 = vmax.f32 %v18_v1, 0.0  ;;  %276 = vmatpush3.bf16.msra.mxu0 %v295_v0  ;;  %294 = vmatpush3.bf16.msra.mxu1 %v295_v0  ;;  %v43_v10 = vmax.f32 %v27_v6, 0.0  ;;  %v37_v12 = vmax.f32 %v21_v9, 0.0  ;;  %v28_v13 = vld [vmem:[%s469_s0 + $0x50] sm:$0xff]  ;;  %v29_v14 = vld [vmem:[%s469_s0 + $0x58] sm:$0xff] }
   0x4   :  { %v42_v7 = vmax.f32 %v26_v3, 0.0  ;;  %v22_v15 = vld [vmem:[%s469_s0 + $0x20] sm:$0xff]  ;;  %v44_v17 = vmax.f32 %v28_v13, 0.0  ;;  %v45_v18 = vmax.f32 %v29_v14, 0.0  ;;  %v23_v19 = vld [vmem:[%s469_s0 + $0x28] sm:$0xff]  ;;  %v24_v27 = vld [vmem:[%s469_s0 + $0x30] sm:$0xff] }
   0x5   :  { %v50_v16 = vpack.c.bf16 %v35_v5, %v34_v4  ;;  %v38_v20 = vmax.f32 %v22_v15, 0.0  ;;  %v30_v21 = vld [vmem:[%s469_s0 + $0x60] sm:$0xff]  ;;  %v31_v22 = vld [vmem:[%s469_s0 + $0x68] sm:$0xff]  ;;  %v51_v24 = vpack.c.bf16 %v37_v12, %v36_v11  ;;  %v39_v25 = vmax.f32 %v23_v19, 0.0  ;;  %v25_v28 = vld [vmem:[%s469_s0 + $0x38] sm:$0xff] }
   0x6   :  { %v54_v23 = vpack.c.bf16 %v43_v10, %v42_v7  ;;  %v46_v26 = vmax.f32 %v30_v21, 0.0  ;;  %v32_v29 = vld [vmem:[%s469_s0 + $0x70] sm:$0xff]  ;;  %v55_v30 = vpack.c.bf16 %v45_v18, %v44_v17  ;;  %v47_v31 = vmax.f32 %v31_v22, 0.0  ;;  %v33_v32 = vld [vmem:[%s469_s0 + $0x78] sm:$0xff]  ;;  %v264_v41 = vld [vmem:[%s470_s2] ss:$0 sm:$0xff] }
   0x7   :  { %277 = vmatprep.mubr.msk.bf16.mxu0 %vm66_vm0, %v50_v16  ;;  %v52_v33 = vpack.c.bf16 %v39_v25, %v38_v20  ;;  %v40_v34 = vmax.f32 %v24_v27, 0.0  ;;  %v41_v35 = vmax.f32 %v25_v28, 0.0  ;;  %v48_v37 = vmax.f32 %v32_v29, 0.0  ;;  %v386_v43 = vld [vmem:[%s471_s3] ss:$0 sm:$0xff] }
   0x8   :  { %285 = vmatprep.mubr.msk.bf16.mxu1 %vm66_vm0, %v54_v23  ;;  %278 = vmatmul.mubr.msk.bf16.vlgmr.msra.gmra.mxu0 %vm66_vm0, %v51_v24  ;;  %v56_v36 = vpack.c.bf16 %v47_v31, %v46_v26  ;;  %v49_v38 = vmax.f32 %v33_v32, 0.0 }
   0x9   :  { %286 = vmatmul.mubr.msk.bf16.vlgmr.msra.gmra.mxu1 %vm66_vm0, %v55_v30  ;;  %281 = vmatprep.mubr.msk.bf16.mxu0 %vm66_vm0, %v52_v33  ;;  %v53_v39 = vpack.c.bf16 %v41_v35, %v40_v34 }
   0xa   :  { %289 = vmatprep.mubr.msk.bf16.mxu1 %vm66_vm0, %v56_v36  ;;  %v57_v40 = vpack.c.bf16 %v49_v38, %v48_v37 }
  0x10   :  { %282 = vmatmul.mubr.msk.bf16.gmra.mxu0 %vm66_vm0, %v53_v39 }
  0x11   :  { %290 = vmatmul.mubr.msk.bf16.gmra.mxu1 %vm66_vm0, %v57_v40 }
  0xc8   :  { %v279_v42 = vpop.f32.mrf.mxu0 }
  0xc9   :  { %v197_v44 = vmul.f32 %v279_v42, %v264_v41  ;;  %v287_v45 = vpop.f32.mrf.mxu1 }
  0xca   :  { %v205_v46 = vmul.f32 %v287_v45, %v264_v41  ;;  %v125_v47 = vpop.f32.mrf.mxu0 }
  0xcb   :  { %v220_v48 = vadd.f32 %v386_v43, %v197_v44  ;;  %v195_v49 = vmul.f32 %v264_v41, %v125_v47  ;;  %v157_v50 = vpop.f32.mrf.mxu1 }
  0xcc   :  { %v228_v51 = vadd.f32 %v386_v43, %v205_v46  ;;  %v203_v52 = vmul.f32 %v264_v41, %v157_v50  ;;  %v280_v53 = vpop.f32.mrf.mxu0 }
  0xcd   :  { %237 = vst.msk [vmem:[%s472_s4 + $0x10] sm:$0xff] %vm234_vm1, %v220_v48  ;;  %v218_v54 = vadd.f32 %v386_v43, %v195_v49  ;;  %v198_v55 = vmul.f32 %v280_v53, %v264_v41  ;;  %v288_v56 = vpop.f32.mrf.mxu1 }
  0xce   :  { %245 = vst.msk [vmem:[%s472_s4 + $0x50] sm:$0xff] %vm234_vm1, %v228_v51  ;;  %v226_v57 = vadd.f32 %v386_v43, %v203_v52  ;;  %v206_v58 = vmul.f32 %v288_v56, %v264_v41  ;;  %v128_v59 = vpop.f32.mrf.mxu0 }
  0xcf   :  { %235 = vst.msk [vmem:[%s472_s4] sm:$0xff] %vm234_vm1, %v218_v54  ;;  %v221_v60 = vadd.f32 %v386_v43, %v198_v55  ;;  %v196_v61 = vmul.f32 %v264_v41, %v128_v59  ;;  %v160_v62 = vpop.f32.mrf.mxu1 }
  0xd0   :  { %243 = vst.msk [vmem:[%s472_s4 + $0x40] sm:$0xff] %vm234_vm1, %v226_v57  ;;  %v229_v63 = vadd.f32 %v386_v43, %v206_v58  ;;  %v204_v0 = vmul.f32 %v264_v41, %v160_v62  ;;  %v283_v1 = vpop.f32.mrf.mxu0 }
  0xd1   :  { %238 = vst.msk [vmem:[%s472_s4 + $0x18] sm:$0xff] %vm234_vm1, %v221_v60  ;;  %v219_v2 = vadd.f32 %v386_v43, %v196_v61  ;;  %v201_v3 = vmul.f32 %v283_v1, %v264_v41  ;;  %v291_v4 = vpop.f32.mrf.mxu1 }
  0xd2   :  { %246 = vst.msk [vmem:[%s472_s4 + $0x58] sm:$0xff] %vm234_vm1, %v229_v63  ;;  %v227_v5 = vadd.f32 %v386_v43, %v204_v0  ;;  %v209_v6 = vmul.f32 %v291_v4, %v264_v41  ;;  %v141_v7 = vpop.f32.mrf.mxu0 }
  0xd3   :  { %236 = vst.msk [vmem:[%s472_s4 + $0x8] sm:$0xff] %vm234_vm1, %v219_v2  ;;  %v224_v8 = vadd.f32 %v386_v43, %v201_v3  ;;  %v199_v9 = vmul.f32 %v264_v41, %v141_v7  ;;  %v173_v10 = vpop.f32.mrf.mxu1 }
  0xd4   :  { %244 = vst.msk [vmem:[%s472_s4 + $0x48] sm:$0xff] %vm234_vm1, %v227_v5  ;;  %v232_v11 = vadd.f32 %v386_v43, %v209_v6  ;;  %v207_v12 = vmul.f32 %v264_v41, %v173_v10  ;;  %v284_v13 = vpop.f32.mrf.mxu0 }
  0xd5   :  { %241 = vst.msk [vmem:[%s472_s4 + $0x30] sm:$0xff] %vm234_vm1, %v224_v8  ;;  %v222_v14 = vadd.f32 %v386_v43, %v199_v9  ;;  %v202_v15 = vmul.f32 %v284_v13, %v264_v41  ;;  %v292_v16 = vpop.f32.mrf.mxu1 }
  0xd6   :  { %249 = vst.msk [vmem:[%s472_s4 + $0x70] sm:$0xff] %vm234_vm1, %v232_v11  ;;  %v230_v17 = vadd.f32 %v386_v43, %v207_v12  ;;  %v210_v18 = vmul.f32 %v292_v16, %v264_v41  ;;  %v144_v19 = vpop.f32.mrf.mxu0 }
  0xd7   :  { %239 = vst.msk [vmem:[%s472_s4 + $0x20] sm:$0xff] %vm234_vm1, %v222_v14  ;;  %v225_v20 = vadd.f32 %v386_v43, %v202_v15  ;;  %v200_v21 = vmul.f32 %v264_v41, %v144_v19  ;;  %v176_v22 = vpop.f32.mrf.mxu1 }
  0xd8   :  { %247 = vst.msk [vmem:[%s472_s4 + $0x60] sm:$0xff] %vm234_vm1, %v230_v17  ;;  %v233_v23 = vadd.f32 %v386_v43, %v210_v18  ;;  %v208_v24 = vmul.f32 %v264_v41, %v176_v22 }
  0xd9   :  { %242 = vst.msk [vmem:[%s472_s4 + $0x38] sm:$0xff] %vm234_vm1, %v225_v20  ;;  %v223_v25 = vadd.f32 %v386_v43, %v200_v21 }
  0xda   :  { %250 = vst.msk [vmem:[%s472_s4 + $0x78] sm:$0xff] %vm234_vm1, %v233_v23  ;;  %v231_v26 = vadd.f32 %v386_v43, %v208_v24 }
  0xdb   :  { %240 = vst.msk [vmem:[%s472_s4 + $0x28] sm:$0xff] %vm234_vm1, %v223_v25 }
  0xdc   :  { %248 = vst.msk [vmem:[%s472_s4 + $0x68] sm:$0xff] %vm234_vm1, %v231_v26 }

// kernel: _lambda_.19
= control target key start
LH: loop header
LB: loop body
LE: loop exit
PB: predicated region body
PF: predicated region fallthrough
CT: control target
= control target key end

     0   :  { %vm69_vm0 = vcmask 130048   ;;  %vm269_vm1 = vcmask 64512   ;;  %s574_s1 = inlined_call_operand.vmem [shape: bf16[16,8], index: 1, kind: input, shape index: {}]   ;;  %s575_s0 = inlined_call_operand.vmem [shape: f32[128,16], index: 0, kind: input, shape index: {}]   ;;  %s576_s2 = inlined_call_operand.vmem [shape: f32[1,8], index: 2, kind: input, shape index: {}]   ;;  %s577_s3 = inlined_call_operand.vmem [shape: f32[1,8], index: 3, kind: input, shape index: {}]   ;;  %s578_s4 = inlined_call_operand.vmem [shape: f32[128,8], index: 4, kind: input, shape index: {}]   ;;  %s579_s5 = inlined_call_operand.vmem [shape: f32[128,8], index: 5, kind: output, shape index: {}]  }
   0x1   :  { %v330_v0 = vld [vmem:[%s574_s1] sm:$0xff]   ;;  %v22_v2 = vld [vmem:[%s575_s0 + $0x8] sm:$0xff]  ;;  %v23_v8 = vld [vmem:[%s575_s0 + $0x10] sm:$0xff] }
   0x2   :  { %v21_v1 = vld [vmem:[%s575_s0] sm:$0xff]  ;;  %310 = vmatprep.subr.bf16.mxu0 %v330_v0  ;;  %328 = vmatprep.subr.bf16.mxu1 %v330_v0  ;;  %v38_v5 = vmax.f32 %v22_v2, 0.0  ;;  %v30_v6 = vld [vmem:[%s575_s0 + $0x48] sm:$0xff]  ;;  %v24_v9 = vld [vmem:[%s575_s0 + $0x18] sm:$0xff]  ;;  %v39_v11 = vmax.f32 %v23_v8, 0.0 }
   0x3   :  { %v29_v3 = vld [vmem:[%s575_s0 + $0x40] sm:$0xff]  ;;  %v37_v4 = vmax.f32 %v21_v1, 0.0  ;;  %311 = vmatpush3.bf16.msra.mxu0 %v330_v0  ;;  %329 = vmatpush3.bf16.msra.mxu1 %v330_v0  ;;  %v46_v10 = vmax.f32 %v30_v6, 0.0  ;;  %v40_v12 = vmax.f32 %v24_v9, 0.0  ;;  %v31_v13 = vld [vmem:[%s575_s0 + $0x50] sm:$0xff]  ;;  %v32_v14 = vld [vmem:[%s575_s0 + $0x58] sm:$0xff] }
   0x4   :  { %v45_v7 = vmax.f32 %v29_v3, 0.0  ;;  %v25_v15 = vld [vmem:[%s575_s0 + $0x20] sm:$0xff]  ;;  %v47_v17 = vmax.f32 %v31_v13, 0.0  ;;  %v48_v18 = vmax.f32 %v32_v14, 0.0  ;;  %v26_v19 = vld [vmem:[%s575_s0 + $0x28] sm:$0xff]  ;;  %v27_v27 = vld [vmem:[%s575_s0 + $0x30] sm:$0xff] }
   0x5   :  { %v53_v16 = vpack.c.bf16 %v38_v5, %v37_v4  ;;  %v41_v20 = vmax.f32 %v25_v15, 0.0  ;;  %v33_v21 = vld [vmem:[%s575_s0 + $0x60] sm:$0xff]  ;;  %v34_v22 = vld [vmem:[%s575_s0 + $0x68] sm:$0xff]  ;;  %v54_v24 = vpack.c.bf16 %v40_v12, %v39_v11  ;;  %v42_v25 = vmax.f32 %v26_v19, 0.0  ;;  %v28_v28 = vld [vmem:[%s575_s0 + $0x38] sm:$0xff] }
   0x6   :  { %v57_v23 = vpack.c.bf16 %v46_v10, %v45_v7  ;;  %v49_v26 = vmax.f32 %v33_v21, 0.0  ;;  %v35_v29 = vld [vmem:[%s575_s0 + $0x70] sm:$0xff]  ;;  %v58_v30 = vpack.c.bf16 %v48_v18, %v47_v17  ;;  %v50_v31 = vmax.f32 %v34_v22, 0.0  ;;  %v36_v32 = vld [vmem:[%s575_s0 + $0x78] sm:$0xff]  ;;  %v423_v41 = vld [vmem:[%s576_s2] ss:$0 sm:$0xff] }
   0x7   :  { %312 = vmatprep.mubr.msk.bf16.mxu0 %vm69_vm0, %v53_v16  ;;  %v55_v33 = vpack.c.bf16 %v42_v25, %v41_v20  ;;  %v43_v34 = vmax.f32 %v27_v27, 0.0  ;;  %v44_v35 = vmax.f32 %v28_v28, 0.0  ;;  %v51_v37 = vmax.f32 %v35_v29, 0.0  ;;  %v428_v43 = vld [vmem:[%s577_s3] ss:$0 sm:$0xff]  ;;  %v239_v46 = vld [vmem:[%s578_s4 + $0x10] sm:$0xff] }
   0x8   :  { %320 = vmatprep.mubr.msk.bf16.mxu1 %vm69_vm0, %v57_v23  ;;  %313 = vmatmul.mubr.msk.bf16.vlgmr.msra.gmra.mxu0 %vm69_vm0, %v54_v24  ;;  %v59_v36 = vpack.c.bf16 %v50_v31, %v49_v26  ;;  %v52_v38 = vmax.f32 %v36_v32, 0.0  ;;  %v247_v50 = vld [vmem:[%s578_s4 + $0x50] sm:$0xff]  ;;  %v237_v54 = vld [vmem:[%s578_s4] sm:$0xff]  ;;  %v240_v0 = vld [vmem:[%s578_s4 + $0x18] sm:$0xff] }
   0x9   :  { %321 = vmatmul.mubr.msk.bf16.vlgmr.msra.gmra.mxu1 %vm69_vm0, %v58_v30  ;;  %316 = vmatprep.mubr.msk.bf16.mxu0 %vm69_vm0, %v55_v33  ;;  %v56_v39 = vpack.c.bf16 %v44_v35, %v43_v34  ;;  %v245_v59 = vld [vmem:[%s578_s4 + $0x40] sm:$0xff]  ;;  %v248_v5 = vld [vmem:[%s578_s4 + $0x58] sm:$0xff]  ;;  %v238_v10 = vld [vmem:[%s578_s4 + $0x8] sm:$0xff] }
   0xa   :  { %324 = vmatprep.mubr.msk.bf16.mxu1 %vm69_vm0, %v59_v36  ;;  %v60_v40 = vpack.c.bf16 %v52_v38, %v51_v37  ;;  %v246_v15 = vld [vmem:[%s578_s4 + $0x48] sm:$0xff]  ;;  %v243_v20 = vld [vmem:[%s578_s4 + $0x30] sm:$0xff]  ;;  %v241_v30 = vld [vmem:[%s578_s4 + $0x20] sm:$0xff] }
   0xb   :  { %v251_v25 = vld [vmem:[%s578_s4 + $0x70] sm:$0xff]  ;;  %v249_v35 = vld [vmem:[%s578_s4 + $0x60] sm:$0xff] }
  0x10   :  { %317 = vmatmul.mubr.msk.bf16.gmra.mxu0 %vm69_vm0, %v56_v39 }
  0x11   :  { %325 = vmatmul.mubr.msk.bf16.gmra.mxu1 %vm69_vm0, %v60_v40  ;;  %v244_v40 = vld [vmem:[%s578_s4 + $0x38] sm:$0xff] }
  0xc8   :  { %v314_v42 = vpop.f32.mrf.mxu0 }
  0xc9   :  { %v200_v44 = vmul.f32 %v314_v42, %v423_v41  ;;  %v322_v45 = vpop.f32.mrf.mxu1 }
  0xca   :  { %v208_v47 = vmul.f32 %v322_v45, %v423_v41  ;;  %v128_v48 = vpop.f32.mrf.mxu0 }
  0xcb   :  { %v223_v49 = vadd.f32 %v428_v43, %v200_v44  ;;  %v198_v51 = vmul.f32 %v423_v41, %v128_v48  ;;  %v160_v52 = vpop.f32.mrf.mxu1 }
  0xcc   :  { %v231_v53 = vadd.f32 %v428_v43, %v208_v47  ;;  %v206_v55 = vmul.f32 %v423_v41, %v160_v52  ;;  %v315_v56 = vpop.f32.mrf.mxu0  ;;  %v252_v47 = vld [vmem:[%s578_s4 + $0x78] sm:$0xff]  ;;  %v242_v52 = vld [vmem:[%s578_s4 + $0x28] sm:$0xff] }
  0xcd   :  { %v255_v57 = vadd.f32 %v239_v46, %v223_v49  ;;  %v221_v58 = vadd.f32 %v428_v43, %v198_v51  ;;  %v201_v60 = vmul.f32 %v315_v56, %v423_v41  ;;  %v323_v61 = vpop.f32.mrf.mxu1  ;;  %v250_v56 = vld [vmem:[%s578_s4 + $0x68] sm:$0xff] }
  0xce   :  { %v263_v62 = vadd.f32 %v247_v50, %v231_v53  ;;  %v229_v63 = vadd.f32 %v428_v43, %v206_v55  ;;  %v209_v1 = vmul.f32 %v323_v61, %v423_v41  ;;  %v131_v2 = vpop.f32.mrf.mxu0 }
  0xcf   :  { %272 = vst.msk [vmem:[%s579_s5 + $0x10] sm:$0xff] %vm269_vm1, %v255_v57  ;;  %v253_v3 = vadd.f32 %v237_v54, %v221_v58  ;;  %v224_v4 = vadd.f32 %v428_v43, %v201_v60  ;;  %v199_v6 = vmul.f32 %v423_v41, %v131_v2  ;;  %v163_v7 = vpop.f32.mrf.mxu1 }
  0xd0   :  { %280 = vst.msk [vmem:[%s579_s5 + $0x50] sm:$0xff] %vm269_vm1, %v263_v62  ;;  %v261_v8 = vadd.f32 %v245_v59, %v229_v63  ;;  %v232_v9 = vadd.f32 %v428_v43, %v209_v1  ;;  %v207_v11 = vmul.f32 %v423_v41, %v163_v7  ;;  %v318_v12 = vpop.f32.mrf.mxu0 }
  0xd1   :  { %270 = vst.msk [vmem:[%s579_s5] sm:$0xff] %vm269_vm1, %v253_v3  ;;  %v256_v13 = vadd.f32 %v240_v0, %v224_v4  ;;  %v222_v14 = vadd.f32 %v428_v43, %v199_v6  ;;  %v204_v16 = vmul.f32 %v318_v12, %v423_v41  ;;  %v326_v17 = vpop.f32.mrf.mxu1 }
  0xd2   :  { %278 = vst.msk [vmem:[%s579_s5 + $0x40] sm:$0xff] %vm269_vm1, %v261_v8  ;;  %v264_v18 = vadd.f32 %v248_v5, %v232_v9  ;;  %v230_v19 = vadd.f32 %v428_v43, %v207_v11  ;;  %v212_v21 = vmul.f32 %v326_v17, %v423_v41  ;;  %v144_v22 = vpop.f32.mrf.mxu0 }
  0xd3   :  { %273 = vst.msk [vmem:[%s579_s5 + $0x18] sm:$0xff] %vm269_vm1, %v256_v13  ;;  %v254_v23 = vadd.f32 %v238_v10, %v222_v14  ;;  %v227_v24 = vadd.f32 %v428_v43, %v204_v16  ;;  %v202_v26 = vmul.f32 %v423_v41, %v144_v22  ;;  %v176_v27 = vpop.f32.mrf.mxu1 }
  0xd4   :  { %281 = vst.msk [vmem:[%s579_s5 + $0x58] sm:$0xff] %vm269_vm1, %v264_v18  ;;  %v262_v28 = vadd.f32 %v246_v15, %v230_v19  ;;  %v235_v29 = vadd.f32 %v428_v43, %v212_v21  ;;  %v210_v31 = vmul.f32 %v423_v41, %v176_v27  ;;  %v319_v32 = vpop.f32.mrf.mxu0 }
  0xd5   :  { %271 = vst.msk [vmem:[%s579_s5 + $0x8] sm:$0xff] %vm269_vm1, %v254_v23  ;;  %v259_v33 = vadd.f32 %v243_v20, %v227_v24  ;;  %v225_v34 = vadd.f32 %v428_v43, %v202_v26  ;;  %v205_v36 = vmul.f32 %v319_v32, %v423_v41  ;;  %v327_v37 = vpop.f32.mrf.mxu1 }
  0xd6   :  { %279 = vst.msk [vmem:[%s579_s5 + $0x48] sm:$0xff] %vm269_vm1, %v262_v28  ;;  %v267_v38 = vadd.f32 %v251_v25, %v235_v29  ;;  %v233_v39 = vadd.f32 %v428_v43, %v210_v31  ;;  %v213_v42 = vmul.f32 %v327_v37, %v423_v41  ;;  %v147_v44 = vpop.f32.mrf.mxu0 }
  0xd7   :  { %276 = vst.msk [vmem:[%s579_s5 + $0x30] sm:$0xff] %vm269_vm1, %v259_v33  ;;  %v257_v45 = vadd.f32 %v241_v30, %v225_v34  ;;  %v228_v46 = vadd.f32 %v428_v43, %v205_v36  ;;  %v203_v48 = vmul.f32 %v423_v41, %v147_v44  ;;  %v179_v49 = vpop.f32.mrf.mxu1 }
  0xd8   :  { %284 = vst.msk [vmem:[%s579_s5 + $0x70] sm:$0xff] %vm269_vm1, %v267_v38  ;;  %v265_v50 = vadd.f32 %v249_v35, %v233_v39  ;;  %v236_v51 = vadd.f32 %v428_v43, %v213_v42  ;;  %v211_v53 = vmul.f32 %v423_v41, %v179_v49 }
  0xd9   :  { %274 = vst.msk [vmem:[%s579_s5 + $0x20] sm:$0xff] %vm269_vm1, %v257_v45  ;;  %v260_v54 = vadd.f32 %v244_v40, %v228_v46  ;;  %v226_v55 = vadd.f32 %v428_v43, %v203_v48 }
  0xda   :  { %282 = vst.msk [vmem:[%s579_s5 + $0x60] sm:$0xff] %vm269_vm1, %v265_v50  ;;  %v268_v57 = vadd.f32 %v252_v47, %v236_v51  ;;  %v234_v41 = vadd.f32 %v428_v43, %v211_v53 }
  0xdb   :  { %277 = vst.msk [vmem:[%s579_s5 + $0x38] sm:$0xff] %vm269_vm1, %v260_v54  ;;  %v258_v58 = vadd.f32 %v242_v52, %v226_v55 }
  0xdc   :  { %285 = vst.msk [vmem:[%s579_s5 + $0x78] sm:$0xff] %vm269_vm1, %v268_v57  ;;  %v266_v59 = vadd.f32 %v250_v56, %v234_v41 }
  0xdd   :  { %275 = vst.msk [vmem:[%s579_s5 + $0x28] sm:$0xff] %vm269_vm1, %v258_v58 }
  0xde   :  { %283 = vst.msk [vmem:[%s579_s5 + $0x68] sm:$0xff] %vm269_vm1, %v266_v59 }

// kernel: _lambda_.21
= control target key start
LH: loop header
LB: loop body
LE: loop exit
PB: predicated region body
PF: predicated region fallthrough
CT: control target
= control target key end

     0   :  { %v211_v1 = vmov 0.0   ;;  %vm212_vm0 = vmmov 0   ;;  %vm32_vm1 = vcmask 261120   ;;  %s311_s0 = inlined_call_operand.vmem [shape: f32[2,64,32], index: 0, kind: input, shape index: {}]   ;;  %s312_s1 = inlined_call_operand.vmem [shape: bf16[32,10], index: 1, kind: input, shape index: {}]   ;;  %s313_s2 = inlined_call_operand.vmem [shape: f32[1,10], index: 2, kind: input, shape index: {}]   ;;  %s314_s3 = inlined_call_operand.hbm [shape: f32[2,10], index: 3, kind: output, shape index: {}]  }
   0x1   :  { %v187_v0 = vld [vmem:[%s312_s1 + $0x8] sm:$0xff]   ;;  %176 = vmatprep.subr.bf16.mxu0 %v211_v1  ;;  %v188_v2 = vld [vmem:[%s312_s1] sm:$0xff]   ;;  %180 = vmatprep.mubr.msk.bf16.mxu0 %vm212_vm0, %v211_v1  ;;  %v18_v5 = vld [vmem:[%s311_s0 + $0x10] sm:$0xff] }
   0x2   :  { %177 = vmatpush3.bf16.msra.mxu0 %v187_v0  ;;  %v16_v3 = vld [vmem:[%s311_s0] sm:$0xff]  ;;  %v17_v4 = vld [vmem:[%s311_s0 + $0x8] sm:$0xff]  ;;  %v19_v6 = vld [vmem:[%s311_s0 + $0x18] sm:$0xff]  ;;  %v36_v9 = vsel %vm32_vm1, %v18_v5, 0.0 }
   0x3   :  { %178 = vmatprep.subr.bf16.mxu0 %v211_v1  ;;  %v33_v7 = vsel %vm32_vm1, %v16_v3, 0.0  ;;  %v34_v8 = vsel %vm32_vm1, %v17_v4, 0.0  ;;  %v20_v10 = vld [vmem:[%s311_s0 + $0x20] sm:$0xff]  ;;  %v25_v13 = vld [vmem:[%s311_s0 + $0x48] sm:$0xff]  ;;  %v26_v14 = vld [vmem:[%s311_s0 + $0x50] sm:$0xff]  ;;  %v38_v16 = vsel %vm32_vm1, %v19_v6, 0.0 }
   0x4   :  { %v24_v11 = vld [vmem:[%s311_s0 + $0x40] sm:$0xff]  ;;  %v35_v12 = vadd.f32 %v34_v8, %v33_v7  ;;  %v27_v15 = vld [vmem:[%s311_s0 + $0x58] sm:$0xff]  ;;  %v21_v18 = vld [vmem:[%s311_s0 + $0x28] sm:$0xff]  ;;  %v55_v20 = vsel %vm32_vm1, %v25_v13, 0.0  ;;  %v57_v21 = vsel %vm32_vm1, %v26_v14, 0.0  ;;  %v40_v23 = vsel %vm32_vm1, %v20_v10, 0.0 }
   0x5   :  { %v54_v17 = vsel %vm32_vm1, %v24_v11, 0.0  ;;  %v28_v22 = vld [vmem:[%s311_s0 + $0x60] sm:$0xff]  ;;  %v22_v25 = vld [vmem:[%s311_s0 + $0x30] sm:$0xff]  ;;  %v59_v27 = vsel %vm32_vm1, %v27_v15, 0.0 }
   0x6   :  { %179 = vmatpush3.bf16.msra.mxu0 %v188_v2  ;;  %v37_v19 = vadd.f32 %v36_v9, %v35_v12  ;;  %v56_v24 = vadd.f32 %v55_v20, %v54_v17 }
   0x8   :  { %v39_v26 = vadd.f32 %v38_v16, %v37_v19 }
   0x9   :  { %8 = vsyncpa [#allocation3], 0  ;;  %v29_v28 = vld [vmem:[%s311_s0 + $0x68] sm:$0xff]  ;;  %v42_v29 = vsel %vm32_vm1, %v21_v18, 0.0  ;;  %v58_v30 = vadd.f32 %v57_v21, %v56_v24  ;;  %v23_v31 = vld [vmem:[%s311_s0 + $0x38] sm:$0xff]  ;;  %v61_v33 = vsel %vm32_vm1, %v28_v22, 0.0 }
   0xa   :  { %v41_v32 = vadd.f32 %v40_v23, %v39_v26  ;;  %v30_v34 = vld [vmem:[%s311_s0 + $0x70] sm:$0xff]  ;;  %v44_v35 = vsel %vm32_vm1, %v22_v25, 0.0  ;;  %v63_v38 = vsel %vm32_vm1, %v29_v28, 0.0  ;;  %v31_v39 = vld [vmem:[%s311_s0 + $0x78] sm:$0xff]  ;;  %v46_v40 = vsel %vm32_vm1, %v23_v31, 0.0  ;;  %s213_s21 = smov [#allocation2]  }
   0xb   :  { %v60_v36 = vadd.f32 %v59_v27, %v58_v30  ;;  %v65_v43 = vsel %vm32_vm1, %v30_v34, 0.0  ;;  %v67_v46 = vsel %vm32_vm1, %v31_v39, 0.0  ;;  %vm95_vm2 = vcmask 1041409   ;;  %v169_v5 = vld [vmem:[%s313_s2] ss:$0 sm:$0xff]  ;;  %s161_s22 = sshll.u32 %s213_s21, 4  ;;  %s162_s22 = int_to_ptr.vmem [resolvable:$true] %s161_s22 }
   0xc   :  { %v43_v37 = vadd.f32 %v42_v29, %v41_v32  ;;  %vm153_vm3 = vcmask 74752   ;;  %s189_s23 = scalar_lea.vmem %s162_s22, 32  ;;  %p194_p1 = scmp.lt.s32.totalorder %s162_s22, %s162_s22 }
   0xd   :  { %v62_v41 = vadd.f32 %v61_v33, %v60_v36  ;;  %p190_p0 = scmp.ne.s32.totalorder %s162_s22, %s189_s23  ;;  %p195_p2 = scmp.lt.s32.totalorder %s189_s23, %s189_s23 }
   0xe   :  { %v45_v42 = vadd.f32 %v44_v35, %v43_v37 }
   0xf   :  { %v64_v44 = vadd.f32 %v63_v38, %v62_v41  ;;  %p196_p3 = por %p195_p2, %p194_p1 }
  0x10   :  { %v47_v45 = vadd.f32 %v46_v40, %v45_v42 }
  0x11   :  { %v66_v47 = vadd.f32 %v65_v43, %v64_v44  ;;  %p197_p4 = pnand %p196_p3, %p190_p0 }
  0x12   :  { %v48_v48 = vrot.slane %v47_v45, 4 }
  0x13   :  { %v68_v49 = vadd.f32 %v67_v46, %v66_v47 }
  0x14   :  { %v49_v50 = vadd.f32 %v48_v48, %v47_v45 }
  0x15   :  { %v69_v51 = vrot.slane %v68_v49, 4 }
  0x16   :  { %v50_v52 = vrot.slane %v49_v50, 2 }
  0x17   :  { %v70_v53 = vadd.f32 %v69_v51, %v68_v49 }
  0x18   :  { %v51_v54 = vadd.f32 %v50_v52, %v49_v50 }
  0x19   :  { %v71_v55 = vrot.slane %v70_v53, 2 }
  0x1a   :  { %v52_v56 = vrot.slane %v51_v54, 1 }
  0x1b   :  { %v72_v57 = vadd.f32 %v71_v55, %v70_v53 }
  0x1c   :  { %v53_v58 = vadd.f32 %v52_v56, %v51_v54 }
  0x1d   :  { %v73_v59 = vrot.slane %v72_v57, 1 }
  0x1e   :  { %v76_v60 = vmul.f32 0.015625, %v53_v58 }
  0x1f   :  { %v74_v61 = vadd.f32 %v73_v59, %v72_v57 }
  0x20   :  { %v78_v62 = vpack.c.bf16 %v76_v60, %v76_v60 }
  0x21   :  { %v77_v63 = vmul.f32 0.015625, %v74_v61 }
  0x22   :  { %v93_v1 = vunpack.c.l.b16 %v78_v62 }
  0x23   :  { %v79_v0 = vpack.c.bf16 %v77_v63, %v77_v63 }
  0x25   :  { %v94_v2 = vunpack.c.l.b16 %v79_v0 }
  0x27   :  { %v96_v3 = vsel %vm95_vm2, %v94_v2, %v93_v1 }
  0x28   :  { %v97_v4 = vpack.c.b16 %v96_v3, %v96_v3 }
  0x2a   :  { %181 = vmatmul.mubr.msk.bf16.vlgmr.msra.gmra.mxu0 %vm32_vm1, %v97_v4 }
  0xea   :  { %v147_v6 = vpop.f32.mrf.mxu0 }
  0xeb   :  { %v148_v7 = vadd.f32 %v169_v5, %v147_v6 }
  0xec   :  { %v182_v8 = vpop.f32.mrf.mxu0 }
  0xed   :  { %154 = vst.msk [vmem:[#allocation2] sm:$0x3] %vm153_vm3, %v148_v7 }
  0xee   :  { %v150_v9 = vpop.f32.mrf.mxu0 }
  0xef   :  { %200 = shalt.err (!%p197_p4)
}
  0xf0   :  { %164 = dma.vmem_to_hbm [thread:$0]  %s162_s22, 32, %s314_s3, [#allocation3]   ;;  %v183_v10 = vpop.f32.mrf.mxu0 }
  0xf1   :  { %209 = dma.done.wait [#allocation3], 32  }
  0xf2   :  { %210 = vsyncadd [#allocation3], 4294967264 }
  0xf3   :  { %168 = vsyncpa [#allocation3], 1 }

</bundles_post_ra>
